<compile_context>
chip_gen: v7x
topology: tpu7x:2x2x1
jax: 0.10.0
libtpu: 0.0.40
codegen_flags: <defaults>
</compile_context>

<pallas_src>
import functools
import math

import jax
import jax.numpy as jnp
from jax import lax
from jax.experimental import pallas as pl
from jax.experimental.pallas import tpu as pltpu


# ----------------------------------------------------------------------------
# helpers
# ----------------------------------------------------------------------------
def _round_up(x, m):
    return (x + m - 1) // m * m


def _vmem_cap_bytes():
    """Generation-aware VMEM cap (v5e/v6e ~128 MiB, v7x 64 MiB), with headroom."""
    try:
        cap = int(pltpu.get_tpu_info().vmem_capacity_bytes)
    except Exception:
        cap = 64 << 20
    return max(32 << 20, (cap * 3) // 4)


def _clamp_vmem(need_bytes):
    return int(min(max(int(need_bytes), 32 << 20), _vmem_cap_bytes()))


# ----------------------------------------------------------------------------
# Kernel 1: tiled matmul + bias (patch-embedding "conv" as a matmul)
# ----------------------------------------------------------------------------
def _matmul_bias_kernel(x_ref, w_ref, b_ref, o_ref):
    o_ref[...] = (
        jnp.dot(x_ref[...], w_ref[...], preferred_element_type=jnp.float32)
        + b_ref[...]
    ).astype(o_ref.dtype)


def patch_embed(patches, w, b, *, tile_m=512):
    """patches: (M, K) f32, w: (K, D) f32, b: (D,) f32 -> (M, D) f32."""
    M, K = patches.shape
    D = w.shape[1]
    Kp = _round_up(K, 128)
    TM = tile_m if M >= tile_m else _round_up(M, 8)
    Mp = _round_up(M, TM)

    xp = jnp.pad(patches, ((0, Mp - M), (0, Kp - K))).astype(jnp.bfloat16)
    wp = jnp.pad(w, ((0, Kp - K), (0, 0))).astype(jnp.bfloat16)
    b2 = b.reshape(1, D).astype(jnp.float32)

    need = 2 * (TM * Kp * 2 + Kp * D * 2 + D * 4 + TM * D * 4) + (4 << 20)

    out = pl.pallas_call(
        _matmul_bias_kernel,
        grid=(Mp // TM,),
        in_specs=[pl.BlockSpec((TM, Kp), lambda i: (i, 0)),
                  pl.BlockSpec((Kp, D), lambda i: (0, 0)),
                  pl.BlockSpec((1, D), lambda i: (0, 0))],
        out_specs=pl.BlockSpec((TM, D), lambda i: (i, 0)),
        out_shape=jax.ShapeDtypeStruct((Mp, D), jnp.float32),
        compiler_params=pltpu.CompilerParams(
            dimension_semantics=("parallel",),
            vmem_limit_bytes=_clamp_vmem(need)),
    )(xp, wp, b2)
    return out[:M]


# ----------------------------------------------------------------------------
# Kernel 2: all transformer blocks fused (grid = (batch_tiles, depth)),
#           Bt images' activations resident in VMEM across depth,
#           flash-style query tiling + fused per-tile MLP,
#           final CLS-only LayerNorm fused into the last depth step.
# ----------------------------------------------------------------------------
def _dino_blocks_kernel(x_ref, g1_ref, b1_ref, wqkv_ref, bqkv_ref,
                        wproj_ref, bproj_ref, g2_ref, b2_ref,
                        wfc1_ref, bfc1_ref, wfc2_ref, bfc2_ref,
                        ng_ref, nb_ref,
                        o_ref, z_scr, q_scr,
                        *, num_heads, n_valid, tq, eps):
    d = pl.program_id(1)
    depth = pl.num_programs(1)
    Bt, Npad, D = z_scr.shape
    H = num_heads
    dh = D // H
    n_qt = Npad // tq
    scale = 1.0 / math.sqrt(dh)

    @pl.when(d == 0)
    def _():
        z_scr[...] = x_ref[...]

    def layer_norm(v, g, b):
        mu = jnp.mean(v, axis=-1, keepdims=True)
        var = jnp.mean(jnp.square(v - mu), axis=-1, keepdims=True)
        return (v - mu) * lax.rsqrt(var + eps) * g + b

    # Per-block weights, loaded once per depth step (reused across Bt images).
    g1, b1 = g1_ref[0], b1_ref[0]
    g2, b2 = g2_ref[0], b2_ref[0]
    wqkv, bqkv = wqkv_ref[0], bqkv_ref[0]
    wproj, bproj = wproj_ref[0], bproj_ref[0]
    wfc1, bfc1 = wfc1_ref[0], bfc1_ref[0]
    wfc2, bfc2 = wfc2_ref[0], bfc2_ref[0]

    if n_valid < Npad:
        # mask padded key tokens so padding never changes real-token results
        kmask = jax.lax.broadcasted_iota(jnp.int32, (1, 1, Npad), 2) < n_valid
    else:
        kmask = None

    @pl.loop(0, Bt)
    def _per_image(bi):
        zb = z_scr.at[bi]                                           # (Npad, D) view
        x = zb[...]                                                 # f32
        h = layer_norm(x, g1, b1)
        qkv = (jnp.dot(h.astype(jnp.bfloat16), wqkv,
                       preferred_element_type=jnp.float32) + bqkv)  # (Npad, 3D)
        # Fold 1/sqrt(dh) into q once per image (N*D mults, not H*N^2).
        q_scr[...] = qkv[:, 0:D] * scale
        # Keys / values laid out (H, Npad, dh) once per image (one relayout).
        # TODO(synk): assumes fused qkv columns are [q | k | v] each (H, dh);
        # verify layout when loading a real DINO/timm checkpoint.
        k_bf = jnp.swapaxes(qkv[:, D:2 * D].reshape(Npad, H, dh), 0, 1
                            ).astype(jnp.bfloat16)
        v_bf = jnp.swapaxes(qkv[:, 2 * D:3 * D].reshape(Npad, H, dh), 0, 1
                            ).astype(jnp.bfloat16)

        # Flash-style query tiling: live attention state is (H, tq, Npad) and
        # the MLP is fused into the same row tile so the (tq, 4D) intermediate
        # never lives whole either.
        @pl.loop(0, n_qt)
        def _per_qtile(t):
            r0 = pl.multiple_of(t * tq, tq)
            qt = q_scr[pl.ds(r0, tq), :]                            # (tq, D) f32
            q_bf = jnp.swapaxes(qt.reshape(tq, H, dh), 0, 1).astype(jnp.bfloat16)
            s = jnp.einsum('hqd,hkd->hqk', q_bf, k_bf,
                           preferred_element_type=jnp.float32)      # (H, tq, Npad)
            if kmask is not None:
                s = jnp.where(kmask, s, -1e30)
            s = s - jnp.max(s, axis=-1, keepdims=True)
            e = jnp.exp(s)
            p = e * pl.reciprocal(jnp.sum(e, axis=-1, keepdims=True), approx=True)
            att = jnp.einsum('hqk,hkd->hqd', p.astype(jnp.bfloat16), v_bf,
                             preferred_element_type=jnp.float32)    # (H, tq, dh)
            att = jnp.swapaxes(att, 0, 1).reshape(tq, D)
            att = (jnp.dot(att.astype(jnp.bfloat16), wproj,
                           preferred_element_type=jnp.float32) + bproj)
            y = zb[pl.ds(r0, tq), :] + att                          # residual 1
            h2 = layer_norm(y, g2, b2)
            m = (jnp.dot(h2.astype(jnp.bfloat16), wfc1,
                         preferred_element_type=jnp.float32) + bfc1)
            # TODO(synk): nn.GELU default is exact erf-GELU; tanh approximation
            # used (erf lowering in Mosaic is not guaranteed); diff < 1e-3.
            m = jax.nn.gelu(m, approximate=True)
            m = (jnp.dot(m.astype(jnp.bfloat16), wfc2,
                         preferred_element_type=jnp.float32) + bfc2)
            zb[pl.ds(r0, tq), :] = y + m                            # residual 2

        # Final LayerNorm on the CLS row only (all that forward returns).
        @pl.when(d == depth - 1)
        def _():
            cls = zb[0:1, :]
            o_ref[bi] = layer_norm(cls, ng_ref[...], nb_ref[...]).astype(o_ref.dtype)


def dino_blocks(z, params, cfg, *, n_valid, tq, batch_tile, eps=1e-6):
    """z: (B, Npad, D) f32 tokens -> (B, 1, D) normed CLS feature."""
    B, Npad, D = z.shape
    bw = params['blocks']
    depth = bw['wqkv'].shape[0]
    hidden = bw['wfc1'].shape[-1]
    H = cfg['num_heads']
    Bt = batch_tile

    Bpad = _round_up(B, Bt)
    if Bpad > B:
        z = jnp.pad(z, ((0, Bpad - B), (0, 0), (0, 0)))

    def wspec(shape):
        nd = len(shape)
        return pl.BlockSpec((1,) + shape, lambda b, d, _n=nd: (d,) + (0,) * _n)

    in_specs = [
        pl.BlockSpec((Bt, Npad, D), lambda b, d: (b, 0, 0)),   # tokens (fetched once per b)
        wspec((1, D)), wspec((1, D)),                          # ln1 g, b
        wspec((D, 3 * D)), wspec((1, 3 * D)),                  # wqkv, bqkv
        wspec((D, D)), wspec((1, D)),                          # wproj, bproj
        wspec((1, D)), wspec((1, D)),                          # ln2 g, b
        wspec((D, hidden)), wspec((1, hidden)),                # wfc1, bfc1
        wspec((hidden, D)), wspec((1, D)),                     # wfc2, bfc2
        pl.BlockSpec((1, D), lambda b, d: (0, 0)),             # final norm g
        pl.BlockSpec((1, D), lambda b, d: (0, 0)),             # final norm b
    ]
    args = (z,
            bw['ln1_g'], bw['ln1_b'], bw['wqkv'], bw['bqkv'],
            bw['wproj'], bw['bproj'], bw['ln2_g'], bw['ln2_b'],
            bw['wfc1'], bw['bfc1'], bw['wfc2'], bw['bfc2'],
            params['norm_g'], params['norm_b'])

    # VMEM accounting: double-buffered pipelined blocks + scratch + in-kernel
    # temporaries (qkv, k/v bf16, score tiles, MLP tile).
    blk_bytes = 0
    for spec, a in zip(in_specs, args):
        blk_bytes += 2 * math.prod(spec.block_shape) * jnp.dtype(a.dtype).itemsize
    blk_bytes += 2 * Bt * 1 * D * 4                       # output block
    scratch_bytes = Bt * Npad * D * 4 + Npad * D * 4      # z_scr + q_scr
    temp_bytes = (3 * Npad * D * 4                        # x / h / LN rows (f32)
                  + Npad * 3 * D * 4                      # qkv value
                  + 2 * Npad * D * 2                      # k_bf, v_bf
                  + 4 * H * tq * Npad * 4                 # scores / exp / probs (+margin)
                  + 2 * tq * hidden * 4                   # MLP intermediate
                  + 6 * tq * D * 4)                       # att / y / h2 rows
    vmem = _clamp_vmem(blk_bytes + scratch_bytes + temp_bytes + (4 << 20))

    kernel = functools.partial(_dino_blocks_kernel, num_heads=H,
                               n_valid=n_valid, tq=tq, eps=eps)

    out = pl.pallas_call(
        kernel,
        grid=(Bpad // Bt, depth),
        in_specs=in_specs,
        out_specs=pl.BlockSpec((Bt, 1, D), lambda b, d: (b, 0, 0)),
        out_shape=jax.ShapeDtypeStruct((Bpad, 1, D), jnp.float32),
        scratch_shapes=[pltpu.VMEM((Bt, Npad, D), jnp.float32),
                        pltpu.VMEM((Npad, D), jnp.float32)],
        compiler_params=pltpu.CompilerParams(
            dimension_semantics=("parallel", "arbitrary"),
            vmem_limit_bytes=vmem),
    )(*args)
    return out[:B]


# ----------------------------------------------------------------------------
# Parameters (deterministic synthetic init matching the module's shapes)
# ----------------------------------------------------------------------------
def init_params(key, cfg):
    C, p, D = cfg['in_chans'], cfg['patch_size'], cfg['embed_dim']
    depth = cfg['depth']
    hidden = int(D * cfg['mlp_ratio'])
    n_tokens = (cfg['img_size'] // p) ** 2 + 1
    K = C * p * p

    keys = jax.random.split(key, 8)

    def nrm(k, shape, dtype=jnp.float32):
        return (0.02 * jax.random.normal(k, shape, jnp.float32)).astype(dtype)

    params = {
        'patch_w': nrm(keys[0], (K, D)),              # conv k=stride=p as matmul
        'patch_b': jnp.zeros((D,), jnp.float32),
        'cls_token': nrm(keys[1], (1, 1, D)),
        'pos_embed': nrm(keys[2], (1, n_tokens, D)),
        'norm_g': jnp.ones((1, D), jnp.float32),
        'norm_b': jnp.zeros((1, D), jnp.float32),
        # Mirrors `self.model.head = nn.Linear(768, num_classes)` from __init__,
        # but DINO's ViT forward never applies the head -> dead code, unused.
        'head_w': nrm(keys[3], (D, cfg['num_classes'])),
        'head_b': jnp.zeros((cfg['num_classes'],), jnp.float32),
        # Block weights stacked along a leading depth axis; matmul weights in
        # bf16 (halved DMA, f32 MXU accumulation), LN params / biases in f32.
        'blocks': {
            'ln1_g': jnp.ones((depth, 1, D), jnp.float32),
            'ln1_b': jnp.zeros((depth, 1, D), jnp.float32),
            'wqkv': nrm(keys[4], (depth, D, 3 * D), jnp.bfloat16),
            'bqkv': jnp.zeros((depth, 1, 3 * D), jnp.float32),
            'wproj': nrm(keys[5], (depth, D, D), jnp.bfloat16),
            'bproj': jnp.zeros((depth, 1, D), jnp.float32),
            'ln2_g': jnp.ones((depth, 1, D), jnp.float32),
            'ln2_b': jnp.zeros((depth, 1, D), jnp.float32),
            'wfc1': nrm(keys[6], (depth, D, hidden), jnp.bfloat16),
            'bfc1': jnp.zeros((depth, 1, hidden), jnp.float32),
            'wfc2': nrm(keys[7], (depth, hidden, D), jnp.bfloat16),
            'bfc2': jnp.zeros((depth, 1, D), jnp.float32),
        },
    }
    return params


# ----------------------------------------------------------------------------
# Forward pass (glue in JAX, hot paths in Pallas)
# ----------------------------------------------------------------------------
def dino_forward(params, x, frame_num, cfg):
    # `frame_num` is unused, exactly as in the reference module.
    del frame_num
    B, C, H, W = x.shape
    p, D = cfg['patch_size'], cfg['embed_dim']
    gh, gw = H // p, W // p
    Np = gh * gw
    n_tokens = Np + 1

    # Patch-embedding conv (kernel == stride == p) as patch-extract + matmul.
    patches = (x.reshape(B, C, gh, p, gw, p)
                .transpose(0, 2, 4, 1, 3, 5)
                .reshape(B * Np, C * p * p))
    tok = patch_embed(patches, params['patch_w'], params['patch_b'])
    tok = tok.reshape(B, Np, D)

    cls = jnp.broadcast_to(params['cls_token'], (B, 1, D))
    z = jnp.concatenate([cls, tok], axis=1) + params['pos_embed']   # (B, n_tokens, D)
    # TODO(synk): bicubic interpolation of pos_embed for non-native input sizes
    # omitted; pos_embed is built for the actual token grid (pos_drop p=0 -> identity).

    # Token padding: multiple of 16 (bf16 sublane packing) and of the query
    # tile so flash-style tiling divides evenly; padded keys masked in-kernel.
    if n_tokens <= 128:
        tq = _round_up(n_tokens, 16)
        Npad = tq
    else:
        tq = 128
        Npad = _round_up(n_tokens, tq)
    if Npad > n_tokens:
        z = jnp.pad(z, ((0, 0), (0, Npad - n_tokens), (0, 0)))

    # Batch tile: amortize per-block weight DMA over several images while
    # keeping the resident activation scratch modest (<= ~8 MiB).
    per_img = Npad * D * 4
    Bt = max(1, min(B, (8 << 20) // max(per_img, 1), 8))

    out = dino_blocks(z, params, cfg, n_valid=n_tokens, tq=tq, batch_tile=Bt)

    # DINO's VisionTransformer.forward returns the normed CLS token x[:, 0];
    # the replaced Linear head is never invoked -> output shape [B, embed_dim].
    return out.reshape(B, D)


# ----------------------------------------------------------------------------
if __name__ == "__main__":
    cfg = dict(img_size=16, patch_size=8, in_chans=3,
               embed_dim=128, depth=2, num_heads=2, mlp_ratio=4.0,
               num_classes=7)

    key = jax.random.PRNGKey(0)
    pkey, xkey = jax.random.split(key)
    params = init_params(pkey, cfg)

    x = jax.random.normal(
        xkey, (2, cfg['in_chans'], cfg['img_size'], cfg['img_size']), jnp.float32)
    frame_num = 0

    fwd = jax.jit(functools.partial(dino_forward, cfg=cfg))
    out = fwd(params, x, frame_num)
    out = jax.block_until_ready(out)
    assert out.shape == (2, cfg['embed_dim'])
    assert bool(jnp.all(jnp.isfinite(out)))
    print("KERNEL_OK")
</pallas_src>

<mosaic_0001>
module attributes {stable_mosaic.version = 11 : i64} {
  func.func @_matmul_bias_kernel(%arg0: i32, %arg1: memref<8x256xbf16, #tpu.memory_space<vmem>>, %arg2: memref<256x128xbf16, #tpu.memory_space<vmem>>, %arg3: memref<1x128xf32, #tpu.memory_space<vmem>>, %arg4: memref<8x128xf32, #tpu.memory_space<vmem>>) attributes {dimension_semantics = [#tpu.dimension_semantics<parallel>], iteration_bounds = array<i64: 1>, scalar_prefetch = 0 : i64, scratch_operands = 0 : i64, tpu.core_type = #tpu.core_type<tc>, window_params = [{transform_indices = @transform_0, window_bounds = array<i64: 8, 256>}, {pipeline_mode = #tpu.pipeline_mode<synchronous>, transform_indices = @transform_1, window_bounds = array<i64: 256, 128>}, {pipeline_mode = #tpu.pipeline_mode<synchronous>, transform_indices = @transform_2, window_bounds = array<i64: 1, 128>}, {transform_indices = @transform_3, window_bounds = array<i64: 8, 128>}]} {
    %c0 = arith.constant 0 : index
    %c0_0 = arith.constant 0 : index
    %0 = vector.load %arg1[%c0, %c0_0] : memref<8x256xbf16, #tpu.memory_space<vmem>>, vector<8x256xbf16>
    %c0_1 = arith.constant 0 : index
    %c0_2 = arith.constant 0 : index
    %1 = vector.load %arg2[%c0_1, %c0_2] : memref<256x128xbf16, #tpu.memory_space<vmem>>, vector<256x128xbf16>
    %cst = arith.constant dense<0.000000e+00> : vector<8x128xf32>
    %2 = tpu.matmul %0, %1, %cst {dimension_numbers = #tpu.dot_dimension_numbers<[1], [0], [0], [1], [0, 0, 1, 1], [], []>} : vector<8x256xbf16>, vector<256x128xbf16>, vector<8x128xf32> -> vector<8x128xf32>
    %c0_3 = arith.constant 0 : index
    %c0_4 = arith.constant 0 : index
    %3 = vector.load %arg3[%c0_3, %c0_4] : memref<1x128xf32, #tpu.memory_space<vmem>>, vector<1x128xf32>
    %4 = vector.broadcast %3 : vector<1x128xf32> to vector<8x128xf32>
    %5 = arith.addf %2, %4 : vector<8x128xf32>
    %c0_5 = arith.constant 0 : index
    %c0_6 = arith.constant 0 : index
    %6 = vector.load %arg4[%c0_5, %c0_6] : memref<8x128xf32, #tpu.memory_space<vmem>>, vector<8x128xf32>
    tpu.vector_store %arg4[%c0_5, %c0_6], %5 {strides = array<i32>} : memref<8x128xf32, #tpu.memory_space<vmem>>, vector<8x128xf32>,
    return
  }
  func.func @transform_0(%arg0: i32) -> (i32, i32) {
    %c0_i32 = arith.constant 0 : i32
    %c0_i32_0 = arith.constant 0 : i32
    return %arg0, %c0_i32 : i32, i32
  }
  func.func @transform_1(%arg0: i32) -> (i32, i32) {
    %c0_i32 = arith.constant 0 : i32
    %c0_i32_0 = arith.constant 0 : i32
    %c0_i32_1 = arith.constant 0 : i32
    return %c0_i32, %c0_i32_0 : i32, i32
  }
  func.func @transform_2(%arg0: i32) -> (i32, i32) {
    %c0_i32 = arith.constant 0 : i32
    %c0_i32_0 = arith.constant 0 : i32
    %c0_i32_1 = arith.constant 0 : i32
    return %c0_i32, %c0_i32_0 : i32, i32
  }
  func.func @transform_3(%arg0: i32) -> (i32, i32) {
    %c0_i32 = arith.constant 0 : i32
    %c0_i32_0 = arith.constant 0 : i32
    return %arg0, %c0_i32 : i32, i32
  }
}

module attributes {stable_mosaic.version = 11 : i64} {
  func.func @_dino_blocks_kernel(%arg0: i32, %arg1: i32, %arg2: memref<2x16x128xf32, #tpu.memory_space<vmem>>, %arg3: memref<1x1x128xf32, #tpu.memory_space<vmem>>, %arg4: memref<1x1x128xf32, #tpu.memory_space<vmem>>, %arg5: memref<1x128x384xbf16, #tpu.memory_space<vmem>>, %arg6: memref<1x1x384xf32, #tpu.memory_space<vmem>>, %arg7: memref<1x128x128xbf16, #tpu.memory_space<vmem>>, %arg8: memref<1x1x128xf32, #tpu.memory_space<vmem>>, %arg9: memref<1x1x128xf32, #tpu.memory_space<vmem>>, %arg10: memref<1x1x128xf32, #tpu.memory_space<vmem>>, %arg11: memref<1x128x512xbf16, #tpu.memory_space<vmem>>, %arg12: memref<1x1x512xf32, #tpu.memory_space<vmem>>, %arg13: memref<1x512x128xbf16, #tpu.memory_space<vmem>>, %arg14: memref<1x1x128xf32, #tpu.memory_space<vmem>>, %arg15: memref<1x128xf32, #tpu.memory_space<vmem>>, %arg16: memref<1x128xf32, #tpu.memory_space<vmem>>, %arg17: memref<2x1x128xf32, #tpu.memory_space<vmem>>, %arg18: memref<2x16x128xf32, #tpu.memory_space<vmem>>, %arg19: memref<16x128xf32, #tpu.memory_space<vmem>>) attributes {dimension_semantics = [#tpu.dimension_semantics<parallel>, #tpu.dimension_semantics<arbitrary>], iteration_bounds = array<i64: 1, 2>, scalar_prefetch = 0 : i64, scratch_operands = 2 : i64, tpu.core_type = #tpu.core_type<tc>, window_params = [{transform_indices = @transform_0, window_bounds = array<i64: 2, 16, 128>}, {transform_indices = @transform_1, window_bounds = array<i64: 1, 1, 128>}, {transform_indices = @transform_2, window_bounds = array<i64: 1, 1, 128>}, {transform_indices = @transform_3, window_bounds = array<i64: 1, 128, 384>}, {transform_indices = @transform_4, window_bounds = array<i64: 1, 1, 384>}, {transform_indices = @transform_5, window_bounds = array<i64: 1, 128, 128>}, {transform_indices = @transform_6, window_bounds = array<i64: 1, 1, 128>}, {transform_indices = @transform_7, window_bounds = array<i64: 1, 1, 128>}, {transform_indices = @transform_8, window_bounds = array<i64: 1, 1, 128>}, {transform_indices = @transform_9, window_bounds = array<i64: 1, 128, 512>}, {transform_indices = @transform_10, window_bounds = array<i64: 1, 1, 512>}, {transform_indices = @transform_11, window_bounds = array<i64: 1, 512, 128>}, {transform_indices = @transform_12, window_bounds = array<i64: 1, 1, 128>}, {pipeline_mode = #tpu.pipeline_mode<synchronous>, transform_indices = @transform_13, window_bounds = array<i64: 1, 128>}, {pipeline_mode = #tpu.pipeline_mode<synchronous>, transform_indices = @transform_14, window_bounds = array<i64: 1, 128>}, {transform_indices = @transform_15, window_bounds = array<i64: 2, 1, 128>}]} {
    %c0_i32 = arith.constant 0 : i32
    %0 = arith.cmpi eq, %arg1, %c0_i32 : i32
    %1 = arith.extui %0 : i1 to i32
    %c0_i32_0 = arith.constant 0 : i32
    %2 = arith.cmpi ne, %1, %c0_i32_0 : i32
    scf.if %2 {
      %c0_38 = arith.constant 0 : index
      %c0_39 = arith.constant 0 : index
      %c0_40 = arith.constant 0 : index
      %31 = vector.load %arg2[%c0_38, %c0_39, %c0_40] : memref<2x16x128xf32, #tpu.memory_space<vmem>>, vector<2x16x128xf32>
      %c0_41 = arith.constant 0 : index
      %c0_42 = arith.constant 0 : index
      %c0_43 = arith.constant 0 : index
      %32 = vector.load %arg18[%c0_41, %c0_42, %c0_43] : memref<2x16x128xf32, #tpu.memory_space<vmem>>, vector<2x16x128xf32>
      tpu.vector_store %arg18[%c0_41, %c0_42, %c0_43], %31 {strides = array<i32>} : memref<2x16x128xf32, #tpu.memory_space<vmem>>, vector<2x16x128xf32>,
    } else {
    }
    %c0 = arith.constant 0 : index
    %c0_1 = arith.constant 0 : index
    %c0_2 = arith.constant 0 : index
    %3 = vector.load %arg3[%c0, %c0_1, %c0_2] : memref<1x1x128xf32, #tpu.memory_space<vmem>>, vector<1x1x128xf32>
    %4 = vector.shape_cast %3 : vector<1x1x128xf32> to vector<1x128xf32>
    %c0_3 = arith.constant 0 : index
    %c0_4 = arith.constant 0 : index
    %c0_5 = arith.constant 0 : index
    %5 = vector.load %arg4[%c0_3, %c0_4, %c0_5] : memref<1x1x128xf32, #tpu.memory_space<vmem>>, vector<1x1x128xf32>
    %6 = vector.shape_cast %5 : vector<1x1x128xf32> to vector<1x128xf32>
    %c0_6 = arith.constant 0 : index
    %c0_7 = arith.constant 0 : index
    %c0_8 = arith.constant 0 : index
    %7 = vector.load %arg9[%c0_6, %c0_7, %c0_8] : memref<1x1x128xf32, #tpu.memory_space<vmem>>, vector<1x1x128xf32>
    %8 = vector.shape_cast %7 : vector<1x1x128xf32> to vector<1x128xf32>
    %c0_9 = arith.constant 0 : index
    %c0_10 = arith.constant 0 : index
    %c0_11 = arith.constant 0 : index
    %9 = vector.load %arg10[%c0_9, %c0_10, %c0_11] : memref<1x1x128xf32, #tpu.memory_space<vmem>>, vector<1x1x128xf32>
    %10 = vector.shape_cast %9 : vector<1x1x128xf32> to vector<1x128xf32>
    %c0_12 = arith.constant 0 : index
    %c0_13 = arith.constant 0 : index
    %c0_14 = arith.constant 0 : index
    %11 = vector.load %arg5[%c0_12, %c0_13, %c0_14] : memref<1x128x384xbf16, #tpu.memory_space<vmem>>, vector<1x128x384xbf16>
    %12 = vector.shape_cast %11 : vector<1x128x384xbf16> to vector<128x384xbf16>
    %c0_15 = arith.constant 0 : index
    %c0_16 = arith.constant 0 : index
    %c0_17 = arith.constant 0 : index
    %13 = vector.load %arg6[%c0_15, %c0_16, %c0_17] : memref<1x1x384xf32, #tpu.memory_space<vmem>>, vector<1x1x384xf32>
    %14 = vector.shape_cast %13 : vector<1x1x384xf32> to vector<1x384xf32>
    %c0_18 = arith.constant 0 : index
    %c0_19 = arith.constant 0 : index
    %c0_20 = arith.constant 0 : index
    %15 = vector.load %arg7[%c0_18, %c0_19, %c0_20] : memref<1x128x128xbf16, #tpu.memory_space<vmem>>, vector<1x128x128xbf16>
    %16 = vector.shape_cast %15 : vector<1x128x128xbf16> to vector<128x128xbf16>
    %c0_21 = arith.constant 0 : index
    %c0_22 = arith.constant 0 : index
    %c0_23 = arith.constant 0 : index
    %17 = vector.load %arg8[%c0_21, %c0_22, %c0_23] : memref<1x1x128xf32, #tpu.memory_space<vmem>>, vector<1x1x128xf32>
    %18 = vector.shape_cast %17 : vector<1x1x128xf32> to vector<1x128xf32>
    %c0_24 = arith.constant 0 : index
    %c0_25 = arith.constant 0 : index
    %c0_26 = arith.constant 0 : index
    %19 = vector.load %arg11[%c0_24, %c0_25, %c0_26] : memref<1x128x512xbf16, #tpu.memory_space<vmem>>, vector<1x128x512xbf16>
    %20 = vector.shape_cast %19 : vector<1x128x512xbf16> to vector<128x512xbf16>
    %c0_27 = arith.constant 0 : index
    %c0_28 = arith.constant 0 : index
    %c0_29 = arith.constant 0 : index
    %21 = vector.load %arg12[%c0_27, %c0_28, %c0_29] : memref<1x1x512xf32, #tpu.memory_space<vmem>>, vector<1x1x512xf32>
    %22 = vector.shape_cast %21 : vector<1x1x512xf32> to vector<1x512xf32>
    %c0_30 = arith.constant 0 : index
    %c0_31 = arith.constant 0 : index
    %c0_32 = arith.constant 0 : index
    %23 = vector.load %arg13[%c0_30, %c0_31, %c0_32] : memref<1x512x128xbf16, #tpu.memory_space<vmem>>, vector<1x512x128xbf16>
    %24 = vector.shape_cast %23 : vector<1x512x128xbf16> to vector<512x128xbf16>
    %c0_33 = arith.constant 0 : index
    %c0_34 = arith.constant 0 : index
    %c0_35 = arith.constant 0 : index
    %25 = vector.load %arg14[%c0_33, %c0_34, %c0_35] : memref<1x1x128xf32, #tpu.memory_space<vmem>>, vector<1x1x128xf32>
    %26 = vector.shape_cast %25 : vector<1x1x128xf32> to vector<1x128xf32>
    %27 = tpu.iota {dimensions = array<i32: 2>} : vector<1x1x16xi32>
    %c5_i32 = arith.constant 5 : i32
    %28 = vector.broadcast %c5_i32 : i32 to vector<1x1x16xi32>
    %29 = arith.cmpi slt, %27, %28 : vector<1x1x16xi32>
    %c0_i32_36 = arith.constant 0 : i32
    %c2_i32 = arith.constant 2 : i32
    %30 = arith.addi %c0_i32_36, %c2_i32 : i32
    %c1_i32 = arith.constant 1 : i32
    scf.for %arg20 = %c0_i32_36 to %30 step %c1_i32  : i32 {
      %c1_i32_38 = arith.constant 1 : i32
      %31 = arith.muli %arg20, %c1_i32_38 : i32
      %c0_i32_39 = arith.constant 0 : i32
      %32 = arith.addi %c0_i32_39, %31 : i32
      %33 = arith.index_cast %32 : i32 to index
      %c0_40 = arith.constant 0 : index
      %c0_41 = arith.constant 0 : index
      %34 = vector.load %arg18[%33, %c0_40, %c0_41] : memref<2x16x128xf32, #tpu.memory_space<vmem>>, vector<1x16x128xf32>
      %35 = vector.shape_cast %34 : vector<1x16x128xf32> to vector<16x128xf32>
      %cst = arith.constant dense<0.000000e+00> : vector<16xf32>
      %36 = vector.multi_reduction <add>, %35, %cst [1] : vector<16x128xf32> to vector<16xf32>
      %37 = vector.shape_cast %36 : vector<16xf32> to vector<16x1xf32>
      %cst_42 = arith.constant 1.280000e+02 : f32
      %38 = vector.broadcast %cst_42 : f32 to vector<16x1xf32>
      %39 = arith.divf %37, %38 : vector<16x1xf32>
      %40 = vector.broadcast %39 : vector<16x1xf32> to vector<16x128xf32>
      %41 = arith.subf %35, %40 : vector<16x128xf32>
      %42 = arith.mulf %41, %41 : vector<16x128xf32>
      %cst_43 = arith.constant dense<0.000000e+00> : vector<16xf32>
      %43 = vector.multi_reduction <add>, %42, %cst_43 [1] : vector<16x128xf32> to vector<16xf32>
      %44 = vector.shape_cast %43 : vector<16xf32> to vector<16x1xf32>
      %cst_44 = arith.constant 1.280000e+02 : f32
      %45 = vector.broadcast %cst_44 : f32 to vector<16x1xf32>
      %46 = arith.divf %44, %45 : vector<16x1xf32>
      %47 = vector.broadcast %39 : vector<16x1xf32> to vector<16x128xf32>
      %48 = arith.subf %35, %47 : vector<16x128xf32>
      %cst_45 = arith.constant 9.99999997E-7 : f32
      %49 = vector.broadcast %cst_45 : f32 to vector<16x1xf32>
      %50 = arith.addf %46, %49 : vector<16x1xf32>
      %51 = math.rsqrt %50 : vector<16x1xf32>
      %52 = vector.broadcast %51 : vector<16x1xf32> to vector<16x128xf32>
      %53 = arith.mulf %48, %52 : vector<16x128xf32>
      %54 = vector.broadcast %4 : vector<1x128xf32> to vector<16x128xf32>
      %55 = arith.mulf %53, %54 : vector<16x128xf32>
      %56 = vector.broadcast %6 : vector<1x128xf32> to vector<16x128xf32>
      %57 = arith.addf %55, %56 : vector<16x128xf32>
      %58 = arith.truncf %57 : vector<16x128xf32> to vector<16x128xbf16>
      %cst_46 = arith.constant dense<0.000000e+00> : vector<16x384xf32>
      %59 = tpu.matmul %58, %12, %cst_46 {dimension_numbers = #tpu.dot_dimension_numbers<[1], [0], [0], [1], [0, 0, 1, 1], [], []>} : vector<16x128xbf16>, vector<128x384xbf16>, vector<16x384xf32> -> vector<16x384xf32>
      %60 = vector.broadcast %14 : vector<1x384xf32> to vector<16x384xf32>
      %61 = arith.addf %59, %60 : vector<16x384xf32>
      %62 = vector.extract_strided_slice %61 {offsets = [0, 0], sizes = [16, 128], strides = [1, 1]} : vector<16x384xf32> to vector<16x128xf32>
      %cst_47 = arith.constant 1.250000e-01 : f32
      %63 = vector.broadcast %cst_47 : f32 to vector<16x128xf32>
      %64 = arith.mulf %62, %63 : vector<16x128xf32>
      %c0_48 = arith.constant 0 : index
      %c0_49 = arith.constant 0 : index
      %65 = vector.load %arg19[%c0_48, %c0_49] : memref<16x128xf32, #tpu.memory_space<vmem>>, vector<16x128xf32>
      tpu.vector_store %arg19[%c0_48, %c0_49], %64 {strides = array<i32>} : memref<16x128xf32, #tpu.memory_space<vmem>>, vector<16x128xf32>,
      %66 = vector.extract_strided_slice %61 {offsets = [0, 128], sizes = [16, 128], strides = [1, 1]} : vector<16x384xf32> to vector<16x128xf32>
      %67 = vector.shape_cast %66 : vector<16x128xf32> to vector<16x2x64xf32>
      %68 = tpu.transpose %67, [1, 0, 2] : vector<16x2x64xf32> -> vector<2x16x64xf32>
      %69 = arith.truncf %68 : vector<2x16x64xf32> to vector<2x16x64xbf16>
      %70 = vector.extract_strided_slice %61 {offsets = [0, 256], sizes = [16, 128], strides = [1, 1]} : vector<16x384xf32> to vector<16x128xf32>
      %71 = vector.shape_cast %70 : vector<16x128xf32> to vector<16x2x64xf32>
      %72 = tpu.transpose %71, [1, 0, 2] : vector<16x2x64xf32> -> vector<2x16x64xf32>
      %73 = arith.truncf %72 : vector<2x16x64xf32> to vector<2x16x64xbf16>
      %c0_i32_50 = arith.constant 0 : i32
      %c1_i32_51 = arith.constant 1 : i32
      %74 = arith.muli %c0_i32_50, %c1_i32_51 : i32
      %c0_i32_52 = arith.constant 0 : i32
      %75 = arith.addi %c0_i32_52, %74 : i32
      %c16_i32 = arith.constant 16 : i32
      %76 = arith.muli %75, %c16_i32 : i32
      %77 = tpu.assume_multiple %76, 16 : i32
      %78 = arith.index_cast %77 : i32 to index
      %c0_53 = arith.constant 0 : index
      %79 = vector.load %arg19[%78, %c0_53] : memref<16x128xf32, #tpu.memory_space<vmem>>, vector<16x128xf32>
      %80 = vector.shape_cast %79 : vector<16x128xf32> to vector<16x2x64xf32>
      %81 = tpu.transpose %80, [1, 0, 2] : vector<16x2x64xf32> -> vector<2x16x64xf32>
      %82 = arith.truncf %81 : vector<2x16x64xf32> to vector<2x16x64xbf16>
      "tpu.trace_start"() <{level = 10 : i32, message = "hqd,hkd->hqk"}> : () -> ()
      %cst_54 = arith.constant dense<0.000000e+00> : vector<2x16x16xf32>
      %83 = tpu.matmul %82, %69, %cst_54 {dimension_numbers = #tpu.dot_dimension_numbers<[2], [2], [1], [1], [0, 0, 0, 1, 1, 1], [0], [0]>} : vector<2x16x64xbf16>, vector<2x16x64xbf16>, vector<2x16x16xf32> -> vector<2x16x16xf32>
      %cst_55 = arith.constant -1.000000e+30 : f32
      "tpu.trace_stop"() : () -> ()
      %84 = vector.shape_cast %29 : vector<1x1x16xi1> to vector<1x1x16xi1>
      %85 = vector.broadcast %84 : vector<1x1x16xi1> to vector<2x16x16xi1>
      %86 = vector.broadcast %cst_55 : f32 to vector<2x16x16xf32>
      %87 = arith.select %85, %83, %86 : vector<2x16x16xi1>, vector<2x16x16xf32>
      %cst_56 = arith.constant dense<0xFF800000> : vector<2x16xf32>
      %88 = vector.multi_reduction <maximumf>, %87, %cst_56 [2] : vector<2x16x16xf32> to vector<2x16xf32>
      %89 = vector.shape_cast %88 : vector<2x16xf32> to vector<2x16x1xf32>
      %90 = vector.broadcast %89 : vector<2x16x1xf32> to vector<2x16x16xf32>
      %91 = arith.subf %87, %90 : vector<2x16x16xf32>
      %92 = math.exp %91 : vector<2x16x16xf32>
      %cst_57 = arith.constant dense<0.000000e+00> : vector<2x16xf32>
      %93 = vector.multi_reduction <add>, %92, %cst_57 [2] : vector<2x16x16xf32> to vector<2x16xf32>
      %94 = vector.shape_cast %93 : vector<2x16xf32> to vector<2x16x1xf32>
      %95 = tpu.reciprocal %94 {approx = true} : vector<2x16x1xf32> -> vector<2x16x1xf32>
      %96 = vector.broadcast %95 : vector<2x16x1xf32> to vector<2x16x16xf32>
      %97 = arith.mulf %92, %96 : vector<2x16x16xf32>
      %98 = arith.truncf %97 : vector<2x16x16xf32> to vector<2x16x16xbf16>
      "tpu.trace_start"() <{level = 10 : i32, message = "hqk,hkd->hqd"}> : () -> ()
      %cst_58 = arith.constant dense<0.000000e+00> : vector<2x16x64xf32>
      %99 = tpu.matmul %98, %73, %cst_58 {dimension_numbers = #tpu.dot_dimension_numbers<[2], [1], [1], [2], [0, 0, 0, 1, 1, 2], [0], [0]>} : vector<2x16x16xbf16>, vector<2x16x64xbf16>, vector<2x16x64xf32> -> vector<2x16x64xf32>
      "tpu.trace_stop"() : () -> ()
      %100 = tpu.transpose %99, [1, 0, 2] : vector<2x16x64xf32> -> vector<16x2x64xf32>
      %101 = vector.shape_cast %100 : vector<16x2x64xf32> to vector<16x128xf32>
      %102 = arith.truncf %101 : vector<16x128xf32> to vector<16x128xbf16>
      %cst_59 = arith.constant dense<0.000000e+00> : vector<16x128xf32>
      %103 = tpu.matmul %102, %16, %cst_59 {dimension_numbers = #tpu.dot_dimension_numbers<[1], [0], [0], [1], [0, 0, 1, 1], [], []>} : vector<16x128xbf16>, vector<128x128xbf16>, vector<16x128xf32> -> vector<16x128xf32>
      %104 = vector.broadcast %18 : vector<1x128xf32> to vector<16x128xf32>
      %105 = arith.addf %103, %104 : vector<16x128xf32>
      %c0_i32_60 = arith.constant 0 : i32
      %c0_i32_61 = arith.constant 0 : i32
      %106 = tpu.memref_slice %arg18[%32, %c0_i32_60, %c0_i32_61] : memref<2x16x128xf32, #tpu.memory_space<vmem>> -> memref<1x16x128xf32, #tpu.memory_space<vmem>>
      %107 = tpu.memref_squeeze %106 : memref<1x16x128xf32, #tpu.memory_space<vmem>> -> memref<16x128xf32, #tpu.memory_space<vmem>>
      %108 = arith.index_cast %77 : i32 to index
      %c0_62 = arith.constant 0 : index
      %109 = vector.load %107[%108, %c0_62] : memref<16x128xf32, #tpu.memory_space<vmem>>, vector<16x128xf32>
      %110 = arith.addf %109, %105 : vector<16x128xf32>
      %cst_63 = arith.constant dense<0.000000e+00> : vector<16xf32>
      %111 = vector.multi_reduction <add>, %110, %cst_63 [1] : vector<16x128xf32> to vector<16xf32>
      %112 = vector.shape_cast %111 : vector<16xf32> to vector<16x1xf32>
      %cst_64 = arith.constant 1.280000e+02 : f32
      %113 = vector.broadcast %cst_64 : f32 to vector<16x1xf32>
      %114 = arith.divf %112, %113 : vector<16x1xf32>
      %115 = vector.broadcast %114 : vector<16x1xf32> to vector<16x128xf32>
      %116 = arith.subf %110, %115 : vector<16x128xf32>
      %117 = arith.mulf %116, %116 : vector<16x128xf32>
      %cst_65 = arith.constant dense<0.000000e+00> : vector<16xf32>
      %118 = vector.multi_reduction <add>, %117, %cst_65 [1] : vector<16x128xf32> to vector<16xf32>
      %119 = vector.shape_cast %118 : vector<16xf32> to vector<16x1xf32>
      %cst_66 = arith.constant 1.280000e+02 : f32
      %120 = vector.broadcast %cst_66 : f32 to vector<16x1xf32>
      %121 = arith.divf %119, %120 : vector<16x1xf32>
      %122 = vector.broadcast %114 : vector<16x1xf32> to vector<16x128xf32>
      %123 = arith.subf %110, %122 : vector<16x128xf32>
      %cst_67 = arith.constant 9.99999997E-7 : f32
      %124 = vector.broadcast %cst_67 : f32 to vector<16x1xf32>
      %125 = arith.addf %121, %124 : vector<16x1xf32>
      %126 = math.rsqrt %125 : vector<16x1xf32>
      %127 = vector.broadcast %126 : vector<16x1xf32> to vector<16x128xf32>
      %128 = arith.mulf %123, %127 : vector<16x128xf32>
      %129 = vector.broadcast %8 : vector<1x128xf32> to vector<16x128xf32>
      %130 = arith.mulf %128, %129 : vector<16x128xf32>
      %131 = vector.broadcast %10 : vector<1x128xf32> to vector<16x128xf32>
      %132 = arith.addf %130, %131 : vector<16x128xf32>
      %133 = arith.truncf %132 : vector<16x128xf32> to vector<16x128xbf16>
      %cst_68 = arith.constant dense<0.000000e+00> : vector<16x512xf32>
      %134 = tpu.matmul %133, %20, %cst_68 {dimension_numbers = #tpu.dot_dimension_numbers<[1], [0], [0], [1], [0, 0, 1, 1], [], []>} : vector<16x128xbf16>, vector<128x512xbf16>, vector<16x512xf32> -> vector<16x512xf32>
      %135 = vector.broadcast %22 : vector<1x512xf32> to vector<16x512xf32>
      %136 = arith.addf %134, %135 : vector<16x512xf32>
      %137 = arith.mulf %136, %136 : vector<16x512xf32>
      %138 = arith.mulf %136, %137 : vector<16x512xf32>
      %cst_69 = arith.constant 4.471500e-02 : f32
      %139 = vector.broadcast %cst_69 : f32 to vector<16x512xf32>
      %140 = arith.mulf %139, %138 : vector<16x512xf32>
      %141 = arith.addf %136, %140 : vector<16x512xf32>
      %cst_70 = arith.constant 0.797884583 : f32
      %142 = vector.broadcast %cst_70 : f32 to vector<16x512xf32>
      %143 = arith.mulf %142, %141 : vector<16x512xf32>
      %144 = math.tanh %143 : vector<16x512xf32>
      %cst_71 = arith.constant 1.000000e+00 : f32
      %145 = vector.broadcast %cst_71 : f32 to vector<16x512xf32>
      %146 = arith.addf %145, %144 : vector<16x512xf32>
      %cst_72 = arith.constant 5.000000e-01 : f32
      %147 = vector.broadcast %cst_72 : f32 to vector<16x512xf32>
      %148 = arith.mulf %147, %146 : vector<16x512xf32>
      %149 = arith.mulf %136, %148 : vector<16x512xf32>
      %150 = arith.truncf %149 : vector<16x512xf32> to vector<16x512xbf16>
      %cst_73 = arith.constant dense<0.000000e+00> : vector<16x128xf32>
      %151 = tpu.matmul %150, %24, %cst_73 {dimension_numbers = #tpu.dot_dimension_numbers<[1], [0], [0], [1], [0, 0, 1, 1], [], []>} : vector<16x512xbf16>, vector<512x128xbf16>, vector<16x128xf32> -> vector<16x128xf32>
      %152 = vector.broadcast %26 : vector<1x128xf32> to vector<16x128xf32>
      %153 = arith.addf %151, %152 : vector<16x128xf32>
      %154 = arith.addf %110, %153 : vector<16x128xf32>
      %c0_i32_74 = arith.constant 0 : i32
      %c0_i32_75 = arith.constant 0 : i32
      %155 = tpu.memref_slice %arg18[%32, %c0_i32_74, %c0_i32_75] : memref<2x16x128xf32, #tpu.memory_space<vmem>> -> memref<1x16x128xf32, #tpu.memory_space<vmem>>
      %156 = tpu.memref_squeeze %155 : memref<1x16x128xf32, #tpu.memory_space<vmem>> -> memref<16x128xf32, #tpu.memory_space<vmem>>
      %157 = arith.index_cast %77 : i32 to index
      %c0_76 = arith.constant 0 : index
      %158 = vector.load %156[%157, %c0_76] : memref<16x128xf32, #tpu.memory_space<vmem>>, vector<16x128xf32>
      tpu.vector_store %156[%157, %c0_76], %154 {strides = array<i32>} : memref<16x128xf32, #tpu.memory_space<vmem>>, vector<16x128xf32>,
      %c1_i32_77 = arith.constant 1 : i32
      %c1_i32_78 = arith.constant 1 : i32
      %159 = arith.cmpi eq, %arg1, %c1_i32_78 : i32
      %160 = arith.extui %159 : i1 to i32
      %c0_i32_79 = arith.constant 0 : i32
      %161 = arith.cmpi ne, %160, %c0_i32_79 : i32
      scf.if %161 {
        %c0_i32_80 = arith.constant 0 : i32
        %c0_i32_81 = arith.constant 0 : i32
        %162 = tpu.memref_slice %arg18[%32, %c0_i32_80, %c0_i32_81] : memref<2x16x128xf32, #tpu.memory_space<vmem>> -> memref<1x16x128xf32, #tpu.memory_space<vmem>>
        %163 = tpu.memref_squeeze %162 : memref<1x16x128xf32, #tpu.memory_space<vmem>> -> memref<16x128xf32, #tpu.memory_space<vmem>>
        %c0_82 = arith.constant 0 : index
        %c0_83 = arith.constant 0 : index
        %164 = vector.load %163[%c0_82, %c0_83] : memref<16x128xf32, #tpu.memory_space<vmem>>, vector<1x128xf32>
        %c0_84 = arith.constant 0 : index
        %c0_85 = arith.constant 0 : index
        %165 = vector.load %arg15[%c0_84, %c0_85] : memref<1x128xf32, #tpu.memory_space<vmem>>, vector<1x128xf32>
        %c0_86 = arith.constant 0 : index
        %c0_87 = arith.constant 0 : index
        %166 = vector.load %arg16[%c0_86, %c0_87] : memref<1x128xf32, #tpu.memory_space<vmem>>, vector<1x128xf32>
        %cst_88 = arith.constant dense<0.000000e+00> : vector<1xf32>
        %167 = vector.multi_reduction <add>, %164, %cst_88 [1] : vector<1x128xf32> to vector<1xf32>
        %168 = vector.shape_cast %167 : vector<1xf32> to vector<1x1xf32>
        %cst_89 = arith.constant 1.280000e+02 : f32
        %169 = vector.broadcast %cst_89 : f32 to vector<1x1xf32>
        %170 = arith.divf %168, %169 : vector<1x1xf32>
        %171 = vector.broadcast %170 : vector<1x1xf32> to vector<1x128xf32>
        %172 = arith.subf %164, %171 : vector<1x128xf32>
        %173 = arith.mulf %172, %172 : vector<1x128xf32>
        %cst_90 = arith.constant dense<0.000000e+00> : vector<1xf32>
        %174 = vector.multi_reduction <add>, %173, %cst_90 [1] : vector<1x128xf32> to vector<1xf32>
        %175 = vector.shape_cast %174 : vector<1xf32> to vector<1x1xf32>
        %cst_91 = arith.constant 1.280000e+02 : f32
        %176 = vector.broadcast %cst_91 : f32 to vector<1x1xf32>
        %177 = arith.divf %175, %176 : vector<1x1xf32>
        %178 = vector.broadcast %170 : vector<1x1xf32> to vector<1x128xf32>
        %179 = arith.subf %164, %178 : vector<1x128xf32>
        %cst_92 = arith.constant 9.99999997E-7 : f32
        %180 = vector.broadcast %cst_92 : f32 to vector<1x1xf32>
        %181 = arith.addf %177, %180 : vector<1x1xf32>
        %182 = math.rsqrt %181 : vector<1x1xf32>
        %183 = vector.broadcast %182 : vector<1x1xf32> to vector<1x128xf32>
        %184 = arith.mulf %179, %183 : vector<1x128xf32>
        %185 = arith.mulf %184, %165 : vector<1x128xf32>
        %186 = arith.addf %185, %166 : vector<1x128xf32>
        %187 = arith.index_cast %32 : i32 to index
        %c0_93 = arith.constant 0 : index
        %c0_94 = arith.constant 0 : index
        %188 = vector.load %arg17[%187, %c0_93, %c0_94] : memref<2x1x128xf32, #tpu.memory_space<vmem>>, vector<1x1x128xf32>
        %189 = vector.shape_cast %188 : vector<1x1x128xf32> to vector<1x128xf32>
        %190 = vector.shape_cast %186 : vector<1x128xf32> to vector<1x1x128xf32>
        tpu.vector_store %arg17[%187, %c0_93, %c0_94], %190 {strides = array<i32>} : memref<2x1x128xf32, #tpu.memory_space<vmem>>, vector<1x1x128xf32>,
      } else {
      }
    }
    %c2_i32_37 = arith.constant 2 : i32
    return
  }
  func.func @transform_0(%arg0: i32, %arg1: i32) -> (i32, i32, i32) {
    %c0_i32 = arith.constant 0 : i32
    %c0_i32_0 = arith.constant 0 : i32
    %c0_i32_1 = arith.constant 0 : i32
    return %arg0, %c0_i32, %c0_i32_0 : i32, i32, i32
  }
  func.func @transform_1(%arg0: i32, %arg1: i32) -> (i32, i32, i32) {
    %c0_i32 = arith.constant 0 : i32
    %c0_i32_0 = arith.constant 0 : i32
    %c0_i32_1 = arith.constant 0 : i32
    return %arg1, %c0_i32, %c0_i32_0 : i32, i32, i32
  }
  func.func @transform_2(%arg0: i32, %arg1: i32) -> (i32, i32, i32) {
    %c0_i32 = arith.constant 0 : i32
    %c0_i32_0 = arith.constant 0 : i32
    %c0_i32_1 = arith.constant 0 : i32
    return %arg1, %c0_i32, %c0_i32_0 : i32, i32, i32
  }
  func.func @transform_3(%arg0: i32, %arg1: i32) -> (i32, i32, i32) {
    %c0_i32 = arith.constant 0 : i32
    %c0_i32_0 = arith.constant 0 : i32
    %c0_i32_1 = arith.constant 0 : i32
    return %arg1, %c0_i32, %c0_i32_0 : i32, i32, i32
  }
  func.func @transform_4(%arg0: i32, %arg1: i32) -> (i32, i32, i32) {
    %c0_i32 = arith.constant 0 : i32
    %c0_i32_0 = arith.constant 0 : i32
    %c0_i32_1 = arith.constant 0 : i32
    return %arg1, %c0_i32, %c0_i32_0 : i32, i32, i32
  }
  func.func @transform_5(%arg0: i32, %arg1: i32) -> (i32, i32, i32) {
    %c0_i32 = arith.constant 0 : i32
    %c0_i32_0 = arith.constant 0 : i32
    %c0_i32_1 = arith.constant 0 : i32
    return %arg1, %c0_i32, %c0_i32_0 : i32, i32, i32
  }
  func.func @transform_6(%arg0: i32, %arg1: i32) -> (i32, i32, i32) {
    %c0_i32 = arith.constant 0 : i32
    %c0_i32_0 = arith.constant 0 : i32
    %c0_i32_1 = arith.constant 0 : i32
    return %arg1, %c0_i32, %c0_i32_0 : i32, i32, i32
  }
  func.func @transform_7(%arg0: i32, %arg1: i32) -> (i32, i32, i32) {
    %c0_i32 = arith.constant 0 : i32
    %c0_i32_0 = arith.constant 0 : i32
    %c0_i32_1 = arith.constant 0 : i32
    return %arg1, %c0_i32, %c0_i32_0 : i32, i32, i32
  }
  func.func @transform_8(%arg0: i32, %arg1: i32) -> (i32, i32, i32) {
    %c0_i32 = arith.constant 0 : i32
    %c0_i32_0 = arith.constant 0 : i32
    %c0_i32_1 = arith.constant 0 : i32
    return %arg1, %c0_i32, %c0_i32_0 : i32, i32, i32
  }
  func.func @transform_9(%arg0: i32, %arg1: i32) -> (i32, i32, i32) {
    %c0_i32 = arith.constant 0 : i32
    %c0_i32_0 = arith.constant 0 : i32
    %c0_i32_1 = arith.constant 0 : i32
    return %arg1, %c0_i32, %c0_i32_0 : i32, i32, i32
  }
  func.func @transform_10(%arg0: i32, %arg1: i32) -> (i32, i32, i32) {
    %c0_i32 = arith.constant 0 : i32
    %c0_i32_0 = arith.constant 0 : i32
    %c0_i32_1 = arith.constant 0 : i32
    return %arg1, %c0_i32, %c0_i32_0 : i32, i32, i32
  }
  func.func @transform_11(%arg0: i32, %arg1: i32) -> (i32, i32, i32) {
    %c0_i32 = arith.constant 0 : i32
    %c0_i32_0 = arith.constant 0 : i32
    %c0_i32_1 = arith.constant 0 : i32
    return %arg1, %c0_i32, %c0_i32_0 : i32, i32, i32
  }
  func.func @transform_12(%arg0: i32, %arg1: i32) -> (i32, i32, i32) {
    %c0_i32 = arith.constant 0 : i32
    %c0_i32_0 = arith.constant 0 : i32
    %c0_i32_1 = arith.constant 0 : i32
    return %arg1, %c0_i32, %c0_i32_0 : i32, i32, i32
  }
  func.func @transform_13(%arg0: i32, %arg1: i32) -> (i32, i32) {
    %c0_i32 = arith.constant 0 : i32
    %c0_i32_0 = arith.constant 0 : i32
    %c0_i32_1 = arith.constant 0 : i32
    return %c0_i32, %c0_i32_0 : i32, i32
  }
  func.func @transform_14(%arg0: i32, %arg1: i32) -> (i32, i32) {
    %c0_i32 = arith.constant 0 : i32
    %c0_i32_0 = arith.constant 0 : i32
    %c0_i32_1 = arith.constant 0 : i32
    return %c0_i32, %c0_i32_0 : i32, i32
  }
  func.func @transform_15(%arg0: i32, %arg1: i32) -> (i32, i32, i32) {
    %c0_i32 = arith.constant 0 : i32
    %c0_i32_0 = arith.constant 0 : i32
    %c0_i32_1 = arith.constant 0 : i32
    return %arg0, %c0_i32, %c0_i32_0 : i32, i32, i32
  }
}

</mosaic_0001>

<bundles_post_ra>
// kernel: dino_forward.2
= control target key start
LH: loop header
LB: loop body
LE: loop exit
PB: predicated region body
PF: predicated region fallthrough
CT: control target
= control target key end

     0   :  { %s339_s1 = inlined_call_operand.vmem [shape: bf16[256,128], index: 1, kind: input, shape index: {}]   ;;  %s340_s0 = inlined_call_operand.vmem [shape: bf16[8,256], index: 0, kind: input, shape index: {}]   ;;  %s341_s2 = inlined_call_operand.vmem [shape: f32[1,128], index: 2, kind: input, shape index: {}]   ;;  %s342_s3 = inlined_call_operand.vmem [shape: f32[8,128], index: 3, kind: output, shape index: {}]  }
   0x1   :  { %v244_v0 = vld [vmem:[%s339_s1 + $0x40] sm:$0xff]   ;;  %v246_v2 = vld [vmem:[%s339_s1 + $0x48] sm:$0xff]   ;;  %v248_v4 = vld [vmem:[%s339_s1 + $0x50] sm:$0xff]  }
   0x2   :  { %v245_v1 = vld [vmem:[%s339_s1] sm:$0xff]   ;;  %222 = vmatprep.subr.bf16.mxu0 %v244_v0  ;;  %v247_v3 = vld [vmem:[%s339_s1 + $0x8] sm:$0xff]   ;;  %v249_v5 = vld [vmem:[%s339_s1 + $0x10] sm:$0xff]  }
   0x3   :  { %223 = vmatpush3.bf16.msra.mxu0 %v245_v1  ;;  %v250_v6 = vld [vmem:[%s339_s1 + $0x58] sm:$0xff]   ;;  %v252_v8 = vld [vmem:[%s339_s1 + $0x60] sm:$0xff]   ;;  %v254_v10 = vld [vmem:[%s339_s1 + $0x68] sm:$0xff]  }
   0x4   :  { %224 = vmatprep.subr.bf16.mxu0 %v246_v2  ;;  %v251_v7 = vld [vmem:[%s339_s1 + $0x18] sm:$0xff]   ;;  %v253_v9 = vld [vmem:[%s339_s1 + $0x20] sm:$0xff]   ;;  %v255_v13 = vld [vmem:[%s339_s1 + $0x28] sm:$0xff]  }
   0x5   :  { %v15_v11 = vld [vmem:[%s340_s0] sm:$0xff]  ;;  %v256_v14 = vld [vmem:[%s339_s1 + $0x70] sm:$0xff]   ;;  %v258_v16 = vld [vmem:[%s339_s1 + $0x78] sm:$0xff]  }
   0x6   :  { %v205_v12 = vcombine.high %v15_v11, %v15_v11  ;;  %v257_v15 = vld [vmem:[%s339_s1 + $0x30] sm:$0xff]   ;;  %v259_v17 = vld [vmem:[%s339_s1 + $0x38] sm:$0xff]   ;;  %v204_v18 = vcombine.low %v15_v11, %v15_v11  ;;  %v203_v20 = vld [vmem:[%s341_s2] ss:$0 sm:$0xff] }
   0x7   :  { %225 = vmatpush3.bf16.msra.mxu0 %v247_v3 }
   0x8   :  { %226 = vmatprep.subr.bf16.mxu0 %v248_v4  ;;  %190 = vmatprep.mubr.bf16.mxu0 %v205_v12 }
   0xb   :  { %227 = vmatpush3.bf16.msra.mxu0 %v249_v5 }
   0xc   :  { %228 = vmatprep.subr.bf16.mxu0 %v250_v6 }
   0xf   :  { %229 = vmatpush3.bf16.msra.mxu0 %v251_v7 }
  0x10   :  { %230 = vmatprep.subr.bf16.mxu0 %v252_v8 }
  0x13   :  { %231 = vmatpush3.bf16.msra.mxu0 %v253_v9 }
  0x14   :  { %232 = vmatprep.subr.bf16.mxu0 %v254_v10 }
  0x17   :  { %233 = vmatpush3.bf16.msra.mxu0 %v255_v13 }
  0x18   :  { %234 = vmatprep.subr.bf16.mxu0 %v256_v14 }
  0x1b   :  { %235 = vmatpush3.bf16.msra.mxu0 %v257_v15 }
  0x1c   :  { %236 = vmatprep.subr.bf16.mxu0 %v258_v16 }
  0x1f   :  { %237 = vmatpush3.bf16.msra.mxu0 %v259_v17 }
  0x22   :  { %191 = vmatmul.mubr.bf16.vlgmr.msra.gmra.mrb[0].mxu0 %v204_v18 }
  0xf5   :  { %v238_v19 = vpop.f32.mrb[0].mxu0 }
  0xf6   :  { %v239_v21 = vpop.f32.mrb[1].mxu0 }
  0xf7   :  { %v240_v22 = vadd.f32 %v239_v21, %v238_v19  ;;  %v241_v23 = vpop.f32.mrb[2].mxu0 }
  0xf8   :  { %v242_v24 = vpop.f32.mrb[3].mxu0 }
  0xf9   :  { %v193_v25 = vadd.f32 %v240_v22, %v203_v20 }
  0xfb   :  { %198 = vst [vmem:[%s342_s3] sm:$0xff] %v193_v25 }

// kernel: dino_forward.3
= control target key start
LH: loop header
LB: loop body
LE: loop exit
PB: predicated region body
PF: predicated region fallthrough
CT: control target
= control target key end

     0   :  { %s5445_s0 = inlined_call_operand.vmem [shape: f32[2,16,128], index: 0, kind: input, shape index: {}]   ;;  %s5446_s1 = inlined_call_operand.vmem [shape: f32[2,1,128], index: 1, kind: input, shape index: {}]   ;;  %s5447_s2 = inlined_call_operand.vmem [shape: f32[2,1,128], index: 2, kind: input, shape index: {}]   ;;  %s5448_s3 = inlined_call_operand.hbm [shape: bf16[2,128,384], index: 3, kind: input, shape index: {}]   ;;  %s5449_s4 = inlined_call_operand.vmem [shape: f32[2,1,384], index: 4, kind: input, shape index: {}]   ;;  %s5450_s5 = inlined_call_operand.vmem [shape: bf16[2,128,128], index: 5, kind: input, shape index: {}]   ;;  %s5451_s6 = inlined_call_operand.vmem [shape: f32[2,1,128], index: 6, kind: input, shape index: {}]   ;;  %s5452_s7 = inlined_call_operand.vmem [shape: f32[2,1,128], index: 7, kind: input, shape index: {}]   ;;  %s5453_s8 = inlined_call_operand.vmem [shape: f32[2,1,128], index: 8, kind: input, shape index: {}]   ;;  %s5454_s9 = inlined_call_operand.vmem [shape: bf16[2,128,512], index: 9, kind: input, shape index: {}]   ;;  %s5455_s10 = inlined_call_operand.vmem [shape: f32[2,1,512], index: 10, kind: input, shape index: {}]   ;;  %s5456_s11 = inlined_call_operand.vmem [shape: bf16[2,512,128], index: 11, kind: input, shape index: {}]   ;;  %s5457_s12 = inlined_call_operand.vmem [shape: f32[2,1,128], index: 12, kind: input, shape index: {}]   ;;  %s5458_s13 = inlined_call_operand.hbm [shape: f32[1,128], index: 13, kind: input, shape index: {}]   ;;  %s5459_s14 = inlined_call_operand.hbm [shape: f32[1,128], index: 14, kind: input, shape index: {}]   ;;  %s5460_s15 = inlined_call_operand.hbm [shape: f32[2,1,128], index: 15, kind: output, shape index: {}]  }
   0x1   :  { %5561 = sst [smem:[#allocation147_spill]] %s5445_s0 }
   0x2   :  { %5562 = sst [smem:[#allocation148_spill]] %s5446_s1 }
   0x3   :  { %5563 = sst [smem:[#allocation149_spill]] %s5447_s2 }
   0x4   :  { %5564 = sst [smem:[#allocation150_spill]] %s5448_s3 }
   0x5   :  { %5565 = sst [smem:[#allocation151_spill]] %s5449_s4 }
   0x6   :  { %5566 = sst [smem:[#allocation152_spill]] %s5450_s5 }
   0x7   :  { %5567 = sst [smem:[#allocation153_spill]] %s5452_s7 }
   0x8   :  { %5568 = sst [smem:[#allocation154_spill]] %s5453_s8 }
   0x9   :  { %5569 = sst [smem:[#allocation155_spill]] %s5454_s9 }
   0xa   :  { %5570 = sst [smem:[#allocation156_spill]] %s5455_s10 }
   0xb   :  { %5571 = sst [smem:[#allocation157_spill]] %s5456_s11 }
   0xc   :  { %5572 = sst [smem:[#allocation158_spill]] %s5457_s12 }
   0xd   :  { %5573 = sst [smem:[#allocation159_spill]] %s5458_s13 }
   0xe   :  { %5574 = sst [smem:[#allocation160_spill]] %s5459_s14 }
   0xf   :  { %5575 = sst [smem:[#allocation161_spill]] %s5460_s15 }
  0x10   :  { %20 = vsyncpa [#allocation5], 0 }
  0x11   :  { %22 = vsyncpa [#allocation5 + $0x1], 0 }
  0x12   :  { %23 = vsyncpa [#allocation8], 0 }
  0x13   :  { %24 = vsyncpa [#allocation6], 0  ;;  %s4132_s18 = smov 0   ;;  %s4134_s19 = smov 0  }
  0x14   :  { %s4136_s20 = smov 0   ;;  %s4138_s21 = smov 0  }
  0x15   :  { %s4140_s22 = smov 0   ;;  %s4142_s23 = smov 0  }
  0x16 LB: > { %5576 = sst [smem:[#allocation14_spill]] %s4028_s22  ;;  %s5461_s24 = sadd.s32 4294967295, %s4032_s23   ;;  %s4032_s23 = sphi %s4142_s23, %s30_s23   ;;  %s4028_s22 = sphi %s4140_s22, %s5881_s22   ;;  %s4024_s21 = sphi %s4138_s21, %s5876_s21   ;;  %s4020_s20 = sphi %s4136_s20, %s5880_s20   ;;  %s4016_s19 = sphi %s4134_s19, %s5879_s19   ;;  %s4012_s18 = sphi %s4132_s18, %s5878_s18  }
  0x17   : > { %5577 = sst [smem:[#allocation15_spill]] %s4032_s23  ;;  %p134_p0 = scmp.ne.s32.totalorder %s4020_s20, %s4016_s19 }
  0x18   : > { %p135_p1 = scmp.eq.s32.totalorder %s4032_s23, 0  ;;  %p140_p2 = scmp.ne.s32.totalorder %s4016_s19, %s4012_s18 }
  0x19   : > { %p4168_p3 = scmp.eq.s32.totalorder %s5461_s24, 0  ;;  %p3424_p5 = scmp.ge.s32.totalorder %s4032_s23, 1 }
  0x1a   : > { %p136_p4 = por %p135_p1, %p134_p0  ;;  %p453_p7 = scmp.lt.s32.totalorder %s4032_s23, 3 }
  0x1b   : > { %s5578_s26 = scalar_select %p4168_p3, 1, 0 }
  0x1c   : > { %p4175_p6 = por %p4168_p3, %p140_p2  ;;  %p4180_p8 = pnand %p3424_p5, %p453_p7 }
  0x1d   : > { %s4038_s29 = smov [#allocation7]   ;;  %p3737_p10 = scmp.lt.s32.totalorder %s4032_s23, 2 }
  0x1e   : > { %s5579_s27 = scalar_select %p4175_p6, 1, 0 }
  0x1f   : > { %s5580_s28 = scalar_select %p4180_p8, 1, 0 }
  0x20   : > { %s476_s30 = sshll.u32 %s4038_s29, 4  ;;  %p3724_p9 = pneg %p4180_p8  ;;  %s477_s30 = int_to_ptr.vmem [resolvable:$true] %s476_s30 }
  0x21   : > { %p4193_p12 = pnand %p3737_p10, %p136_p4  ;;  %s4039_s18 = smov [#allocation9]  }
  0x22   : > { %p4189_p11 = pnand %p3724_p9, %p4168_p3  ;;  %s487_s24 = sshll.u32 %s4039_s18, 4  ;;  %s488_s24 = int_to_ptr.vmem [resolvable:$true] %s487_s24 }
  0x23   : > { %s5582_s17 = scalar_select %p4193_p12, 1, 0 }
  0x24   : > { %s5583_s13 = sld [smem:[#allocation159_spill]]  ;;  %p3860_p0 = pneg %p4189_p11 }
  0x2a   : > { %s3858_s29 = scalar_lea.hbm %s5583_s13, 16 }
  0x2b   : > { %p3859_p13 = scmp.ne.s32.totalorder %s5583_s13, %s3858_s29  ;;  %p3865_p4 = scmp.lt.u32.totalorder %s3858_s29, %s5583_s13 }
  0x2d   : > { %p3861_p1 = pnand %p3860_p0, %p3859_p13 }
  0x2f   : > { %p3862_p2 = pneg %p3861_p1 }
  0x31   : > { %p3867_p5 = pnand %p3865_p4, %p3862_p2 }
  0x33   : > { %3870 = shalt.err (!%p3867_p5)
}
  0x34   : > { %s3871_s18 = scalar_lea.vmem %s477_s30, 16  ;;  %s3878_s0 = scalar_lea.vmem %s477_s30, 32 }
  0x35   : > { %p3872_p7 = scmp.ne.s32.totalorder %s477_s30, %s3871_s18  ;;  %p3879_p3 = scmp.lt.s32.totalorder %s477_s30, %s477_s30 }
  0x36   : > { %p3880_p6 = scmp.lt.s32.totalorder %s3878_s0, %s3871_s18 }
  0x37   : > { %p3874_p9 = pnand %p3872_p7, %p3860_p0 }
  0x38   : > { %p3881_p8 = por %p3880_p6, %p3879_p3 }
  0x39   : > { %p3875_p10 = pneg %p3874_p9 }
  0x3b   : > { %p3882_p12 = pnand %p3881_p8, %p3875_p10 }
  0x3d   : > { %3885 = shalt.err (!%p3882_p12)
}
  0x3e   : > { %3727 = dma.hbm_to_vmem [thread:$0]  (!%p4189_p11), %s5583_s13, 16, %s477_s30, [#allocation8]  }
  0x3f   : > { %s39_s15 = sadd.s32 1, %s4028_s22  ;;  %s5584_s14 = sld [smem:[#allocation160_spill]] }
  0x45   : > { %s3886_s29 = scalar_lea.hbm %s5584_s14, 16 }
  0x46   : > { %p3887_p3 = scmp.ne.s32.totalorder %s5584_s14, %s3886_s29  ;;  %p3893_p12 = scmp.lt.u32.totalorder %s3886_s29, %s5584_s14 }
  0x48   : > { %p3889_p6 = pnand %p3887_p3, %p3860_p0 }
  0x4a   : > { %p3890_p8 = pneg %p3889_p6 }
  0x4c   : > { %p3895_p13 = pnand %p3893_p12, %p3890_p8 }
  0x4e   : > { %3898 = shalt.err (!%p3895_p13)
}
  0x4f   : > { %s3899_s30 = scalar_lea.vmem %s488_s24, 16  ;;  %s3906_s12 = scalar_lea.vmem %s488_s24, 32 }
  0x50   : > { %p3900_p1 = scmp.ne.s32.totalorder %s488_s24, %s3899_s30  ;;  %p3907_p5 = scmp.lt.s32.totalorder %s488_s24, %s488_s24 }
  0x51   : > { %p3908_p7 = scmp.lt.s32.totalorder %s3906_s12, %s3899_s30 }
  0x52   : > { %p3902_p2 = pnand %p3900_p1, %p3860_p0 }
  0x53   : > { %p3909_p9 = por %p3908_p7, %p3907_p5 }
  0x54   : > { %p3903_p4 = pneg %p3902_p2 }
  0x56   : > { %p3910_p10 = pnand %p3909_p9, %p3903_p4 }
  0x58   : > { %3913 = shalt.err (!%p3910_p10)
}
  0x59   : > { %3730 = dma.hbm_to_vmem [thread:$0]  (!%p4189_p11), %s5584_s14, 16, %s488_s24, [#allocation8]  }
  0x5a   : > { %p40_p0 = scmp.ge.s32.totalorder %s39_s15, 2  ;;  %s510_s11 = sand.u32 1, %s4020_s20  }
  0x5b   : > { %s3706_s23 = smul.u32 192, %s510_s11  ;;  %s5586_s3 = sld [smem:[#allocation150_spill]] }
  0x5c   : > { %s5883_s15 = smov (%p40_p0, %s39_s15), 0  ;;  %s3707_s25 = smul.u32 3072, %s4028_s22 }
  0x5d   : > { %5585 = sst [smem:[#allocation16_spill]] %s5883_s15  ;;  %s124_s29 = ssub.s32 %s4028_s22, %s5883_s15 }
  0x5e   : > { %s514_s16 = scalar_lea.vmem [#allocation4], %s3706_s23  ;;  %p125_p3 = scmp.eq.s32.totalorder %s124_s29, 0 }
  0x5f   : > { %s521_s18 = sshll.u32 %s514_s16, 4  ;;  %s5587_s24 = sadd.s32 1, %s4020_s20  ;;  %s4251_s18 = int_to_ptr.vmem [resolvable:$true] %s521_s18 }
  0x60   : > { %s4256_s9 = scalar_select %p125_p3, %s4020_s20, %s5587_s24  }
  0x61   : > { %s4249_s12 = scalar_lea.hbm %s5586_s3, %s3707_s25  ;;  %s4258_s10 = scalar_lea.sflag [#allocation5], %s510_s11 }
  0x62   : > { %5588 = sst [smem:[#allocation17_spill]] %s4256_s9  ;;  %s3914_s13 = scalar_lea.hbm %s4249_s12, 3072 }
  0x63   : > { %p3915_p11 = scmp.ne.s32.totalorder %s4249_s12, %s3914_s13  ;;  %p5589_p6 = scmp.ne.s32.totalorder %s5582_s17, 0 }
  0x64   : > { %s3919_s29 = scalar_lea.hbm %s5586_s3, 6144  ;;  %p3920_p1 = scmp.lt.u32.totalorder %s4249_s12, %s5586_s3 }
  0x65   : > { %p3916_p8 = pneg %p5589_p6  ;;  %p3921_p2 = scmp.lt.u32.totalorder %s3919_s29, %s3914_s13 }
  0x66   : > { %p3923_p5 = scmp.lt.u32.totalorder %s3914_s13, %s4249_s12 }
  0x67   : > { %p3917_p12 = pnand %p3916_p8, %p3915_p11  ;;  %p3922_p4 = por %p3921_p2, %p3920_p1 }
  0x69   : > { %p3918_p13 = pneg %p3917_p12  ;;  %p3924_p7 = por %p3923_p5, %p3922_p4 }
  0x6b   : > { %p3925_p9 = pnand %p3924_p7, %p3918_p13 }
  0x6d   : > { %3928 = shalt.err (!%p3925_p9)
}
  0x6e   : > { %s3929_s11 = scalar_lea.vmem %s4251_s18, 3072  ;;  %s4040_s30 = smov [#allocation4]  }
  0x6f   : > { %p3930_p10 = scmp.ne.s32.totalorder %s4251_s18, %s3929_s11  ;;  %s3934_s24 = sshll.u32 %s4040_s30, 4  ;;  %s3935_s24 = int_to_ptr.vmem [resolvable:$false] %s3934_s24 }
  0x70   : > { %s3936_s23 = scalar_lea.vmem %s3935_s24, 6144  ;;  %p3937_p11 = scmp.lt.s32.totalorder %s4251_s18, %s3935_s24 }
  0x71   : > { %p3932_p0 = pnand %p3930_p10, %p3916_p8  ;;  %p3938_p12 = scmp.lt.s32.totalorder %s3936_s23, %s3929_s11 }
  0x73   : > { %p3933_p3 = pneg %p3932_p0  ;;  %p3939_p1 = por %p3938_p12, %p3937_p11 }
  0x75   : > { %p3940_p2 = pnand %p3939_p1, %p3933_p3 }
  0x77   : > { %3943 = shalt.err (!%p3940_p2)
}
  0x78   : > { %s4041_s13 = smov 192   ;;  %s4042_s25 = smov 12  }
  0x79   : > { %3734 = dma.hbm_to_vmem [thread:$0]  (!%p5589_p6), %s4249_s12, 3072, %s4251_s18, %s4258_s10, %s4041_s13, %s4041_s13, %s4042_s25  }
  0x7a   : > { %p5590_p8 = scmp.ne.s32.totalorder %s5580_s28, 0 }
  0x7c   : > { %595 = sbr.rel (%p5590_p8) target bundleno = 3229 (0xc9d), region = 80 }
  0x83   : > { %s597_s29 = sand.u32 1, %s4016_s19   ;;  %p5591_p13 = scmp.ne.s32.totalorder %s5579_s27, 0 }
  0x84   : > { %s3708_s16 = smul.u32 192, %s597_s29  ;;  %s598_s0 = scalar_lea.sflag [#allocation5], %s597_s29 }
  0x86   : > { %s4289_s11 = scalar_lea.vmem [#allocation4], %s3708_s16 }
  0x87   : > { %3999 = dma.done.wait (%p5591_p13), %s598_s0, 3072  }
  0x88   : > { %4001 = vsyncadd (%p5591_p13), %s598_s0, 4294964224  ;;  %p5592_p4 = scmp.ne.s32.totalorder %s5578_s26, 0 }
  0x8a   : > { %4003 = dma.done.wait (%p5592_p4), [#allocation8], 32  }
  0x8b   : > { %4005 = vsyncadd (%p5592_p4), [#allocation8], 4294967264  ;;  %p705_p6 = scmp.lt.s32.totalorder %s4024_s21, 1  ;;  %s5593_s1 = sld [smem:[#allocation148_spill]] }
  0x8c   : > { %s5594_s2 = sld [smem:[#allocation149_spill]]  ;;  %s5595_s5 = sld [smem:[#allocation152_spill]] }
  0x8d   : > { %s4301_s28 = scalar_select %p705_p6, %s4024_s21, 1 }
  0x8e   : > { %s5596_s4 = sld [smem:[#allocation151_spill]]  ;;  %s5597_s7 = sld [smem:[#allocation153_spill]] }
  0x8f   : > { %s3709_s30 = smul.u32 3, %s4301_s28  ;;  %s3569_s24 = sshll.u32 %s4301_s28, 6 }
  0x90   : > { %s5598_s8 = sld [smem:[#allocation154_spill]]  ;;  %s3570_s23 = sshll.u32 %s4301_s28, 8 }
  0x91   : > { %s707_s26 = scalar_lea.vmem %s5593_s1, %s4301_s28  ;;  %s3437_s29 = sshll.u32 %s4301_s28, 2 }
  0x92   : > { %s710_s10 = scalar_lea.vmem %s5594_s2, %s4301_s28  ;;  %s4316_s25 = scalar_lea.vmem %s5595_s5, %s3569_s24 }
  0x93   : > { %s5599_s5 = sld [smem:[#allocation155_spill]]  ;;  %s5600_s17 = sld [smem:[#allocation156_spill]] }
  0x94   : > { %s4325_s3 = scalar_lea.vmem %s5596_s4, %s3709_s30  ;;  %s725_s27 = scalar_lea.vmem %s5597_s7, %s4301_s28 }
  0x95   : > { %s5601_s1 = sld [smem:[#allocation157_spill]]  ;;  %s5602_s12 = sld [smem:[#allocation158_spill]] }
  0x96   : > { %s728_s15 = scalar_lea.vmem %s5598_s8, %s4301_s28  ;;  %p3440_p5 = scmp.ne.s32.totalorder %s4024_s21, 0 }
  0x97   : > { %s5603_s13 = sld [smem:[#allocation147_spill]] (!%p3440_p5) }
  0x98   : > { %751 = sbr.rel (%p3440_p5) target bundleno = 160 (0xa0), region = 96 }
  0x99   : > { %s4339_s22 = scalar_lea.vmem %s5599_s5, %s3570_s23  ;;  %s4345_s30 = scalar_lea.vmem %s5600_s17, %s3437_s29 }
  0x9b   : > { %s4350_s14 = scalar_lea.vmem %s5601_s1, %s3570_s23  ;;  %s745_s8 = scalar_lea.vmem %s5602_s12, %s4301_s28 }
  0x9d   : > { %v752_v0 = vld [vmem:[%s5603_s13] sm:$0xff] (!%p3440_p5)  ;;  %v753_v1 = vld [vmem:[%s5603_s13 + $0x8] sm:$0xff] (!%p3440_p5)  ;;  %v754_v2 = vld [vmem:[%s5603_s13 + $0x10] sm:$0xff] (!%p3440_p5) }
  0x9e   : > { %756 = vst [vmem:[#allocation2] sm:$0xff] (!%p3440_p5), %v752_v0  ;;  %757 = vst [vmem:[#allocation2 + $0x8] sm:$0xff] (!%p3440_p5), %v753_v1  ;;  %v755_v3 = vld [vmem:[%s5603_s13 + $0x18] sm:$0xff] (!%p3440_p5) }
  0x9f   : > { %758 = vst [vmem:[#allocation2 + $0x10] sm:$0xff] %v754_v2  ;;  %759 = vst [vmem:[#allocation2 + $0x18] sm:$0xff] %v755_v3 }
  0xa0 PF: > { %v4369_v4 = vld [vmem:[%s707_s26] ss:$0 sm:$0xff]  ;;  %v5472_v7 = vlaneseq  ;;  %v4381_v10 = vld [vmem:[%s4289_s11 + $0x8] sm:$0xf]  ;;  %v4384_v11 = vld [vmem:[%s4289_s11 + $0xc] sm:$0xff]  ;;  %s5636_s9 = scalar_lea.vmem %s5451_s6, %s4301_s28 }
  0xa1   : > { %5604 = vst [vmem:[#allocation18_spill] sm:$0xff] %v4369_v4  ;;  %v4371_v5 = vld [vmem:[%s710_s10] ss:$0 sm:$0xff]  ;;  %5609 = vst [vmem:[#allocation23_spill] sm:$0xff] %v4381_v10  ;;  %v4387_v12 = vld [vmem:[%s4289_s11 + $0x14] sm:$0xf] }
  0xa2   : > { %5605 = vst [vmem:[#allocation19_spill] sm:$0xff] %v4371_v5  ;;  %v4373_v6 = vld [vmem:[%s725_s27] ss:$0 sm:$0xff]  ;;  %5610 = vst [vmem:[#allocation24_spill] sm:$0xff] %v4384_v11  ;;  %v4390_v13 = vld [vmem:[%s4289_s11 + $0x18] sm:$0xff]  ;;  %v4393_v14 = vand.u32 127, %v5472_v7 }
  0xa3   : > { %5606 = vst [vmem:[#allocation20_spill] sm:$0xff] %v4373_v6  ;;  %v4375_v8 = vld [vmem:[%s728_s15] ss:$0 sm:$0xff]  ;;  %5611 = vst [vmem:[#allocation25_spill] sm:$0xff] %v4387_v12  ;;  %v4399_v16 = vld [vmem:[%s4289_s11 + $0x24] sm:$0xff]  ;;  %s4833_s10 = smov 0  }
  0xa4   : > { %5607 = vst [vmem:[#allocation21_spill] sm:$0xff] %v4375_v8  ;;  %v4378_v9 = vld [vmem:[%s4289_s11] sm:$0xff]  ;;  %5612 = vst [vmem:[#allocation26_spill] sm:$0xff] %v4390_v13  ;;  %v4402_v17 = vld [vmem:[%s4289_s11 + $0x2c] sm:$0xf]  ;;  %vm914_vm0 = vcmp.lt.s32.totalorder %v4393_v14, 5 }
  0xa5   : > { %5608 = vst [vmem:[#allocation22_spill] sm:$0xff] %v4378_v9  ;;  %5613 = vst [vmem:[#allocation27_spill] sm:$0xff] %v4393_v14  ;;  %v4396_v15 = vld [vmem:[%s4289_s11 + $0x20] sm:$0xf]  ;;  %v4405_v18 = vld [vmem:[%s4289_s11 + $0x30] sm:$0xff] }
  0xa6   : > { %5614 = vst [vmem:[#allocation28_spill] sm:$0xff] %v4396_v15  ;;  %5615 = vst [vmem:[#allocation29_spill] sm:$0xff] %v4399_v16  ;;  %v4408_v19 = vld [vmem:[%s4289_s11 + $0x38] sm:$0xf]  ;;  %v4411_v20 = vld [vmem:[%s4289_s11 + $0x3c] sm:$0xff] }
  0xa7   : > { %5616 = vst [vmem:[#allocation30_spill] sm:$0xff] %v4402_v17  ;;  %5617 = vst [vmem:[#allocation31_spill] sm:$0xff] %v4405_v18  ;;  %v4415_v21 = vld [vmem:[%s4289_s11 + $0x44] sm:$0xf]  ;;  %v4418_v22 = vld [vmem:[%s4289_s11 + $0x48] sm:$0xff] }
  0xa8   : > { %5618 = vst [vmem:[#allocation32_spill] sm:$0xff] %v4408_v19  ;;  %5619 = vst [vmem:[#allocation33_spill] sm:$0xff] %v4411_v20  ;;  %v4421_v23 = vld [vmem:[%s4289_s11 + $0x50] sm:$0xf]  ;;  %v4424_v24 = vld [vmem:[%s4289_s11 + $0x54] sm:$0xff] }
  0xa9   : > { %5620 = vst [vmem:[#allocation34_spill] sm:$0xff] %v4415_v21  ;;  %5621 = vst [vmem:[#allocation35_spill] sm:$0xff] %v4418_v22  ;;  %v4427_v25 = vld [vmem:[%s4289_s11 + $0x5c] sm:$0xf]  ;;  %v4430_v26 = vld [vmem:[%s4289_s11 + $0x60] sm:$0xff] }
  0xaa   : > { %5622 = vst [vmem:[#allocation36_spill] sm:$0xff] %v4421_v23  ;;  %5623 = vst [vmem:[#allocation37_spill] sm:$0xff] %v4424_v24  ;;  %v4433_v27 = vld [vmem:[%s4289_s11 + $0x68] sm:$0xf]  ;;  %v4436_v28 = vld [vmem:[%s4289_s11 + $0x6c] sm:$0xff] }
  0xab   : > { %5624 = vst [vmem:[#allocation38_spill] sm:$0xff] %v4427_v25  ;;  %5625 = vst [vmem:[#allocation39_spill] sm:$0xff] %v4430_v26  ;;  %v4439_v29 = vld [vmem:[%s4289_s11 + $0x74] sm:$0xf]  ;;  %v4442_v30 = vld [vmem:[%s4289_s11 + $0x78] sm:$0xff] }
  0xac   : > { %5626 = vst [vmem:[#allocation40_spill] sm:$0xff] %v4433_v27  ;;  %5627 = vst [vmem:[#allocation41_spill] sm:$0xff] %v4436_v28  ;;  %v4445_v31 = vld [vmem:[%s4289_s11 + $0x80] sm:$0xf]  ;;  %v4448_v32 = vld [vmem:[%s4289_s11 + $0x84] sm:$0xff] }
  0xad   : > { %5628 = vst [vmem:[#allocation42_spill] sm:$0xff] %v4439_v29  ;;  %5629 = vst [vmem:[#allocation43_spill] sm:$0xff] %v4442_v30  ;;  %v4451_v33 = vld [vmem:[%s4289_s11 + $0x8c] sm:$0xf]  ;;  %v4454_v34 = vld [vmem:[%s4289_s11 + $0x90] sm:$0xff] }
  0xae   : > { %5630 = vst [vmem:[#allocation44_spill] sm:$0xff] %v4445_v31  ;;  %5631 = vst [vmem:[#allocation45_spill] sm:$0xff] %v4448_v32  ;;  %v4457_v35 = vld [vmem:[%s4289_s11 + $0x98] sm:$0xf]  ;;  %v4460_v36 = vld [vmem:[%s4289_s11 + $0x9c] sm:$0xff] }
  0xaf   : > { %5632 = vst [vmem:[#allocation46_spill] sm:$0xff] %v4451_v33  ;;  %5633 = vst [vmem:[#allocation47_spill] sm:$0xff] %v4454_v34  ;;  %v4463_v37 = vld [vmem:[%s4289_s11 + $0xa4] sm:$0xf]  ;;  %v4466_v38 = vld [vmem:[%s4289_s11 + $0xa8] sm:$0xff] }
  0xb0   : > { %5634 = vst [vmem:[#allocation48_spill] sm:$0xff] %v4457_v35  ;;  %5635 = vst [vmem:[#allocation49_spill] sm:$0xff] %v4460_v36  ;;  %v4469_v39 = vld [vmem:[%s4289_s11 + $0xb0] sm:$0xf]  ;;  %v4472_v40 = vld [vmem:[%s4289_s11 + $0xb4] sm:$0xff] }
  0xb1   : > { %v4475_v41 = vld [vmem:[%s4289_s11 + $0xbc] sm:$0xf]  ;;  %v4478_v42 = vld [vmem:[%s4325_s3] sm:$0x7]  ;;  %v4484_v44 = vld [vmem:[%s4316_s25 + $0x4] sm:$0xf] }
  0xb2   : > { %v4481_v43 = vld [vmem:[%s4316_s25] sm:$0xf]  ;;  %v4487_v45 = vld [vmem:[%s4316_s25 + $0x8] sm:$0xf]  ;;  %v4490_v46 = vld [vmem:[%s4316_s25 + $0xc] sm:$0xf] }
  0xb3   : > { %v4493_v47 = vld [vmem:[%s4316_s25 + $0x10] sm:$0xf]  ;;  %v4496_v48 = vld [vmem:[%s4316_s25 + $0x14] sm:$0xf]  ;;  %v4499_v49 = vld [vmem:[%s4316_s25 + $0x18] sm:$0xf] }
  0xb4   : > { %v4502_v50 = vld [vmem:[%s4316_s25 + $0x1c] sm:$0xf]  ;;  %v4505_v51 = vld [vmem:[%s4316_s25 + $0x20] sm:$0xf]  ;;  %v4508_v52 = vld [vmem:[%s4316_s25 + $0x24] sm:$0xf] }
  0xb5   : > { %v4511_v53 = vld [vmem:[%s4316_s25 + $0x28] sm:$0xf]  ;;  %v4514_v54 = vld [vmem:[%s4316_s25 + $0x2c] sm:$0xf]  ;;  %v4517_v55 = vld [vmem:[%s4316_s25 + $0x30] sm:$0xf] }
  0xb6   : > { %v4520_v56 = vld [vmem:[%s4316_s25 + $0x34] sm:$0xf]  ;;  %v4523_v57 = vld [vmem:[%s4316_s25 + $0x38] sm:$0xf]  ;;  %v4526_v58 = vld [vmem:[%s4316_s25 + $0x3c] sm:$0xf] }
  0xb7   : > { %v4533_v59 = vld [vmem:[%s5636_s9] ss:$0 sm:$0xff]  ;;  %v4539_v61 = vld [vmem:[%s4339_s22 + $0x8] sm:$0xff]  ;;  %v4542_v62 = vld [vmem:[%s4339_s22 + $0x10] sm:$0xff] }
  0xb8   : > { %v4536_v60 = vld [vmem:[%s4339_s22] sm:$0xff]  ;;  %5638 = vst [vmem:[#allocation51_spill] sm:$0xff] %v4539_v61  ;;  %5639 = vst [vmem:[#allocation52_spill] sm:$0xff] %v4542_v62  ;;  %v4545_v63 = vld [vmem:[%s4339_s22 + $0x18] sm:$0xff] }
  0xb9   : > { %5637 = vst [vmem:[#allocation50_spill] sm:$0xff] %v4536_v60  ;;  %5640 = vst [vmem:[#allocation53_spill] sm:$0xff] %v4545_v63  ;;  %v4548_v0 = vld [vmem:[%s4339_s22 + $0x20] sm:$0xff]  ;;  %v4551_v1 = vld [vmem:[%s4339_s22 + $0x28] sm:$0xff] }
  0xba   : > { %5641 = vst [vmem:[#allocation54_spill] sm:$0xff] %v4548_v0  ;;  %5642 = vst [vmem:[#allocation55_spill] sm:$0xff] %v4551_v1  ;;  %v4554_v2 = vld [vmem:[%s4339_s22 + $0x30] sm:$0xff]  ;;  %v4557_v3 = vld [vmem:[%s4339_s22 + $0x38] sm:$0xff] }
  0xbb   : > { %5643 = vst [vmem:[#allocation56_spill] sm:$0xff] %v4554_v2  ;;  %5644 = vst [vmem:[#allocation57_spill] sm:$0xff] %v4557_v3  ;;  %v4560_v7 = vld [vmem:[%s4339_s22 + $0x40] sm:$0xff]  ;;  %v4563_v8 = vld [vmem:[%s4339_s22 + $0x48] sm:$0xff] }
  0xbc   : > { %5645 = vst [vmem:[#allocation58_spill] sm:$0xff] %v4560_v7  ;;  %5646 = vst [vmem:[#allocation59_spill] sm:$0xff] %v4563_v8  ;;  %v4566_v6 = vld [vmem:[%s4339_s22 + $0x50] sm:$0xff]  ;;  %v4569_v0 = vld [vmem:[%s4339_s22 + $0x58] sm:$0xff] }
  0xbd   : > { %5647 = vst [vmem:[#allocation60_spill] sm:$0xff] %v4566_v6  ;;  %5648 = vst [vmem:[#allocation61_spill] sm:$0xff] %v4569_v0  ;;  %v4572_v1 = vld [vmem:[%s4339_s22 + $0x60] sm:$0xff]  ;;  %v4575_v2 = vld [vmem:[%s4339_s22 + $0x68] sm:$0xff] }
  0xbe   : > { %5649 = vst [vmem:[#allocation62_spill] sm:$0xff] %v4572_v1  ;;  %5650 = vst [vmem:[#allocation63_spill] sm:$0xff] %v4575_v2  ;;  %v4578_v3 = vld [vmem:[%s4339_s22 + $0x70] sm:$0xff]  ;;  %v4581_v7 = vld [vmem:[%s4339_s22 + $0x78] sm:$0xff] }
  0xbf   : > { %5651 = vst [vmem:[#allocation64_spill] sm:$0xff] %v4578_v3  ;;  %5652 = vst [vmem:[#allocation65_spill] sm:$0xff] %v4581_v7  ;;  %v4584_v8 = vld [vmem:[%s4339_s22 + $0x80] sm:$0xff]  ;;  %v4587_v6 = vld [vmem:[%s4339_s22 + $0x88] sm:$0xff] }
  0xc0   : > { %5653 = vst [vmem:[#allocation66_spill] sm:$0xff] %v4584_v8  ;;  %5654 = vst [vmem:[#allocation67_spill] sm:$0xff] %v4587_v6  ;;  %v4590_v0 = vld [vmem:[%s4339_s22 + $0x90] sm:$0xff]  ;;  %v4593_v1 = vld [vmem:[%s4339_s22 + $0x98] sm:$0xff] }
  0xc1   : > { %5655 = vst [vmem:[#allocation68_spill] sm:$0xff] %v4590_v0  ;;  %5656 = vst [vmem:[#allocation69_spill] sm:$0xff] %v4593_v1  ;;  %v4596_v2 = vld [vmem:[%s4339_s22 + $0xa0] sm:$0xff]  ;;  %v4599_v3 = vld [vmem:[%s4339_s22 + $0xa8] sm:$0xff] }
  0xc2   : > { %5657 = vst [vmem:[#allocation70_spill] sm:$0xff] %v4596_v2  ;;  %5658 = vst [vmem:[#allocation71_spill] sm:$0xff] %v4599_v3  ;;  %v4602_v7 = vld [vmem:[%s4339_s22 + $0xb0] sm:$0xff]  ;;  %v4605_v8 = vld [vmem:[%s4339_s22 + $0xb8] sm:$0xff] }
  0xc3   : > { %5659 = vst [vmem:[#allocation72_spill] sm:$0xff] %v4602_v7  ;;  %5660 = vst [vmem:[#allocation73_spill] sm:$0xff] %v4605_v8  ;;  %v4608_v6 = vld [vmem:[%s4339_s22 + $0xc0] sm:$0xff]  ;;  %v4611_v0 = vld [vmem:[%s4339_s22 + $0xc8] sm:$0xff] }
  0xc4   : > { %5661 = vst [vmem:[#allocation74_spill] sm:$0xff] %v4608_v6  ;;  %5662 = vst [vmem:[#allocation75_spill] sm:$0xff] %v4611_v0  ;;  %v4614_v1 = vld [vmem:[%s4339_s22 + $0xd0] sm:$0xff]  ;;  %v4617_v2 = vld [vmem:[%s4339_s22 + $0xd8] sm:$0xff] }
  0xc5   : > { %5663 = vst [vmem:[#allocation76_spill] sm:$0xff] %v4614_v1  ;;  %5664 = vst [vmem:[#allocation77_spill] sm:$0xff] %v4617_v2  ;;  %v4620_v3 = vld [vmem:[%s4339_s22 + $0xe0] sm:$0xff]  ;;  %v4623_v7 = vld [vmem:[%s4339_s22 + $0xe8] sm:$0xff] }
  0xc6   : > { %5665 = vst [vmem:[#allocation78_spill] sm:$0xff] %v4620_v3  ;;  %5666 = vst [vmem:[#allocation79_spill] sm:$0xff] %v4623_v7  ;;  %v4626_v8 = vld [vmem:[%s4339_s22 + $0xf0] sm:$0xff]  ;;  %v4629_v6 = vld [vmem:[%s4339_s22 + $0xf8] sm:$0xff] }
  0xc7   : > { %5667 = vst [vmem:[#allocation80_spill] sm:$0xff] %v4626_v8  ;;  %5668 = vst [vmem:[#allocation81_spill] sm:$0xff] %v4629_v6  ;;  %v4632_v0 = vld [vmem:[%s4345_s30] sm:$0xf]  ;;  %v4638_v2 = vld [vmem:[%s4350_s14 + $0x4] sm:$0xf] }
  0xc8   : > { %5669 = vst [vmem:[#allocation82_spill] sm:$0xff] %v4632_v0  ;;  %v4635_v1 = vld [vmem:[%s4350_s14] sm:$0xf]  ;;  %5671 = vst [vmem:[#allocation84_spill] sm:$0xff] %v4638_v2  ;;  %v4641_v3 = vld [vmem:[%s4350_s14 + $0x8] sm:$0xf] }
  0xc9   : > { %5670 = vst [vmem:[#allocation83_spill] sm:$0xff] %v4635_v1  ;;  %5672 = vst [vmem:[#allocation85_spill] sm:$0xff] %v4641_v3  ;;  %v4644_v7 = vld [vmem:[%s4350_s14 + $0xc] sm:$0xf]  ;;  %v4647_v8 = vld [vmem:[%s4350_s14 + $0x10] sm:$0xf] }
  0xca   : > { %5673 = vst [vmem:[#allocation86_spill] sm:$0xff] %v4644_v7  ;;  %5674 = vst [vmem:[#allocation87_spill] sm:$0xff] %v4647_v8  ;;  %v4650_v6 = vld [vmem:[%s4350_s14 + $0x14] sm:$0xf]  ;;  %v4653_v0 = vld [vmem:[%s4350_s14 + $0x18] sm:$0xf] }
  0xcb   : > { %5675 = vst [vmem:[#allocation88_spill] sm:$0xff] %v4650_v6  ;;  %5676 = vst [vmem:[#allocation89_spill] sm:$0xff] %v4653_v0  ;;  %v4656_v1 = vld [vmem:[%s4350_s14 + $0x1c] sm:$0xf]  ;;  %v4659_v2 = vld [vmem:[%s4350_s14 + $0x20] sm:$0xf] }
  0xcc   : > { %5677 = vst [vmem:[#allocation90_spill] sm:$0xff] %v4656_v1  ;;  %5678 = vst [vmem:[#allocation91_spill] sm:$0xff] %v4659_v2  ;;  %v4662_v3 = vld [vmem:[%s4350_s14 + $0x24] sm:$0xf]  ;;  %v4665_v7 = vld [vmem:[%s4350_s14 + $0x28] sm:$0xf] }
  0xcd   : > { %5679 = vst [vmem:[#allocation92_spill] sm:$0xff] %v4662_v3  ;;  %5680 = vst [vmem:[#allocation93_spill] sm:$0xff] %v4665_v7  ;;  %v4668_v8 = vld [vmem:[%s4350_s14 + $0x2c] sm:$0xf]  ;;  %v4671_v6 = vld [vmem:[%s4350_s14 + $0x30] sm:$0xf] }
  0xce   : > { %5681 = vst [vmem:[#allocation94_spill] sm:$0xff] %v4668_v8  ;;  %5682 = vst [vmem:[#allocation95_spill] sm:$0xff] %v4671_v6  ;;  %v4674_v0 = vld [vmem:[%s4350_s14 + $0x34] sm:$0xf]  ;;  %v4677_v1 = vld [vmem:[%s4350_s14 + $0x38] sm:$0xf] }
  0xcf   : > { %5683 = vst [vmem:[#allocation96_spill] sm:$0xff] %v4674_v0  ;;  %5684 = vst [vmem:[#allocation97_spill] sm:$0xff] %v4677_v1  ;;  %v4680_v2 = vld [vmem:[%s4350_s14 + $0x3c] sm:$0xf]  ;;  %v4683_v3 = vld [vmem:[%s4350_s14 + $0x40] sm:$0xf] }
  0xd0   : > { %5685 = vst [vmem:[#allocation98_spill] sm:$0xff] %v4680_v2  ;;  %5686 = vst [vmem:[#allocation99_spill] sm:$0xff] %v4683_v3  ;;  %v4686_v7 = vld [vmem:[%s4350_s14 + $0x44] sm:$0xf]  ;;  %v4689_v8 = vld [vmem:[%s4350_s14 + $0x48] sm:$0xf] }
  0xd1   : > { %5687 = vst [vmem:[#allocation100_spill] sm:$0xff] %v4686_v7  ;;  %5688 = vst [vmem:[#allocation101_spill] sm:$0xff] %v4689_v8  ;;  %v4692_v6 = vld [vmem:[%s4350_s14 + $0x4c] sm:$0xf]  ;;  %v4695_v0 = vld [vmem:[%s4350_s14 + $0x50] sm:$0xf] }
  0xd2   : > { %5689 = vst [vmem:[#allocation102_spill] sm:$0xff] %v4692_v6  ;;  %5690 = vst [vmem:[#allocation103_spill] sm:$0xff] %v4695_v0  ;;  %v4698_v1 = vld [vmem:[%s4350_s14 + $0x54] sm:$0xf]  ;;  %v4701_v2 = vld [vmem:[%s4350_s14 + $0x58] sm:$0xf] }
  0xd3   : > { %5691 = vst [vmem:[#allocation104_spill] sm:$0xff] %v4698_v1  ;;  %5692 = vst [vmem:[#allocation105_spill] sm:$0xff] %v4701_v2  ;;  %v4704_v3 = vld [vmem:[%s4350_s14 + $0x5c] sm:$0xf]  ;;  %v4707_v7 = vld [vmem:[%s4350_s14 + $0x60] sm:$0xf] }
  0xd4   : > { %5693 = vst [vmem:[#allocation106_spill] sm:$0xff] %v4704_v3  ;;  %5694 = vst [vmem:[#allocation107_spill] sm:$0xff] %v4707_v7  ;;  %v4710_v8 = vld [vmem:[%s4350_s14 + $0x64] sm:$0xf]  ;;  %v4713_v6 = vld [vmem:[%s4350_s14 + $0x68] sm:$0xf] }
  0xd5   : > { %5695 = vst [vmem:[#allocation108_spill] sm:$0xff] %v4710_v8  ;;  %5696 = vst [vmem:[#allocation109_spill] sm:$0xff] %v4713_v6  ;;  %v4716_v0 = vld [vmem:[%s4350_s14 + $0x6c] sm:$0xf]  ;;  %v4719_v1 = vld [vmem:[%s4350_s14 + $0x70] sm:$0xf] }
  0xd6   : > { %5697 = vst [vmem:[#allocation110_spill] sm:$0xff] %v4716_v0  ;;  %5698 = vst [vmem:[#allocation111_spill] sm:$0xff] %v4719_v1  ;;  %v4722_v2 = vld [vmem:[%s4350_s14 + $0x74] sm:$0xf]  ;;  %v4725_v3 = vld [vmem:[%s4350_s14 + $0x78] sm:$0xf] }
  0xd7   : > { %5699 = vst [vmem:[#allocation112_spill] sm:$0xff] %v4722_v2  ;;  %5700 = vst [vmem:[#allocation113_spill] sm:$0xff] %v4725_v3  ;;  %v4728_v7 = vld [vmem:[%s4350_s14 + $0x7c] sm:$0xf]  ;;  %v4731_v8 = vld [vmem:[%s4350_s14 + $0x80] sm:$0xf] }
  0xd8   : > { %5701 = vst [vmem:[#allocation114_spill] sm:$0xff] %v4728_v7  ;;  %5702 = vst [vmem:[#allocation115_spill] sm:$0xff] %v4731_v8  ;;  %v4734_v6 = vld [vmem:[%s4350_s14 + $0x84] sm:$0xf]  ;;  %v4737_v0 = vld [vmem:[%s4350_s14 + $0x88] sm:$0xf] }
  0xd9   : > { %5703 = vst [vmem:[#allocation116_spill] sm:$0xff] %v4734_v6  ;;  %5704 = vst [vmem:[#allocation117_spill] sm:$0xff] %v4737_v0  ;;  %v4740_v1 = vld [vmem:[%s4350_s14 + $0x8c] sm:$0xf]  ;;  %v4743_v2 = vld [vmem:[%s4350_s14 + $0x90] sm:$0xf] }
  0xda   : > { %5705 = vst [vmem:[#allocation118_spill] sm:$0xff] %v4740_v1  ;;  %5706 = vst [vmem:[#allocation119_spill] sm:$0xff] %v4743_v2  ;;  %v4746_v3 = vld [vmem:[%s4350_s14 + $0x94] sm:$0xf]  ;;  %v4749_v7 = vld [vmem:[%s4350_s14 + $0x98] sm:$0xf] }
  0xdb   : > { %5707 = vst [vmem:[#allocation120_spill] sm:$0xff] %v4746_v3  ;;  %5708 = vst [vmem:[#allocation121_spill] sm:$0xff] %v4749_v7  ;;  %v4752_v8 = vld [vmem:[%s4350_s14 + $0x9c] sm:$0xf]  ;;  %v4755_v6 = vld [vmem:[%s4350_s14 + $0xa0] sm:$0xf] }
  0xdc   : > { %5709 = vst [vmem:[#allocation122_spill] sm:$0xff] %v4752_v8  ;;  %5710 = vst [vmem:[#allocation123_spill] sm:$0xff] %v4755_v6  ;;  %v4758_v0 = vld [vmem:[%s4350_s14 + $0xa4] sm:$0xf]  ;;  %v4761_v1 = vld [vmem:[%s4350_s14 + $0xa8] sm:$0xf] }
  0xdd   : > { %5711 = vst [vmem:[#allocation124_spill] sm:$0xff] %v4758_v0  ;;  %5712 = vst [vmem:[#allocation125_spill] sm:$0xff] %v4761_v1  ;;  %v4764_v2 = vld [vmem:[%s4350_s14 + $0xac] sm:$0xf]  ;;  %v4767_v3 = vld [vmem:[%s4350_s14 + $0xb0] sm:$0xf] }
  0xde   : > { %5713 = vst [vmem:[#allocation126_spill] sm:$0xff] %v4764_v2  ;;  %5714 = vst [vmem:[#allocation127_spill] sm:$0xff] %v4767_v3  ;;  %v4770_v7 = vld [vmem:[%s4350_s14 + $0xb4] sm:$0xf]  ;;  %v4773_v8 = vld [vmem:[%s4350_s14 + $0xb8] sm:$0xf] }
  0xdf   : > { %5715 = vst [vmem:[#allocation128_spill] sm:$0xff] %v4770_v7  ;;  %5716 = vst [vmem:[#allocation129_spill] sm:$0xff] %v4773_v8  ;;  %v4776_v6 = vld [vmem:[%s4350_s14 + $0xbc] sm:$0xf]  ;;  %v4779_v0 = vld [vmem:[%s4350_s14 + $0xc0] sm:$0xf] }
  0xe0   : > { %5717 = vst [vmem:[#allocation130_spill] sm:$0xff] %v4776_v6  ;;  %5718 = vst [vmem:[#allocation131_spill] sm:$0xff] %v4779_v0  ;;  %v4782_v1 = vld [vmem:[%s4350_s14 + $0xc4] sm:$0xf]  ;;  %v4785_v61 = vld [vmem:[%s4350_s14 + $0xc8] sm:$0xf] }
  0xe1   : > { %5719 = vst [vmem:[#allocation132_spill] sm:$0xff] %v4782_v1  ;;  %5720 = vst [vmem:[#allocation133_spill] sm:$0xff] %v4785_v61  ;;  %v4788_v2 = vld [vmem:[%s4350_s14 + $0xcc] sm:$0xf]  ;;  %v4791_v3 = vld [vmem:[%s4350_s14 + $0xd0] sm:$0xf] }
  0xe2   : > { %5721 = vst [vmem:[#allocation134_spill] sm:$0xff] %v4788_v2  ;;  %5722 = vst [vmem:[#allocation135_spill] sm:$0xff] %v4791_v3  ;;  %v4794_v63 = vld [vmem:[%s4350_s14 + $0xd4] sm:$0xf]  ;;  %v4797_v7 = vld [vmem:[%s4350_s14 + $0xd8] sm:$0xf] }
  0xe3   : > { %5723 = vst [vmem:[#allocation136_spill] sm:$0xff] %v4797_v7  ;;  %v4800_v8 = vld [vmem:[%s4350_s14 + $0xdc] sm:$0xf]  ;;  %v4803_v60 = vld [vmem:[%s4350_s14 + $0xe0] sm:$0xf] }
  0xe4   : > { %5724 = vst [vmem:[#allocation137_spill] sm:$0xff] %v4800_v8  ;;  %5725 = vst [vmem:[#allocation138_spill] sm:$0xff] %v4803_v60  ;;  %v4806_v6 = vld [vmem:[%s4350_s14 + $0xe4] sm:$0xf]  ;;  %v4809_v0 = vld [vmem:[%s4350_s14 + $0xe8] sm:$0xf] }
  0xe5   : > { %5726 = vst [vmem:[#allocation139_spill] sm:$0xff] %v4806_v6  ;;  %5727 = vst [vmem:[#allocation140_spill] sm:$0xff] %v4809_v0  ;;  %v4812_v62 = vld [vmem:[%s4350_s14 + $0xec] sm:$0xf]  ;;  %v4815_v1 = vld [vmem:[%s4350_s14 + $0xf0] sm:$0xf] }
  0xe6   : > { %5728 = vst [vmem:[#allocation141_spill] sm:$0xff] %v4812_v62  ;;  %5729 = vst [vmem:[#allocation142_spill] sm:$0xff] %v4815_v1  ;;  %v4818_v61 = vld [vmem:[%s4350_s14 + $0xf4] sm:$0xf]  ;;  %v4821_v2 = vld [vmem:[%s4350_s14 + $0xf8] sm:$0xf] }
  0xe7   : > { %5730 = vst [vmem:[#allocation143_spill] sm:$0xff] %v4818_v61  ;;  %5731 = vst [vmem:[#allocation144_spill] sm:$0xff] %v4821_v2  ;;  %v4824_v3 = vld [vmem:[%s4350_s14 + $0xfc] sm:$0xf]  ;;  %v4831_v7 = vld [vmem:[%s745_s8] ss:$0 sm:$0xff] }
  0xe8   : > { %5732 = vst [vmem:[#allocation145_spill] sm:$0xff] %v4824_v3  ;;  %5734 = vst [vmem:[#allocation146_spill] sm:$0xff] %v4831_v7 }
  0xe9 LB: >> { %v5736_v36 = vld [vmem:[#allocation49_spill] sm:$0xff]  ;;  %v5737_v34 = vld [vmem:[#allocation47_spill] sm:$0xff]  ;;  %v5747_v4 = vld [vmem:[#allocation18_spill] sm:$0xff]  ;;  %s3441_s25 = sshll.u32 %s4036_s10, 4  ;;  %v5515_v0 = vmov 0.0   ;;  %vm4045_vm1 = vmmov 0   ;;  %s4036_s10 = sphi %s4833_s10, %s920_s10  }
  0xea   : >> { %v5738_v32 = vld [vmem:[#allocation45_spill] sm:$0xff]  ;;  %v5739_v30 = vld [vmem:[#allocation43_spill] sm:$0xff]  ;;  %v5749_v13 = vld [vmem:[#allocation26_spill] sm:$0xff]  ;;  %s4839_s27 = scalar_lea.vmem [#allocation2], %s3441_s25  ;;  %3642 = vmatprep.subr.bf16.mxu1 %v5515_v0  ;;  %3658 = vmatprep.mubr.msk.bf16.mxu1 %vm4045_vm1, %v5515_v0  ;;  %s4046_s8 = smov 64   ;;  %vm1925_vm2 = vcmask 523264  }
  0xeb   : >> { %v5740_v28 = vld [vmem:[#allocation41_spill] sm:$0xff]  ;;  %v5741_v26 = vld [vmem:[#allocation39_spill] sm:$0xff]  ;;  %v5750_v11 = vld [vmem:[#allocation24_spill] sm:$0xff]  ;;  %vm2026_vm3 = vcmask 130048   ;;  %p3564_p7 = scmp.ne.s32.totalorder %s4024_s21, 1 }
  0xec   : >> { %v5742_v24 = vld [vmem:[#allocation37_spill] sm:$0xff]  ;;  %v5743_v22 = vld [vmem:[#allocation35_spill] sm:$0xff]  ;;  %v5751_v9 = vld [vmem:[#allocation22_spill] sm:$0xff]  ;;  %vm3176_vm4 = vcmask (!%p3564_p7), 1040384   ;;  %s3192_s28 = scalar_lea.vmem (!%p3564_p7), [#allocation10], %s4036_s10 }
  0xed   : >> { %v5744_v20 = vld [vmem:[#allocation33_spill] sm:$0xff]  ;;  %v5745_v18 = vld [vmem:[#allocation31_spill] sm:$0xff]  ;;  %v3445_v7 = vcombine.high %v5751_v9, %v5750_v11  ;;  %v3444_v1 = vcombine.low %v5751_v9, %v5750_v11  ;;  %v5754_v17 = vld [vmem:[#allocation30_spill] sm:$0xff] }
  0xee   : >> { %v5746_v5 = vld [vmem:[#allocation19_spill] sm:$0xff]  ;;  %v5748_v16 = vld [vmem:[#allocation29_spill] sm:$0xff]  ;;  %v5755_v15 = vld [vmem:[#allocation28_spill] sm:$0xff] }
  0xef   : >> { %v4842_v2 = vld [vmem:[%s4839_s27] sm:$0xff]  ;;  %v4846_v3 = vld [vmem:[%s4839_s27 + $0x8] sm:$0xff]  ;;  %v3448_v62 = vcombine.high %v5749_v13, %v5748_v16  ;;  %1109 = vmatprep.subr.bf16.mxu0 %v3445_v7  ;;  %v5757_v19 = vld [vmem:[#allocation32_spill] sm:$0xff] }
  0xf0   : >> { %925 = vadd.xlane.f32.xlu0 %v4842_v2  ;;  %v5752_v12 = vld [vmem:[#allocation25_spill] sm:$0xff]  ;;  %v5753_v10 = vld [vmem:[#allocation23_spill] sm:$0xff]  ;;  %1110 = vmatpush1.bf16.msra.mxu0 %v3444_v1  ;;  %v5756_v21 = vld [vmem:[#allocation34_spill] sm:$0xff] }
  0xf1   : >> { %v3446_v61 = vcombine.low %v5753_v10, %v5752_v12  ;;  %1111 = vmatprep.subr.bf16.mxu0 %v3448_v62  ;;  %v3453_v62 = vcombine.low %v5743_v22, %v5742_v24  ;;  %v5758_v25 = vld [vmem:[#allocation38_spill] sm:$0xff]  ;;  %v5759_v23 = vld [vmem:[#allocation36_spill] sm:$0xff]  ;;  %v5807_v14 = vld [vmem:[#allocation83_spill] sm:$0xff] }
  0xf2   : >> { %v3455_v1 = vcombine.low %v5759_v23, %v5758_v25  ;;  %v5760_v29 = vld [vmem:[#allocation42_spill] sm:$0xff]  ;;  %v5761_v27 = vld [vmem:[#allocation40_spill] sm:$0xff] }
  0xf3   : >> { %3643 = vmatpush3.bf16.msra.mxu1 %v3446_v61  ;;  %v3447_v61 = vcombine.low %v5749_v13, %v5748_v16  ;;  %v5762_v33 = vld [vmem:[#allocation46_spill] sm:$0xff]  ;;  %v5763_v31 = vld [vmem:[#allocation44_spill] sm:$0xff] }
  0xf4   : >> { %927 = vadd.xlane.f32.xlu0 %v4846_v3  ;;  %3644 = vmatprep.subr.bf16.mxu1 %v5515_v0  ;;  %v5764_v35 = vld [vmem:[#allocation48_spill] sm:$0xff] }
  0xf5   : >> { %1112 = vmatpush1.bf16.msra.mxu0 %v3447_v61  ;;  %v3456_v61 = vcombine.low %v5741_v26, %v5740_v28 }
 0x17d   : >> { %v926_v60 = vpop.xlane.xlu0 %925 }
 0x17e   : >> { %v930_v6 = vmul.f32 0.0078125, %v926_v60  ;;  %v3454_v60 = vcombine.high %v5743_v22, %v5742_v24 }
 0x180   : >> { %v4860_v8 = vsub.f32 %v4842_v2, %v930_v6  ;;  %v3449_v6 = vcombine.low %v5755_v15, %v5754_v17 }
 0x181   : >> { %v928_v9 = vpop.xlane.xlu0 %927 }
 0x182   : >> { %v931_v11 = vmul.f32 0.0078125, %v928_v9  ;;  %v934_v10 = vmul.f32 %v4860_v8, %v4860_v8  ;;  %3645 = vmatpush3.bf16.msra.mxu1 %v3449_v6  ;;  %v3451_v9 = vcombine.high %v5745_v18, %v5744_v20  ;;  %v3458_v6 = vcombine.low %v5761_v27, %v5760_v29 }
 0x183   : >> { %3646 = vmatprep.subr.bf16.mxu1 %v5515_v0 }
 0x184   : >> { %v4865_v12 = vsub.f32 %v4846_v3, %v931_v11  ;;  %936 = vadd.xlane.f32.xlu1 %v934_v10  ;;  %v3450_v10 = vcombine.low %v5745_v18, %v5744_v20  ;;  %v3452_v11 = vcombine.low %v5757_v19, %v5756_v21  ;;  %1113 = vmatprep.subr.bf16.mxu0 %v3451_v9  ;;  %v4048_v19 = vmov 1934713408  }
 0x185   : >> { %v3460_v9 = vcombine.high %v5739_v30, %v5738_v32  ;;  %v1238_v20 = vunpack.c.l.s4 %v4048_v19 }
 0x186   : >> { %v935_v7 = vmul.f32 %v4865_v12, %v4865_v12  ;;  %1114 = vmatpush1.bf16.msra.mxu0 %v3450_v10  ;;  %3647 = vmatpush3.bf16.msra.mxu1 %v3452_v11  ;;  %v5511_v10 = vmov 0   ;;  %v3459_v11 = vcombine.low %v5739_v30, %v5738_v32 }
 0x187   : >> { %3648 = vmatprep.subr.bf16.mxu1 %v5515_v0  ;;  %1115 = vmatprep.subr.bf16.mxu0 %v3454_v60  ;;  %v3461_v60 = vcombine.low %v5763_v31, %v5762_v33 }
 0x188   : >> { %938 = vadd.xlane.f32.xlu1 %v935_v7  ;;  %v3457_v7 = vcombine.high %v5741_v26, %v5740_v28  ;;  %1141 = vmatprep.mubr.bf16.mxu0 %v5511_v10 }
 0x18a   : >> { %1116 = vmatpush1.bf16.msra.mxu0 %v3453_v62  ;;  %3649 = vmatpush3.bf16.msra.mxu1 %v3455_v1  ;;  %v3463_v62 = vcombine.high %v5737_v34, %v5736_v36  ;;  %v3462_v1 = vcombine.low %v5737_v34, %v5736_v36 }
 0x18b   : >> { %3650 = vmatprep.subr.bf16.mxu1 %v5515_v0  ;;  %1117 = vmatprep.subr.bf16.mxu0 %v3457_v7  ;;  %v3464_v7 = vcombine.low %v5764_v35, %v4463_v37 }
 0x18e   : >> { %1118 = vmatpush1.bf16.msra.mxu0 %v3456_v61  ;;  %3651 = vmatpush3.bf16.msra.mxu1 %v3458_v6  ;;  %v3466_v61 = vcombine.high %v4466_v38, %v4472_v40  ;;  %v3465_v6 = vcombine.low %v4466_v38, %v4472_v40 }
 0x18f   : >> { %1119 = vmatprep.subr.bf16.mxu0 %v3460_v9  ;;  %3652 = vmatprep.subr.bf16.mxu1 %v5515_v0  ;;  %v3467_v9 = vcombine.low %v4469_v39, %v4475_v41 }
 0x192   : >> { %1120 = vmatpush1.bf16.msra.mxu0 %v3459_v11  ;;  %3653 = vmatpush3.bf16.msra.mxu1 %v3461_v60 }
 0x193   : >> { %1121 = vmatprep.subr.bf16.mxu0 %v3463_v62  ;;  %3654 = vmatprep.subr.bf16.mxu1 %v5515_v0 }
 0x196   : >> { %1122 = vmatpush1.bf16.msra.mxu0 %v3462_v1  ;;  %3655 = vmatpush3.bf16.msra.mxu1 %v3464_v7 }
 0x197   : >> { %1123 = vmatprep.subr.bf16.mxu0 %v3466_v61  ;;  %3656 = vmatprep.subr.bf16.mxu1 %v5515_v0 }
 0x19a   : >> { %1124 = vmatpush1.bf16.msra.mxu0 %v3465_v6  ;;  %3657 = vmatpush3.bf16.msra.mxu1 %v3467_v9 }
 0x19b   : >> { %3662 = vmatprep.subr.bf16.mxu1 %v5515_v0  ;;  %3686 = vmatprep.subr.bf16.mxu0 %v5515_v0 }
 0x211   : >> { %v937_v11 = vpop.xlane.xlu1 %936 }
 0x212   : >> { %v940_v60 = vmul.f32 0.0078125, %v937_v11 }
 0x214   : >> { %v942_v62 = vadd.f32 1e-06, %v940_v60 }
 0x215   : >> { %v939_v1 = vpop.xlane.xlu1 %938 }
 0x216   : >> { %3816 = vrsqrt.f32 %v942_v62  ;;  %v941_v7 = vmul.f32 0.0078125, %v939_v1  ;;  %v5765_v62 = vmov 0.0  }
 0x218   : >> { %v943_v10 = vadd.f32 1e-06, %v941_v7 }
 0x21a   : >> { %3818 = vrsqrt.f32 %v943_v10 }
 0x220   : >> { %v3817_v13 = vpop.eup %3816 }
 0x221   : >> { %v946_v15 = vmul.f32 %v3817_v13, %v4860_v8  ;;  %v5766_v8 = vlaneseq }
 0x223   : >> { %v954_v6 = vmul.f32 %v5747_v4, %v946_v15  ;;  %v4931_v13 = vshrl.u32 %v5766_v8, 7 }
 0x224   : >> { %v3819_v61 = vpop.eup %3818 }
 0x225   : >> { %v947_v16 = vmul.f32 %v3819_v61, %v4865_v12  ;;  %v962_v0 = vadd.f32 %v5746_v5, %v954_v6  ;;  %v5519_v12 = vsub.s32 1, %v4931_v13  ;;  %v5520_v15 = vsub.s32 0, %v4931_v13 }
 0x227   : >> { %v955_v9 = vmul.f32 %v5747_v4, %v947_v16  ;;  %v973_v16 = vrot.slane %v4478_v42, %v5519_v12 }
 0x229   : >> { %v963_v11 = vadd.f32 %v5746_v5, %v955_v9 }
 0x22b   : >> { %v964_v60 = vpack.c.bf16 %v963_v11, %v962_v0  ;;  %v969_v0 = vrot.slane %v4478_v42, %v5520_v15 }
 0x22d   : >> { %1142 = vmatmul.mubr.bf16.vlgmr.msra.gmra.mrb[0].mxu0 %v964_v60  ;;  %3659 = vmatmul.mubr.bf16.vlgmr.msra.gmra.mrb[0].mxu1 %v964_v60 }
 0x22e   : >> { %3664 = vmatprep.mubr.msk.bf16.mxu1 %vm4045_vm1, %v5765_v62  ;;  %3702 = vmatprep.mubr.msk.bf16.mxu0 %vm4045_vm1, %v5765_v62 }
 0x300   : >> { %v1143_v10 = vpop.f32.mrb[0].mxu0  ;;  %v4941_v1 = vpop.f32.mrb[0].mxu1 }
 0x301   : >> { %v1145_v7 = vpop.f32.mrb[1].mxu0  ;;  %v3660_v61 = vpop.f32.mrb[1].mxu1  ;;  %v1144_v4 = vadd.f32 %v1143_v10, %v969_v0 }
 0x302   : >> { %v1146_v6 = vadd.f32 %v1145_v7, %v973_v16  ;;  %v1147_v9 = vpop.f32.mrb[2].mxu0  ;;  %v4943_v11 = vpop.f32.mrb[2].mxu1  ;;  %v4047_v7 = vmov 1983009808  }
 0x303   : >> { %v1149_v60 = vpop.f32.mrb[3].mxu0  ;;  %v3661_v8 = vpop.f32.mrb[3].mxu1  ;;  %v1193_v12 = vmul.f32 0.125, %v1144_v4  ;;  %v1148_v15 = vadd.f32 %v1147_v9, %v969_v0  ;;  %v1207_v61 = vunpack.c.l.s4 %v4047_v7 }
 0x304   : >> { %v1150_v5 = vadd.f32 %v1149_v60, %v973_v16  ;;  %1199 = vrot.lane.b32.xlu0 %v1146_v6, %s4046_s8  ;;  %v1239_v16 = vunpack.c.0.s8 %v1238_v20  ;;  %v1205_v60 = vcombine.high %v1146_v6, %v5765_v62 }
 0x305   : >> { %v1194_v17 = vmul.f32 0.125, %v1148_v15  ;;  %v1208_v18 = vunpack.c.0.s8 %v1207_v61  ;;  %v1691_v8 = vcombine.high %v1193_v12, %v5765_v62 }
 0x306   : >> { %1201 = vrot.lane.b32.xlu1 %v1150_v5, %s4046_s8  ;;  %v4955_v0 = vsub.s32 %v1239_v16, %v4931_v13  ;;  %v1271_v20 = vcombine.high %v1150_v5, %v5765_v62 }
 0x307   : >> { %v4950_v10 = vsub.s32 %v1208_v18, %v4931_v13 }
 0x309   : >> { %v1212_v15 = vrot.slane %v1146_v6, %v4950_v10  ;;  %v1698_v19 = vrot.slane %v1193_v12, %v4950_v10  ;;  %v1219_v18 = vrot.slane %v1205_v60, %v4950_v10  ;;  %v1705_v24 = vrot.slane %v1691_v8, %v4950_v10 }
 0x30a   : >> { %1685 = vrot.lane.b32.xlu1 %v1193_v12, %s4046_s8  ;;  %v1757_v6 = vcombine.high %v1194_v17, %v5765_v62  ;;  %v1278_v25 = vrot.slane %v1150_v5, %v4950_v10 }
 0x30e   : >> { %1687 = vrot.lane.b32.xlu1 %v1194_v17, %s4046_s8 }
 0x376   : >> { %v1200_v4 = vpop.permute.xlu0 %1199 }
 0x377   : >> { %v1220_v9 = vcombine.high %v1200_v4, %v5765_v62  ;;  %v1227_v7 = vrot.slane %v1200_v4, %v4950_v10 }
 0x378   : >> { %v1202_v61 = vpop.permute.xlu1 %1201 }
 0x379   : >> { %v1234_v21 = vrot.slane %v1220_v9, %v4950_v10  ;;  %v1235_v22 = vcombine.low %v1212_v15, %v1227_v7  ;;  %v1236_v23 = vcombine.high %v1212_v15, %v1227_v7  ;;  %v1286_v16 = vcombine.high %v1202_v61, %v5765_v62 }
 0x37a   : >> { %v1293_v4 = vrot.slane %v1202_v61, %v4950_v10  ;;  %v1285_v9 = vrot.slane %v1271_v20, %v4950_v10 }
 0x37b   : >> { %v1243_v12 = vrot.slane %v1235_v22, %v4955_v0  ;;  %v1250_v60 = vrot.slane %v1236_v23, %v4955_v0  ;;  %v1251_v26 = vcombine.low %v1219_v18, %v1234_v21  ;;  %v1252_v27 = vcombine.high %v1219_v18, %v1234_v21 }
 0x37c   : >> { %v1300_v15 = vrot.slane %v1286_v16, %v4950_v10  ;;  %v1301_v7 = vcombine.low %v1278_v25, %v1293_v4  ;;  %v1302_v28 = vcombine.high %v1278_v25, %v1293_v4  ;;  %v1686_v29 = vpop.permute.xlu1 %1685  ;;  %v1764_v21 = vrot.slane %v1194_v17, %v4950_v10 }
 0x37d   : >> { %v1259_v8 = vrot.slane %v1251_v26, %v4955_v0  ;;  %v1266_v30 = vrot.slane %v1252_v27, %v4955_v0  ;;  %v1337_v5 = vcombine.low %v1243_v12, %v1250_v60  ;;  %v3468_v31 = vcombine.high %v1243_v12, %v1250_v60 }
 0x37e   : >> { %v1309_v61 = vrot.slane %v1301_v7, %v4955_v0  ;;  %v1316_v22 = vrot.slane %v1302_v28, %v4955_v0  ;;  %v1317_v23 = vcombine.low %v1285_v9, %v1300_v15  ;;  %v1318_v32 = vcombine.high %v1285_v9, %v1300_v15 }
 0x37f   : >> { %v1771_v18 = vrot.slane %v1757_v6, %v4950_v10  ;;  %v1353_v20 = vcombine.low %v1259_v8, %v1266_v30  ;;  %v3469_v16 = vcombine.high %v1259_v8, %v1266_v30  ;;  %v1344_v12 = vrot.slane %v1337_v5, %v4950_v10 }
 0x380   : >> { %v1325_v25 = vrot.slane %v1317_v23, %v4955_v0  ;;  %v1332_v26 = vrot.slane %v1318_v32, %v4955_v0  ;;  %v1387_v4 = vcombine.low %v1309_v61, %v1316_v22  ;;  %v3470_v27 = vcombine.high %v1309_v61, %v1316_v22  ;;  %v1688_v33 = vpop.permute.xlu1 %1687 }
 0x381   : >> { %v1352_v60 = vrot.slane %v3468_v31, %v4950_v10  ;;  %v1706_v28 = vcombine.high %v1686_v29, %v5765_v62  ;;  %v1713_v9 = vrot.slane %v1686_v29, %v4950_v10  ;;  %v1360_v17 = vrot.slane %v1353_v20, %v4950_v10 }
 0x382   : >> { %v1368_v6 = vrot.slane %v3469_v16, %v4950_v10  ;;  %v1403_v30 = vcombine.low %v1325_v25, %v1332_v26  ;;  %v3471_v15 = vcombine.high %v1325_v25, %v1332_v26  ;;  %v1772_v61 = vcombine.high %v1688_v33, %v5765_v62 }
 0x383   : >> { %v1720_v7 = vrot.slane %v1706_v28, %v4950_v10  ;;  %v1721_v32 = vcombine.low %v1698_v19, %v1713_v9  ;;  %v1722_v8 = vcombine.high %v1698_v19, %v1713_v9  ;;  %v1394_v5 = vrot.slane %v1387_v4, %v4950_v10 }
 0x384   : >> { %v1402_v31 = vrot.slane %v3470_v27, %v4950_v10  ;;  %v1410_v22 = vrot.slane %v1403_v30, %v4950_v10  ;;  %v1779_v29 = vrot.slane %v1688_v33, %v4950_v10  ;;  %v1418_v26 = vrot.slane %v3471_v15, %v4950_v10 }
 0x385   : >> { %v1729_v23 = vrot.slane %v1721_v32, %v4955_v0  ;;  %v1736_v20 = vrot.slane %v1722_v8, %v4955_v0  ;;  %v1737_v16 = vcombine.low %v1705_v24, %v1720_v7  ;;  %v1738_v25 = vcombine.high %v1705_v24, %v1720_v7 }
 0x386   : >> { %v1786_v19 = vrot.slane %v1772_v61, %v4950_v10  ;;  %v1787_v28 = vcombine.low %v1764_v21, %v1779_v29  ;;  %v1788_v9 = vcombine.high %v1764_v21, %v1779_v29 }
 0x387   : >> { %v1745_v4 = vrot.slane %v1737_v16, %v4955_v0  ;;  %v1752_v27 = vrot.slane %v1738_v25, %v4955_v0  ;;  %v1823_v34 = vcombine.low %v1729_v23, %v1736_v20  ;;  %v3476_v30 = vcombine.high %v1729_v23, %v1736_v20 }
 0x388   : >> { %v1795_v33 = vrot.slane %v1787_v28, %v4955_v0  ;;  %v1802_v32 = vrot.slane %v1788_v9, %v4955_v0  ;;  %v1803_v35 = vcombine.low %v1771_v18, %v1786_v19  ;;  %v1804_v8 = vcombine.high %v1771_v18, %v1786_v19 }
 0x389   : >> { %v1830_v24 = vrot.slane %v1823_v34, %v4950_v10  ;;  %v1838_v15 = vrot.slane %v3476_v30, %v4950_v10  ;;  %v1839_v7 = vcombine.low %v1745_v4, %v1752_v27  ;;  %v3477_v61 = vcombine.high %v1745_v4, %v1752_v27 }
 0x38a   : >> { %v1811_v21 = vrot.slane %v1803_v35, %v4955_v0  ;;  %v1818_v29 = vrot.slane %v1804_v8, %v4955_v0  ;;  %v1873_v16 = vcombine.low %v1795_v33, %v1802_v32  ;;  %v3478_v25 = vcombine.high %v1795_v33, %v1802_v32 }
 0x38b   : >> { %v1846_v23 = vrot.slane %v1839_v7, %v4950_v10  ;;  %v1854_v20 = vrot.slane %v3477_v61, %v4950_v10  ;;  %v1369_v28 = vcombine.low %v1344_v12, %v1352_v60  ;;  %v1377_v9 = vcombine.low %v1360_v17, %v1368_v6 }
 0x38c   : >> { %v1880_v18 = vrot.slane %v1873_v16, %v4950_v10  ;;  %v1888_v34 = vrot.slane %v3478_v25, %v4950_v10  ;;  %v1889_v19 = vcombine.low %v1811_v21, %v1818_v29  ;;  %v3479_v30 = vcombine.high %v1811_v21, %v1818_v29 }
 0x38d   : >> { %v1855_v36 = vcombine.low %v1830_v24, %v1838_v15  ;;  %v1863_v4 = vcombine.low %v1846_v23, %v1854_v20  ;;  %v1384_v35 = vrot.slane %v1377_v9, %v4955_v0  ;;  %v1419_v27 = vcombine.low %v1394_v5, %v1402_v31 }
 0x38e   : >> { %v1896_v8 = vrot.slane %v1889_v19, %v4950_v10  ;;  %v1904_v33 = vrot.slane %v3479_v30, %v4950_v10  ;;  %v1905_v32 = vcombine.low %v1880_v18, %v1888_v34  ;;  %v1427_v7 = vcombine.low %v1410_v22, %v1418_v26 }
 0x38f   : >> { %v1870_v12 = vrot.slane %v1863_v4, %v4955_v0  ;;  %v1376_v60 = vrot.slane %v1369_v28, %v4955_v0  ;;  %v1426_v6 = vrot.slane %v1419_v27, %v4955_v0  ;;  %v1862_v24 = vrot.slane %v1855_v36, %v4955_v0 }
 0x390   : >> { %v1913_v17 = vcombine.low %v1896_v8, %v1904_v33  ;;  %v1434_v61 = vrot.slane %v1427_v7, %v4955_v0  ;;  %v1912_v5 = vrot.slane %v1905_v32, %v4955_v0 }
 0x391   : >> { %v1385_v15 = vcombine.low %v1376_v60, %v1384_v35  ;;  %v1386_v21 = vcombine.high %v1376_v60, %v1384_v35  ;;  %v1871_v22 = vcombine.low %v1862_v24, %v1870_v12  ;;  %v1872_v26 = vcombine.high %v1862_v24, %v1870_v12 }
 0x392   : >> { %v1920_v31 = vrot.slane %v1913_v17, %v4955_v0  ;;  %v1435_v29 = vcombine.low %v1426_v6, %v1434_v61  ;;  %v1436_v16 = vcombine.high %v1426_v6, %v1434_v61 }
 0x394   : >> { %v1437_v25 = vpack.c.bf16 %v1435_v29, %v1385_v15  ;;  %v1921_v23 = vcombine.low %v1912_v5, %v1920_v31  ;;  %v1438_v20 = vpack.c.bf16 %v1436_v16, %v1386_v21  ;;  %v1922_v28 = vcombine.high %v1912_v5, %v1920_v31 }
 0x396   : >> { %v1930_v9 = vsel %vm1925_vm2, %v1437_v25, 0  ;;  %v1923_v18 = vpack.c.bf16 %v1921_v23, %v1871_v22  ;;  %v1924_v34 = vpack.c.bf16 %v1922_v28, %v1872_v26  ;;  %v1977_v36 = vsel %vm1925_vm2, %v1438_v20, 0 }
 0x397   : >> { %3663 = vmatpush3.bf16.xpose.msra.mxu1 %v1930_v9  ;;  %v5531_v28 = vsub.s32 2, %v4931_v13 }
 0x398   : >> { %3668 = vmatprep.subr.bf16.mxu1 %v5765_v62 }
 0x399   : >> { %v977_v9 = vrot.slane %v4478_v42, %v5531_v28 }
 0x39e   : >> { %3665 = vmatmul.mubr.msk.bf16.vlgmr.msra.gmra.mrb[4].mxu1 %vm1925_vm2, %v1923_v18  ;;  %v1190_v18 = vadd.f32 %v4943_v11, %v977_v9 }
 0x39f   : >> { %3669 = vmatpush3.bf16.xpose.msra.mxu1 %v1977_v36  ;;  %3670 = vmatprep.mubr.msk.bf16.mxu1 %vm4045_vm1, %v5765_v62 }
 0x3a0   : >> { %3674 = vmatprep.subr.bf16.mxu1 %v5765_v62 }
 0x3a6   : >> { %3671 = vmatmul.mubr.msk.bf16.vlgmr.msra.gmra.mrb[8].mxu1 %vm1925_vm2, %v1924_v34  ;;  %v1187_v34 = vadd.f32 %v4941_v1, %v977_v9 }
 0x3a7   : >> { %3676 = vmatprep.mubr.msk.bf16.mxu1 %vm4045_vm1, %v5765_v62 }
 0x471   : >> { %v1966_v19 = vpop.f32.mrb[4].mxu1 }
 0x472   : >> { %v2022_v30 = vsel %vm914_vm0, %v1966_v19, -1e+30  ;;  %v3666_v4 = vpop.f32.mrb[5].mxu1 }
 0x473   : >> { %v1969_v35 = vpop.f32.mrb[6].mxu1  ;;  %v2027_v27 = vsel %vm2026_vm3, %v2022_v30, -inf }
 0x474   : >> { %v2023_v8 = vsel %vm914_vm0, %v1969_v35, -1e+30  ;;  %2028 = vmax.xlane.f32.xlu0 %v2027_v27  ;;  %v3667_v33 = vpop.f32.mrb[7].mxu1 }
 0x475   : >> { %v2030_v32 = vsel %vm2026_vm3, %v2023_v8, -inf }
 0x476   : >> { %2031 = vmax.xlane.f32.xlu1 %v2030_v32 }
 0x479   : >> { %v2013_v7 = vpop.f32.mrb[8].mxu1 }
 0x47a   : >> { %v2024_v12 = vsel %vm914_vm0, %v2013_v7, -1e+30  ;;  %v3672_v60 = vpop.f32.mrb[9].mxu1  ;;  %v1447_v7 = vcombine.high %v1187_v34, %v5765_v62 }
 0x47b   : >> { %v2016_v17 = vpop.f32.mrb[10].mxu1  ;;  %v2033_v6 = vsel %vm2026_vm3, %v2024_v12, -inf }
 0x47c   : >> { %v2025_v61 = vsel %vm914_vm0, %v2016_v17, -1e+30  ;;  %2034 = vmax.xlane.f32.xlu0 %v2033_v6  ;;  %v3673_v24 = vpop.f32.mrb[11].mxu1  ;;  %v1454_v17 = vrot.slane %v1187_v34, %v4950_v10 }
 0x47d   : >> { %v2036_v15 = vsel %vm2026_vm3, %v2025_v61, -inf  ;;  %v1461_v24 = vrot.slane %v1447_v7, %v4950_v10 }
 0x480   : >> { %2037 = vmax.xlane.f32.xlu0 %v2036_v15  ;;  %v1513_v15 = vcombine.high %v1190_v18, %v5765_v62 }
 0x501   : >> { %v2029_v21 = vpop.xlane.xlu0 %2028 }
 0x502   : >> { %v2039_v5 = vsub.f32 %v2022_v30, %v2029_v21 }
 0x503   : >> { %v2032_v31 = vpop.xlane.xlu1 %2031 }
 0x504   : >> { %v2043_v29 = vmul.f32 1.442695, %v2039_v5  ;;  %v2040_v16 = vsub.f32 %v2023_v8, %v2032_v31 }
 0x506   : >> { %3820 = vpow2.f32 %v2043_v29  ;;  %v2045_v22 = vmul.f32 1.442695, %v2040_v16 }
 0x508   : >> { %3822 = vpow2.f32 %v2045_v22  ;;  %v1520_v22 = vrot.slane %v1190_v18, %v4950_v10 }
 0x509   : >> { %v2035_v36 = vpop.xlane.xlu0 %2034 }
 0x50a   : >> { %v2041_v4 = vsub.f32 %v2024_v12, %v2035_v36 }
 0x50c   : >> { %v2047_v27 = vmul.f32 1.442695, %v2041_v4 }
 0x50d   : >> { %v2038_v19 = vpop.xlane.xlu0 %2037 }
 0x50e   : >> { %v2042_v30 = vsub.f32 %v2025_v61, %v2038_v19  ;;  %v1527_v19 = vrot.slane %v1513_v15, %v4950_v10 }
 0x510   : >> { %v5041_v26 = vpop.eup %3820  ;;  %v2049_v35 = vmul.f32 1.442695, %v2042_v30 }
 0x511   : >> { %v2051_v25 = vsel %vm2026_vm3, %v5041_v26, 0.0 }
 0x512   : >> { %v5045_v23 = vpop.eup %3822  ;;  %2052 = vadd.xlane.f32.xlu0 %v2051_v25  ;;  %3824 = vpow2.f32 %v2049_v35 }
 0x513   : >> { %v2054_v20 = vsel %vm2026_vm3, %v5045_v23, 0.0  ;;  %3826 = vpow2.f32 %v2047_v27 }
 0x514   : >> { %2055 = vadd.xlane.f32.xlu1 %v2054_v20 }
 0x51c   : >> { %v5057_v8 = vpop.eup %3824 }
 0x51d   : >> { %v5059_v33 = vpop.eup %3826  ;;  %v2060_v11 = vsel %vm2026_vm3, %v5057_v8, 0.0 }
 0x51e   : >> { %v2057_v1 = vsel %vm2026_vm3, %v5059_v33, 0.0 }
 0x525   : >> { %1443 = vrot.lane.b32.xlu1 %v1190_v18, %s4046_s8 }
 0x528   : >> { %1441 = vrot.lane.b32.xlu0 %v1187_v34, %s4046_s8 }
 0x547   : >> { %2061 = vadd.xlane.f32.xlu0 %v2060_v11 }
 0x549   : >> { %2058 = vadd.xlane.f32.xlu1 %v2057_v1 }
 0x59f   : >> { %v2053_v32 = vpop.xlane.xlu0 %2052 }
 0x5a1   : >> { %v2056_v12 = vpop.xlane.xlu1 %2055 }
 0x5a2   : >> { %3828 = vrcp.f32 %v2056_v12 }
 0x5a3   : >> { %v1442_v60 = vpop.permute.xlu0 %1441  ;;  %3830 = vrcp.f32 %v2053_v32 }
 0x5a4   : >> { %v1462_v6 = vcombine.high %v1442_v60, %v5765_v62  ;;  %v1469_v61 = vrot.slane %v1442_v60, %v4950_v10 }
 0x5a5   : >> { %v1444_v21 = vpop.permute.xlu1 %1443 }
 0x5a6   : >> { %v1476_v5 = vrot.slane %v1462_v6, %v4950_v10  ;;  %v1477_v31 = vcombine.low %v1454_v17, %v1469_v61  ;;  %v1478_v29 = vcombine.high %v1454_v17, %v1469_v61  ;;  %v1528_v16 = vcombine.high %v1444_v21, %v5765_v62 }
 0x5a7   : >> { %v1535_v25 = vrot.slane %v1444_v21, %v4950_v10 }
 0x5a8   : >> { %v1485_v20 = vrot.slane %v1477_v31, %v4955_v0  ;;  %v1492_v9 = vrot.slane %v1478_v29, %v4955_v0  ;;  %v1493_v34 = vcombine.low %v1461_v24, %v1476_v5  ;;  %v1494_v36 = vcombine.high %v1461_v24, %v1476_v5 }
 0x5a9   : >> { %v1542_v30 = vrot.slane %v1528_v16, %v4950_v10  ;;  %v1543_v4 = vcombine.low %v1520_v22, %v1535_v25  ;;  %v1544_v35 = vcombine.high %v1520_v22, %v1535_v25 }
 0x5aa   : >> { %v1501_v27 = vrot.slane %v1493_v34, %v4955_v0  ;;  %v1508_v11 = vrot.slane %v1494_v36, %v4955_v0  ;;  %v1579_v1 = vcombine.low %v1485_v20, %v1492_v9  ;;  %v3472_v18 = vcombine.high %v1485_v20, %v1492_v9 }
 0x5ab   : >> { %v1551_v7 = vrot.slane %v1543_v4, %v4955_v0  ;;  %v1558_v60 = vrot.slane %v1544_v35, %v4955_v0  ;;  %v1559_v17 = vcombine.low %v1527_v19, %v1542_v30  ;;  %v1560_v24 = vcombine.high %v1527_v19, %v1542_v30 }
 0x5ac   : >> { %v1595_v6 = vcombine.low %v1501_v27, %v1508_v11  ;;  %v3473_v61 = vcombine.high %v1501_v27, %v1508_v11  ;;  %v1586_v16 = vrot.slane %v1579_v1, %v4950_v10  ;;  %v1594_v22 = vrot.slane %v3472_v18, %v4950_v10  ;;  %v3829_v11 = vpop.eup %3828 }
 0x5ad   : >> { %v1567_v15 = vrot.slane %v1559_v17, %v4955_v0  ;;  %v1629_v21 = vcombine.low %v1551_v7, %v1558_v60  ;;  %v3474_v29 = vcombine.high %v1551_v7, %v1558_v60  ;;  %v1574_v25 = vrot.slane %v1560_v24, %v4955_v0  ;;  %v3831_v60 = vpop.eup %3830 }
 0x5ae   : >> { %v1602_v5 = vrot.slane %v1595_v6, %v4950_v10  ;;  %v1610_v31 = vrot.slane %v3473_v61, %v4950_v10  ;;  %v1611_v19 = vcombine.low %v1586_v16, %v1594_v22  ;;  %v2068_v61 = vmul.f32 %v3829_v11, %v5045_v23 }
 0x5af   : >> { %v1636_v20 = vrot.slane %v1629_v21, %v4950_v10  ;;  %v1644_v12 = vrot.slane %v3474_v29, %v4950_v10  ;;  %v1645_v9 = vcombine.low %v1567_v15, %v1574_v25  ;;  %v3475_v34 = vcombine.high %v1567_v15, %v1574_v25 }
 0x5b0   : >> { %v1619_v36 = vcombine.low %v1602_v5, %v1610_v31  ;;  %v1618_v1 = vrot.slane %v1611_v19, %v4955_v0  ;;  %v2067_v21 = vmul.f32 %v3831_v60, %v5041_v26  ;;  %v3493_v19 = vcombine.low %v4505_v51, %v4508_v52 }
 0x5b1   : >> { %v1652_v32 = vrot.slane %v1645_v9, %v4950_v10  ;;  %v1660_v30 = vrot.slane %v3475_v34, %v4950_v10  ;;  %v1661_v4 = vcombine.low %v1636_v20, %v1644_v12  ;;  %v5767_v9 = vmov 0  }
 0x5b2   : >> { %v1626_v35 = vrot.slane %v1619_v36, %v4955_v0  ;;  %v2071_v31 = vpack.c.bf16 %v2068_v61, %v2067_v21  ;;  %v3489_v34 = vcombine.low %v4481_v43, %v4484_v44  ;;  %v3490_v36 = vcombine.low %v4487_v45, %v4490_v46 }
 0x5b3   : >> { %v1669_v27 = vcombine.low %v1652_v32, %v1660_v30  ;;  %v1668_v18 = vrot.slane %v1661_v4, %v4955_v0  ;;  %v3494_v32 = vcombine.low %v4511_v53, %v4514_v54  ;;  %v3495_v30 = vcombine.low %v4517_v55, %v4520_v56 }
 0x5b4   : >> { %v1627_v17 = vcombine.low %v1618_v1, %v1626_v35  ;;  %v1628_v5 = vcombine.high %v1618_v1, %v1626_v35  ;;  %3687 = vmatpush3.bf16.msra.mxu0 %v3489_v34 }
 0x5b5   : >> { %v1676_v7 = vrot.slane %v1669_v27, %v4955_v0  ;;  %3688 = vmatprep.subr.bf16.mxu0 %v5765_v62 }
 0x5b7   : >> { %v1677_v6 = vcombine.low %v1668_v18, %v1676_v7  ;;  %v1678_v15 = vcombine.high %v1668_v18, %v1676_v7 }
 0x5b8   : >> { %3689 = vmatpush3.bf16.msra.mxu0 %v3490_v36 }
 0x5b9   : >> { %v1679_v24 = vpack.c.bf16 %v1677_v6, %v1627_v17  ;;  %v1680_v29 = vpack.c.bf16 %v1678_v15, %v1628_v5  ;;  %3690 = vmatprep.subr.bf16.mxu0 %v5765_v62 }
 0x5bb   : >> { %3675 = vmatpush3.bf16.msra.mxu1 %v1679_v24 }
 0x5bc   : >> { %3680 = vmatprep.subr.bf16.mxu1 %v5765_v62 }
 0x5be   : >> { %3677 = vmatmul.mubr.msk.bf16.vlgmr.msra.gmra.mrb[12].mxu1 %vm2026_vm3, %v2071_v31 }
 0x5bf   : >> { %3681 = vmatpush3.bf16.msra.mxu1 %v1680_v29  ;;  %3682 = vmatprep.mubr.msk.bf16.mxu1 %vm4045_vm1, %v5765_v62 }
 0x5d4   : >> { %v2062_v16 = vpop.xlane.xlu0 %2061 }
 0x5d5   : >> { %3832 = vrcp.f32 %v2062_v16 }
 0x5d6   : >> { %v2059_v22 = vpop.xlane.xlu1 %2058 }
 0x5d7   : >> { %3834 = vrcp.f32 %v2059_v22 }
 0x5df   : >> { %v3833_v23 = vpop.eup %3832 }
 0x5e0   : >> { %v2070_v26 = vmul.f32 %v3833_v23, %v5057_v8  ;;  %v3491_v8 = vcombine.low %v4493_v47, %v4496_v48 }
 0x5e1   : >> { %v3835_v25 = vpop.eup %3834 }
 0x5e2   : >> { %v2069_v20 = vmul.f32 %v3835_v25, %v5059_v33  ;;  %3691 = vmatpush3.bf16.msra.mxu0 %v3491_v8  ;;  %v3492_v33 = vcombine.low %v4499_v49, %v4502_v50 }
 0x5e3   : >> { %3692 = vmatprep.subr.bf16.mxu0 %v5765_v62 }
 0x5e4   : >> { %v2072_v12 = vpack.c.bf16 %v2070_v26, %v2069_v20 }
 0x5e6   : >> { %3683 = vmatmul.mubr.msk.bf16.vlgmr.msra.gmra.mrb[16].mxu1 %vm2026_vm3, %v2072_v12  ;;  %3693 = vmatpush3.bf16.msra.mxu0 %v3492_v33 }
 0x5e7   : >> { %2755 = vmatprep.mubr.bf16.mxu1 %v5767_v9  ;;  %3694 = vmatprep.subr.bf16.mxu0 %v5765_v62 }
 0x5ea   : >> { %3695 = vmatpush3.bf16.msra.mxu0 %v3493_v19 }
 0x5eb   : >> { %3696 = vmatprep.subr.bf16.mxu0 %v5765_v62 }
 0x5ee   : >> { %3697 = vmatpush3.bf16.msra.mxu0 %v3494_v32 }
 0x5ef   : >> { %3698 = vmatprep.subr.bf16.mxu0 %v5765_v62 }
 0x5f2   : >> { %3699 = vmatpush3.bf16.msra.mxu0 %v3495_v30 }
 0x5f3   : >> { %3700 = vmatprep.subr.bf16.mxu0 %v5765_v62 }
 0x691   : >> { %v2110_v4 = vpop.f32.mrb[12].mxu1 }
 0x692   : >> { %v3678_v35 = vpop.f32.mrb[13].mxu1  ;;  %v2161_v1 = vcombine.high %v2110_v4, %v5765_v62  ;;  %v2168_v7 = vrot.slane %v2110_v4, %v4950_v10 }
 0x693   : >> { %v2113_v27 = vpop.f32.mrb[14].mxu1 }
 0x694   : >> { %v3679_v11 = vpop.f32.mrb[15].mxu1  ;;  %v2175_v61 = vrot.slane %v2161_v1, %v4950_v10  ;;  %v2227_v24 = vcombine.high %v2113_v27, %v5765_v62  ;;  %v2234_v22 = vrot.slane %v2113_v27, %v4950_v10 }
 0x696   : >> { %v2241_v34 = vrot.slane %v2227_v24, %v4950_v10 }
 0x6b9   : >> { %v2154_v18 = vpop.f32.mrb[16].mxu1 }
 0x6ba   : >> { %v2176_v60 = vcombine.high %v2154_v18, %v5765_v62  ;;  %v2183_v17 = vrot.slane %v2154_v18, %v4950_v10  ;;  %v3684_v6 = vpop.f32.mrb[17].mxu1 }
 0x6bb   : >> { %v2157_v15 = vpop.f32.mrb[18].mxu1 }
 0x6bc   : >> { %v2190_v21 = vrot.slane %v2176_v60, %v4950_v10  ;;  %v2191_v5 = vcombine.low %v2168_v7, %v2183_v17  ;;  %v2192_v31 = vcombine.high %v2168_v7, %v2183_v17  ;;  %v2242_v29 = vcombine.high %v2157_v15, %v5765_v62  ;;  %v3685_v16 = vpop.f32.mrb[19].mxu1 }
 0x6bd   : >> { %v2249_v23 = vrot.slane %v2157_v15, %v4950_v10 }
 0x6be   : >> { %v2199_v25 = vrot.slane %v2191_v5, %v4955_v0  ;;  %v2206_v26 = vrot.slane %v2192_v31, %v4955_v0  ;;  %v2207_v20 = vcombine.low %v2175_v61, %v2190_v21  ;;  %v2208_v12 = vcombine.high %v2175_v61, %v2190_v21 }
 0x6bf   : >> { %v2256_v36 = vrot.slane %v2242_v29, %v4950_v10  ;;  %v2257_v8 = vcombine.low %v2234_v22, %v2249_v23  ;;  %v2258_v33 = vcombine.high %v2234_v22, %v2249_v23 }
 0x6c0   : >> { %v2215_v19 = vrot.slane %v2207_v20, %v4955_v0  ;;  %v2222_v62 = vrot.slane %v2208_v12, %v4955_v0  ;;  %v2293_v32 = vcombine.low %v2199_v25, %v2206_v26  ;;  %v3484_v30 = vcombine.high %v2199_v25, %v2206_v26 }
 0x6c1   : >> { %v2265_v4 = vrot.slane %v2257_v8, %v4955_v0  ;;  %v2272_v35 = vrot.slane %v2258_v33, %v4955_v0  ;;  %v2273_v27 = vcombine.low %v2241_v34, %v2256_v36  ;;  %v2274_v11 = vcombine.high %v2241_v34, %v2256_v36 }
 0x6c2   : >> { %v2300_v1 = vrot.slane %v2293_v32, %v4950_v10  ;;  %v2308_v18 = vrot.slane %v3484_v30, %v4950_v10  ;;  %v2309_v7 = vcombine.low %v2215_v19, %v2222_v62  ;;  %v3485_v60 = vcombine.high %v2215_v19, %v2222_v62 }
 0x6c3   : >> { %v2281_v17 = vrot.slane %v2273_v27, %v4955_v0  ;;  %v2288_v6 = vrot.slane %v2274_v11, %v4955_v0  ;;  %v2343_v61 = vcombine.low %v2265_v4, %v2272_v35  ;;  %v3486_v24 = vcombine.high %v2265_v4, %v2272_v35 }
 0x6c4   : >> { %v2316_v15 = vrot.slane %v2309_v7, %v4950_v10  ;;  %v2324_v21 = vrot.slane %v3485_v60, %v4950_v10  ;;  %v2325_v5 = vcombine.low %v2300_v1, %v2308_v18  ;;  %v3496_v25 = vcombine.low %v4523_v57, %v4526_v58 }
 0x6c5   : >> { %v2350_v31 = vrot.slane %v2343_v61, %v4950_v10  ;;  %v2358_v29 = vrot.slane %v3486_v24, %v4950_v10  ;;  %v2359_v16 = vcombine.low %v2281_v17, %v2288_v6  ;;  %v3487_v22 = vcombine.high %v2281_v17, %v2288_v6 }
 0x6c6   : >> { %v2333_v23 = vcombine.low %v2316_v15, %v2324_v21  ;;  %v2332_v34 = vrot.slane %v2325_v5, %v4955_v0  ;;  %3701 = vmatpush3.bf16.msra.mxu0 %v3496_v25  ;;  %v5768_v5 = vld [vmem:[#allocation52_spill] sm:$0xff] }
 0x6c7   : >> { %v2366_v26 = vrot.slane %v2359_v16, %v4950_v10  ;;  %v2374_v20 = vrot.slane %v3487_v22, %v4950_v10  ;;  %v2375_v12 = vcombine.low %v2350_v31, %v2358_v29  ;;  %v5770_v29 = vld [vmem:[#allocation53_spill] sm:$0xff]  ;;  %v5771_v16 = vld [vmem:[#allocation51_spill] sm:$0xff]  ;;  %v5772_v25 = vld [vmem:[#allocation56_spill] sm:$0xff] }
 0x6c8   : >> { %v2340_v36 = vrot.slane %v2333_v23, %v4955_v0  ;;  %v3502_v22 = vcombine.high %v5771_v16, %v5770_v29  ;;  %v3501_v23 = vcombine.low %v5771_v16, %v5770_v29 }
 0x6c9   : >> { %v2383_v8 = vcombine.low %v2366_v26, %v2374_v20  ;;  %v2382_v62 = vrot.slane %v2375_v12, %v4955_v0  ;;  %v5773_v26 = vld [vmem:[#allocation54_spill] sm:$0xff]  ;;  %v5774_v12 = vld [vmem:[#allocation57_spill] sm:$0xff] }
 0x6ca   : >> { %v2342_v33 = vcombine.high %v2332_v34, %v2340_v36  ;;  %v2341_v19 = vcombine.low %v2332_v34, %v2340_v36  ;;  %v3504_v20 = vcombine.high %v5773_v26, %v5772_v25  ;;  %2766 = vmatprep.subr.bf16.mxu0 %v3502_v22  ;;  %v5783_v22 = vld [vmem:[#allocation63_spill] sm:$0xff] }
 0x6cb   : >> { %v2390_v32 = vrot.slane %v2383_v8, %v4955_v0 }
 0x6cd   : >> { %v2392_v30 = vcombine.high %v2382_v62, %v2390_v32  ;;  %v2391_v4 = vcombine.low %v2382_v62, %v2390_v32 }
 0x6cf   : >> { %v3811_v35 = vpack.i.bf16 %v2392_v30, %v2342_v33 }
 0x6d1   : >> { %3812 = vrot.lane.b32.xlu0 %v3811_v35, %s4046_s8  ;;  %v3503_v35 = vcombine.low %v5773_v26, %v5772_v25 }
 0x743   : >> { %v3813_v27 = vpop.permute.xlu0 %3812 }
 0x744   : >> { %v3815_v10 = vunpack.i.h.bf16 %v3813_v27  ;;  %v3814_v11 = vunpack.i.l.bf16 %v3813_v27 }
 0x746   : >> { %v2401_v1 = vsel %vm1925_vm2, %v2341_v19, %v3814_v11  ;;  %v2402_v18 = vsel %vm1925_vm2, %v2391_v4, %v3815_v10  ;;  %v5776_v10 = vld [vmem:[#allocation60_spill] sm:$0xff]  ;;  %v5777_v11 = vld [vmem:[#allocation58_spill] sm:$0xff] }
 0x747   : >> { %v2403_v7 = vpack.c.bf16 %v2402_v18, %v2401_v1  ;;  %v3508_v1 = vcombine.high %v5777_v11, %v5776_v10  ;;  %v5778_v18 = vld [vmem:[#allocation61_spill] sm:$0xff] }
 0x749   : >> { %3703 = vmatmul.mubr.bf16.vlgmr.msra.gmra.mrb[4].mxu0 %v2403_v7  ;;  %v5779_v7 = vld [vmem:[#allocation59_spill] sm:$0xff] }
 0x74a   : >> { %2798 = vmatprep.mubr.bf16.mxu0 %v5767_v9  ;;  %v5769_v9 = vld [vmem:[#allocation50_spill] sm:$0xff]  ;;  %2767 = vmatpush1.bf16.msra.mxu0 %v3501_v23 }
 0x74b   : >> { %v3500_v31 = vcombine.high %v5769_v9, %v5768_v5 }
 0x74d   : >> { %2723 = vmatprep.subr.bf16.mxu1 %v3500_v31  ;;  %v5782_v31 = vld [vmem:[#allocation65_spill] sm:$0xff] }
 0x81c   : >> { %v2492_v60 = vpop.f32.mrb[4].mxu0 }
 0x81d   : >> { %v2493_v17 = vadd.f32 %v4533_v59, %v2492_v60  ;;  %v3704_v0 = vpop.f32.mrb[5].mxu0  ;;  %v3510_v60 = vcombine.high %v5779_v7, %v5778_v18 }
 0x81e   : >> { %v2495_v6 = vpop.f32.mrb[6].mxu0  ;;  %v3509_v0 = vcombine.low %v5779_v7, %v5778_v18 }
 0x81f   : >> { %v5168_v61 = vadd.f32 %v2493_v17, %v4842_v2  ;;  %v2496_v24 = vadd.f32 %v4533_v59, %v2495_v6  ;;  %v3705_v15 = vpop.f32.mrb[7].mxu0  ;;  %v3499_v2 = vcombine.low %v5769_v9, %v5768_v5  ;;  %v3507_v17 = vcombine.low %v5777_v11, %v5776_v10  ;;  %v5780_v6 = vld [vmem:[#allocation64_spill] sm:$0xff] }
 0x821   : >> { %2503 = vadd.xlane.f32.xlu1 %v5168_v61  ;;  %v5173_v21 = vadd.f32 %v2496_v24, %v4846_v3  ;;  %v5775_v3 = vld [vmem:[#allocation55_spill] sm:$0xff]  ;;  %2724 = vmatpush1.bf16.msra.mxu1 %v3499_v2  ;;  %v5781_v24 = vld [vmem:[#allocation62_spill] sm:$0xff]  ;;  %v3514_v2 = vcombine.high %v5783_v22, %v5782_v31 }
 0x822   : >> { %v3506_v34 = vcombine.high %v5775_v3, %v5774_v12  ;;  %2725 = vmatprep.subr.bf16.mxu1 %v3504_v20  ;;  %v3505_v27 = vcombine.low %v5775_v3, %v5774_v12  ;;  %v3512_v15 = vcombine.high %v5781_v24, %v5780_v6  ;;  %v3511_v23 = vcombine.low %v5781_v24, %v5780_v6  ;;  %v5795_v3 = vld [vmem:[#allocation75_spill] sm:$0xff] }
 0x823   : >> { %v3513_v20 = vcombine.low %v5783_v22, %v5782_v31  ;;  %v5799_v6 = vld [vmem:[#allocation79_spill] sm:$0xff] }
 0x824   : >> { %2768 = vmatprep.subr.bf16.mxu0 %v3506_v34  ;;  %v5784_v34 = vld [vmem:[#allocation68_spill] sm:$0xff] }
 0x825   : >> { %2505 = vadd.xlane.f32.xlu1 %v5173_v21  ;;  %2726 = vmatpush1.bf16.msra.mxu1 %v3503_v35 }
 0x826   : >> { %2769 = vmatpush1.bf16.msra.mxu0 %v3505_v27  ;;  %2727 = vmatprep.subr.bf16.mxu1 %v3508_v1  ;;  %v5788_v27 = vld [vmem:[#allocation72_spill] sm:$0xff]  ;;  %v5789_v1 = vld [vmem:[#allocation70_spill] sm:$0xff] }
 0x827   : >> { %2770 = vmatprep.subr.bf16.mxu0 %v3510_v60  ;;  %v3520_v60 = vcombine.high %v5789_v1, %v5788_v27 }
 0x829   : >> { %2728 = vmatpush1.bf16.msra.mxu1 %v3507_v17  ;;  %v5790_v17 = vld [vmem:[#allocation73_spill] sm:$0xff] }
 0x82a   : >> { %2771 = vmatpush1.bf16.msra.mxu0 %v3509_v0  ;;  %2729 = vmatprep.subr.bf16.mxu1 %v3512_v15  ;;  %v5791_v0 = vld [vmem:[#allocation71_spill] sm:$0xff]  ;;  %v3519_v15 = vcombine.low %v5789_v1, %v5788_v27  ;;  %v5796_v1 = vld [vmem:[#allocation80_spill] sm:$0xff] }
 0x82b   : >> { %2772 = vmatprep.subr.bf16.mxu0 %v3514_v2  ;;  %v3522_v28 = vcombine.high %v5791_v0, %v5790_v17  ;;  %v3521_v2 = vcombine.low %v5791_v0, %v5790_v17  ;;  %v5797_v0 = vld [vmem:[#allocation78_spill] sm:$0xff] }
 0x82d   : >> { %2730 = vmatpush1.bf16.msra.mxu1 %v3511_v23  ;;  %v5792_v23 = vld [vmem:[#allocation76_spill] sm:$0xff] }
 0x82e   : >> { %2773 = vmatpush1.bf16.msra.mxu0 %v3513_v20  ;;  %v5793_v20 = vld [vmem:[#allocation74_spill] sm:$0xff] }
 0x8ae   : >> { %v2504_v36 = vpop.xlane.xlu1 %2503 }
 0x8af   : >> { %v2507_v8 = vmul.f32 0.0078125, %v2504_v36  ;;  %v5785_v36 = vld [vmem:[#allocation66_spill] sm:$0xff] }
 0x8b1   : >> { %v5189_v33 = vsub.f32 %v5168_v61, %v2507_v8  ;;  %v3516_v8 = vcombine.high %v5785_v36, %v5784_v34 }
 0x8b2   : >> { %v2506_v19 = vpop.xlane.xlu1 %2505 }
 0x8b3   : >> { %v2508_v62 = vmul.f32 0.0078125, %v2506_v19  ;;  %v2511_v32 = vmul.f32 %v5189_v33, %v5189_v33  ;;  %v5786_v19 = vld [vmem:[#allocation69_spill] sm:$0xff]  ;;  %2731 = vmatprep.subr.bf16.mxu1 %v3516_v8  ;;  %v3524_v8 = vcombine.high %v5793_v20, %v5792_v23 }
 0x8b5   : >> { %v5194_v30 = vsub.f32 %v5173_v21, %v2508_v62  ;;  %2513 = vadd.xlane.f32.xlu1 %v2511_v32  ;;  %v5787_v62 = vld [vmem:[#allocation67_spill] sm:$0xff] }
 0x8b6   : >> { %v3518_v32 = vcombine.high %v5787_v62, %v5786_v19  ;;  %v3517_v35 = vcombine.low %v5787_v62, %v5786_v19 }
 0x8b7   : >> { %v2512_v4 = vmul.f32 %v5194_v30, %v5194_v30 }
 0x8b8   : >> { %2774 = vmatprep.subr.bf16.mxu0 %v3518_v32  ;;  %v5794_v32 = vld [vmem:[#allocation77_spill] sm:$0xff] }
 0x8b9   : >> { %2515 = vadd.xlane.f32.xlu1 %v2512_v4  ;;  %v3515_v4 = vcombine.low %v5785_v36, %v5784_v34  ;;  %2775 = vmatpush1.bf16.msra.mxu0 %v3517_v35  ;;  %v3526_v5 = vcombine.high %v5795_v3, %v5794_v32  ;;  %v3525_v35 = vcombine.low %v5795_v3, %v5794_v32 }
 0x8ba   : >> { %2776 = vmatprep.subr.bf16.mxu0 %v3522_v28  ;;  %v5798_v28 = vld [vmem:[#allocation81_spill] sm:$0xff] }
 0x8bb   : >> { %2732 = vmatpush1.bf16.msra.mxu1 %v3515_v4  ;;  %v3523_v4 = vcombine.low %v5793_v20, %v5792_v23  ;;  %v3530_v7 = vcombine.high %v5799_v6, %v5798_v28 }
 0x8bc   : >> { %2733 = vmatprep.subr.bf16.mxu1 %v3520_v60  ;;  %v3528_v60 = vcombine.high %v5797_v0, %v5796_v1 }
 0x8bd   : >> { %2777 = vmatpush1.bf16.msra.mxu0 %v3521_v2  ;;  %v3529_v2 = vcombine.low %v5799_v6, %v5798_v28 }
 0x8be   : >> { %2778 = vmatprep.subr.bf16.mxu0 %v3526_v5 }
 0x8bf   : >> { %2734 = vmatpush1.bf16.msra.mxu1 %v3519_v15  ;;  %v3527_v15 = vcombine.low %v5797_v0, %v5796_v1  ;;  %v5800_v1 = vld [vmem:[#allocation20_spill] sm:$0xff] }
 0x8c0   : >> { %2735 = vmatprep.subr.bf16.mxu1 %v3524_v8 }
 0x8c1   : >> { %2779 = vmatpush1.bf16.msra.mxu0 %v3525_v35 }
 0x8c2   : >> { %2780 = vmatprep.subr.bf16.mxu0 %v3530_v7 }
 0x8c3   : >> { %2736 = vmatpush1.bf16.msra.mxu1 %v3523_v4 }
 0x8c4   : >> { %2737 = vmatprep.subr.bf16.mxu1 %v3528_v60  ;;  %v5801_v60 = vld [vmem:[#allocation21_spill] sm:$0xff] }
 0x8c5   : >> { %2781 = vmatpush1.bf16.msra.mxu0 %v3529_v2 }
 0x8c7   : >> { %2738 = vmatpush1.bf16.msra.mxu1 %v3527_v15 }
 0x942   : >> { %v2514_v8 = vpop.xlane.xlu1 %2513 }
 0x943   : >> { %v2517_v5 = vmul.f32 0.0078125, %v2514_v8 }
 0x945   : >> { %v2519_v3 = vadd.f32 1e-06, %v2517_v5  ;;  %v5805_v5 = vld [vmem:[#allocation131_spill] sm:$0xff] }
 0x946   : >> { %v2516_v9 = vpop.xlane.xlu1 %2515 }
 0x947   : >> { %3836 = vrsqrt.f32 %v2519_v3  ;;  %v2518_v10 = vmul.f32 0.0078125, %v2516_v9  ;;  %v5802_v9 = vld [vmem:[#allocation100_spill] sm:$0xff]  ;;  %v5803_v3 = vld [vmem:[#allocation99_spill] sm:$0xff] }
 0x949   : >> { %v2520_v11 = vadd.f32 1e-06, %v2518_v10  ;;  %v3540_v10 = vcombine.low %v5803_v3, %v5802_v9  ;;  %v5814_v9 = vld [vmem:[#allocation86_spill] sm:$0xff]  ;;  %v5815_v3 = vld [vmem:[#allocation85_spill] sm:$0xff] }
 0x94b   : >> { %3838 = vrsqrt.f32 %v2520_v11  ;;  %v5804_v11 = vld [vmem:[#allocation132_spill] sm:$0xff]  ;;  %3598 = vmatprep.subr.bf16.mxu1 %v3540_v10  ;;  %v5819_v10 = vld [vmem:[#allocation103_spill] sm:$0xff] }
 0x951   : >> { %v3837_v4 = vpop.eup %3836 }
 0x952   : >> { %v2523_v35 = vmul.f32 %v3837_v4, %v5189_v33  ;;  %v3556_v33 = vcombine.low %v5805_v5, %v5804_v11  ;;  %v5806_v4 = vld [vmem:[#allocation84_spill] sm:$0xff]  ;;  %v5816_v11 = vld [vmem:[#allocation118_spill] sm:$0xff]  ;;  %v5817_v5 = vld [vmem:[#allocation117_spill] sm:$0xff] }
 0x953   : >> { %v3549_v17 = vcombine.low %v5817_v5, %v5816_v11  ;;  %v5830_v11 = vld [vmem:[#allocation89_spill] sm:$0xff] }
 0x954   : >> { %v2531_v6 = vmul.f32 %v5800_v1, %v2523_v35  ;;  %v5809_v35 = vld [vmem:[#allocation115_spill] sm:$0xff]  ;;  %3620 = vmatprep.subr.bf16.mxu0 %v3556_v33 }
 0x955   : >> { %v3839_v12 = vpop.eup %3838 }
 0x956   : >> { %v2524_v0 = vmul.f32 %v3839_v12, %v5194_v30  ;;  %v2539_v15 = vadd.f32 %v5801_v60, %v2531_v6  ;;  %v3532_v12 = vcombine.low %v5807_v14, %v5806_v4  ;;  %v5808_v30 = vld [vmem:[#allocation116_spill] sm:$0xff]  ;;  %v5810_v6 = vld [vmem:[#allocation102_spill] sm:$0xff] }
 0x957   : >> { %v3548_v16 = vcombine.low %v5809_v35, %v5808_v30  ;;  %v5818_v14 = vld [vmem:[#allocation104_spill] sm:$0xff]  ;;  %v5822_v30 = vld [vmem:[#allocation87_spill] sm:$0xff] }
 0x958   : >> { %v2532_v7 = vmul.f32 %v5800_v1, %v2524_v0  ;;  %v5811_v0 = vld [vmem:[#allocation101_spill] sm:$0xff]  ;;  %v3533_v1 = vcombine.low %v5815_v3, %v5814_v9  ;;  %v3542_v33 = vcombine.low %v5819_v10, %v5818_v14  ;;  %v5829_v3 = vld [vmem:[#allocation90_spill] sm:$0xff] }
 0x959   : >> { %v3535_v5 = vcombine.low %v5830_v11, %v5829_v3  ;;  %v5831_v14 = vld [vmem:[#allocation122_spill] sm:$0xff]  ;;  %v5832_v10 = vld [vmem:[#allocation121_spill] sm:$0xff] }
 0x95a   : >> { %v2540_v2 = vadd.f32 %v5801_v60, %v2532_v7  ;;  %v3541_v7 = vcombine.low %v5811_v0, %v5810_v6  ;;  %v5823_v6 = vld [vmem:[#allocation120_spill] sm:$0xff]  ;;  %v5824_v0 = vld [vmem:[#allocation119_spill] sm:$0xff]  ;;  %v5843_v11 = vld [vmem:[#allocation141_spill] sm:$0xff] }
 0x95c   : >> { %v2541_v8 = vpack.c.bf16 %v2540_v2, %v2539_v15  ;;  %v5812_v15 = vld [vmem:[#allocation134_spill] sm:$0xff]  ;;  %v5813_v2 = vld [vmem:[#allocation133_spill] sm:$0xff] }
 0x95e   : >> { %2756 = vmatmul.mubr.bf16.vlgmr.msra.gmra.mrb[20].mxu1 %v2541_v8  ;;  %2799 = vmatmul.mubr.bf16.vlgmr.msra.gmra.mrb[8].mxu0 %v2541_v8  ;;  %v3557_v8 = vcombine.low %v5813_v2, %v5812_v15  ;;  %v3550_v15 = vcombine.low %v5824_v0, %v5823_v6  ;;  %v5826_v2 = vld [vmem:[#allocation105_spill] sm:$0xff]  ;;  %v5837_v0 = vld [vmem:[#allocation92_spill] sm:$0xff] }
 0x95f   : >> { %3599 = vmatpush3.bf16.msra.mxu1 %v3532_v12  ;;  %3621 = vmatpush3.bf16.msra.mxu0 %v3548_v16  ;;  %v5820_v16 = vld [vmem:[#allocation135_spill] sm:$0xff]  ;;  %v5821_v12 = vld [vmem:[#allocation88_spill] sm:$0xff] }
 0x960   : >> { %3600 = vmatprep.subr.bf16.mxu1 %v3541_v7  ;;  %3622 = vmatprep.subr.bf16.mxu0 %v3557_v8  ;;  %v3558_v4 = vcombine.low %v5820_v16, %v4794_v63  ;;  %v3534_v35 = vcombine.low %v5822_v30, %v5821_v12  ;;  %v5825_v7 = vld [vmem:[#allocation106_spill] sm:$0xff]  ;;  %v5828_v8 = vld [vmem:[#allocation136_spill] sm:$0xff]  ;;  %v3551_v16 = vcombine.low %v5832_v10, %v5831_v14  ;;  %v5835_v30 = vld [vmem:[#allocation139_spill] sm:$0xff] }
 0x961   : >> { %v5845_v10 = vld [vmem:[#allocation94_spill] sm:$0xff] }
 0x963   : >> { %3601 = vmatpush3.bf16.msra.mxu1 %v3533_v1  ;;  %3623 = vmatpush3.bf16.msra.mxu0 %v3549_v17  ;;  %v3543_v1 = vcombine.low %v5826_v2, %v5825_v7  ;;  %v5827_v17 = vld [vmem:[#allocation137_spill] sm:$0xff]  ;;  %v5839_v2 = vld [vmem:[#allocation124_spill] sm:$0xff] }
 0x964   : >> { %3602 = vmatprep.subr.bf16.mxu1 %v3542_v33  ;;  %3624 = vmatprep.subr.bf16.mxu0 %v3558_v4  ;;  %v3559_v9 = vcombine.low %v5828_v8, %v5827_v17  ;;  %v5833_v33 = vld [vmem:[#allocation108_spill] sm:$0xff]  ;;  %v5834_v4 = vld [vmem:[#allocation107_spill] sm:$0xff] }
 0x965   : >> { %v3544_v12 = vcombine.low %v5834_v4, %v5833_v33  ;;  %v5840_v17 = vld [vmem:[#allocation123_spill] sm:$0xff]  ;;  %v5847_v4 = vld [vmem:[#allocation126_spill] sm:$0xff] }
 0x966   : >> { %v3552_v8 = vcombine.low %v5840_v17, %v5839_v2  ;;  %v5853_v17 = vld [vmem:[#allocation96_spill] sm:$0xff] }
 0x967   : >> { %3603 = vmatpush3.bf16.msra.mxu1 %v3534_v35  ;;  %3625 = vmatpush3.bf16.msra.mxu0 %v3550_v15  ;;  %v5836_v35 = vld [vmem:[#allocation138_spill] sm:$0xff]  ;;  %v5838_v15 = vld [vmem:[#allocation91_spill] sm:$0xff] }
 0x968   : >> { %3604 = vmatprep.subr.bf16.mxu1 %v3543_v1  ;;  %3626 = vmatprep.subr.bf16.mxu0 %v3559_v9  ;;  %v3560_v6 = vcombine.low %v5836_v35, %v5835_v30  ;;  %v3536_v7 = vcombine.low %v5838_v15, %v5837_v0  ;;  %v5841_v1 = vld [vmem:[#allocation110_spill] sm:$0xff]  ;;  %v5842_v9 = vld [vmem:[#allocation109_spill] sm:$0xff]  ;;  %v5851_v15 = vld [vmem:[#allocation143_spill] sm:$0xff] }
 0x969   : >> { %v3545_v3 = vcombine.low %v5842_v9, %v5841_v1  ;;  %v5848_v30 = vld [vmem:[#allocation125_spill] sm:$0xff]  ;;  %v5855_v9 = vld [vmem:[#allocation128_spill] sm:$0xff] }
 0x96a   : >> { %v3553_v35 = vcombine.low %v5848_v30, %v5847_v4  ;;  %v5861_v30 = vld [vmem:[#allocation98_spill] sm:$0xff] }
 0x96b   : >> { %3605 = vmatpush3.bf16.msra.mxu1 %v3535_v5  ;;  %3627 = vmatpush3.bf16.msra.mxu0 %v3551_v16  ;;  %v5844_v5 = vld [vmem:[#allocation140_spill] sm:$0xff]  ;;  %v5846_v16 = vld [vmem:[#allocation93_spill] sm:$0xff] }
 0x96c   : >> { %3606 = vmatprep.subr.bf16.mxu1 %v3544_v12  ;;  %3628 = vmatprep.subr.bf16.mxu0 %v3560_v6  ;;  %v3561_v14 = vcombine.low %v5844_v5, %v5843_v11  ;;  %v3537_v33 = vcombine.low %v5846_v16, %v5845_v10  ;;  %v5849_v12 = vld [vmem:[#allocation112_spill] sm:$0xff]  ;;  %v5850_v6 = vld [vmem:[#allocation111_spill] sm:$0xff]  ;;  %v5859_v16 = vld [vmem:[#allocation145_spill] sm:$0xff] }
 0x96d   : >> { %v3546_v0 = vcombine.low %v5850_v6, %v5849_v12  ;;  %v5856_v11 = vld [vmem:[#allocation127_spill] sm:$0xff]  ;;  %v5863_v6 = vld [vmem:[#allocation130_spill] sm:$0xff] }
 0x96e   : >> { %v3554_v5 = vcombine.low %v5856_v11, %v5855_v9  ;;  %v5868_v11 = vsub.s32 1, %v4931_v13 }
 0x96f   : >> { %3607 = vmatpush3.bf16.msra.mxu1 %v3536_v7  ;;  %3629 = vmatpush3.bf16.msra.mxu0 %v3552_v8  ;;  %v5852_v7 = vld [vmem:[#allocation142_spill] sm:$0xff]  ;;  %v5854_v8 = vld [vmem:[#allocation95_spill] sm:$0xff] }
 0x970   : >> { %3608 = vmatprep.subr.bf16.mxu1 %v3545_v3  ;;  %3630 = vmatprep.subr.bf16.mxu0 %v3561_v14  ;;  %v3562_v2 = vcombine.low %v5852_v7, %v5851_v15  ;;  %v3538_v1 = vcombine.low %v5854_v8, %v5853_v17  ;;  %v5857_v3 = vld [vmem:[#allocation114_spill] sm:$0xff]  ;;  %v5858_v14 = vld [vmem:[#allocation113_spill] sm:$0xff] }
 0x971   : >> { %v3547_v10 = vcombine.low %v5858_v14, %v5857_v3  ;;  %v5864_v15 = vld [vmem:[#allocation129_spill] sm:$0xff]  ;;  %v5866_v17 = vld [vmem:[#allocation82_spill] sm:$0xff] }
 0x972   : >> { %v3555_v7 = vcombine.low %v5864_v15, %v5863_v6 }
 0x973   : >> { %3609 = vmatpush3.bf16.msra.mxu1 %v3537_v33  ;;  %3631 = vmatpush3.bf16.msra.mxu0 %v3553_v35  ;;  %v5860_v33 = vld [vmem:[#allocation144_spill] sm:$0xff]  ;;  %v5862_v35 = vld [vmem:[#allocation97_spill] sm:$0xff] }
 0x974   : >> { %3610 = vmatprep.subr.bf16.mxu1 %v3546_v0  ;;  %3632 = vmatprep.subr.bf16.mxu0 %v3562_v2  ;;  %v3563_v4 = vcombine.low %v5860_v33, %v5859_v16  ;;  %v3539_v12 = vcombine.low %v5862_v35, %v5861_v30  ;;  %v2557_v0 = vsub.s32 3, %v4931_v13  ;;  %v5865_v2 = vsub.s32 0, %v4931_v13 }
 0x976   : >> { %v2546_v8 = vrot.slane %v5866_v17, %v5865_v2  ;;  %v2558_v3 = vrot.slane %v5866_v17, %v2557_v0 }
 0x977   : >> { %3611 = vmatpush3.bf16.msra.mxu1 %v3538_v1  ;;  %3633 = vmatpush3.bf16.msra.mxu0 %v3554_v5  ;;  %v5867_v1 = vsub.s32 2, %v4931_v13  ;;  %v2550_v5 = vrot.slane %v5866_v17, %v5868_v11 }
 0x978   : >> { %3612 = vmatprep.subr.bf16.mxu1 %v3547_v10  ;;  %3634 = vmatprep.subr.bf16.mxu0 %v3563_v4 }
 0x979   : >> { %v2554_v9 = vrot.slane %v5866_v17, %v5867_v1 }
 0x97b   : >> { %3613 = vmatpush3.bf16.msra.mxu1 %v3539_v12  ;;  %3635 = vmatpush3.bf16.msra.mxu0 %v3555_v7 }
 0xa31   : >> { %v2757_v14 = vpop.f32.mrb[20].mxu1  ;;  %v2800_v10 = vpop.f32.mrb[8].mxu0 }
 0xa32   : >> { %v5331_v16 = vadd.f32 %v2757_v14, %v2546_v8  ;;  %v5333_v33 = vadd.f32 %v2800_v10, %v2554_v9  ;;  %v2759_v4 = vpop.f32.mrb[21].mxu1  ;;  %v2802_v30 = vpop.f32.mrb[9].mxu0 }
 0xa33   : >> { %v5335_v35 = vadd.f32 %v2759_v4, %v2550_v5  ;;  %v5337_v12 = vadd.f32 %v2802_v30, %v2558_v3  ;;  %v2761_v6 = vpop.f32.mrb[22].mxu1  ;;  %v2804_v15 = vpop.f32.mrb[10].mxu0 }
 0xa34   : >> { %v2809_v13 = vmul.f32 %v5331_v16, %v5331_v16  ;;  %v2811_v7 = vmul.f32 %v5333_v33, %v5333_v33  ;;  %v5343_v0 = vadd.f32 %v2761_v6, %v2546_v8  ;;  %v5345_v2 = vadd.f32 %v2804_v15, %v2554_v9  ;;  %v2763_v1 = vpop.f32.mrb[23].mxu1  ;;  %v2806_v11 = vpop.f32.mrb[11].mxu0 }
 0xa35   : >> { %v2810_v14 = vmul.f32 %v5335_v35, %v5335_v35  ;;  %v2812_v10 = vmul.f32 %v5337_v12, %v5337_v12  ;;  %v5351_v4 = vadd.f32 %v2763_v1, %v2550_v5  ;;  %v5353_v30 = vadd.f32 %v2806_v11, %v2558_v3 }
 0xa36   : >> { %v2817_v17 = vmul.f32 %v2809_v13, %v5331_v16  ;;  %v2819_v18 = vmul.f32 %v2811_v7, %v5333_v33  ;;  %v2813_v8 = vmul.f32 %v5343_v0, %v5343_v0  ;;  %v2815_v9 = vmul.f32 %v5345_v2, %v5345_v2 }
 0xa37   : >> { %v2818_v6 = vmul.f32 %v2810_v14, %v5335_v35  ;;  %v2820_v15 = vmul.f32 %v2812_v10, %v5337_v12  ;;  %v2814_v5 = vmul.f32 %v5351_v4, %v5351_v4  ;;  %v2816_v3 = vmul.f32 %v5353_v30, %v5353_v30 }
 0xa38   : >> { %v2825_v1 = vmul.f32 0.044715, %v2817_v17  ;;  %v2827_v13 = vmul.f32 0.044715, %v2819_v18  ;;  %v2821_v7 = vmul.f32 %v2813_v8, %v5343_v0  ;;  %v2823_v11 = vmul.f32 %v2815_v9, %v5345_v2 }
 0xa39   : >> { %v2826_v19 = vmul.f32 0.044715, %v2818_v6  ;;  %v2828_v20 = vmul.f32 0.044715, %v2820_v15  ;;  %v2822_v22 = vmul.f32 %v2814_v5, %v5351_v4  ;;  %v2824_v14 = vmul.f32 %v2816_v3, %v5353_v30 }
 0xa3a   : >> { %v2833_v10 = vadd.f32 %v2825_v1, %v5331_v16  ;;  %v2835_v23 = vadd.f32 %v2827_v13, %v5333_v33  ;;  %v2829_v24 = vmul.f32 0.044715, %v2821_v7  ;;  %v2831_v25 = vmul.f32 0.044715, %v2823_v11 }
 0xa3b   : >> { %v2834_v26 = vadd.f32 %v2826_v19, %v5335_v35  ;;  %v2836_v18 = vadd.f32 %v2828_v20, %v5337_v12  ;;  %v2830_v17 = vmul.f32 0.044715, %v2822_v22  ;;  %v2832_v8 = vmul.f32 0.044715, %v2824_v14 }
 0xa3c   : >> { %v2841_v27 = vmul.f32 0.7978846, %v2833_v10  ;;  %v2843_v9 = vmul.f32 0.7978846, %v2835_v23  ;;  %v2837_v6 = vadd.f32 %v2829_v24, %v5343_v0  ;;  %v2839_v15 = vadd.f32 %v2831_v25, %v5345_v2 }
 0xa3d   : >> { %v2842_v5 = vmul.f32 0.7978846, %v2834_v26  ;;  %v2844_v3 = vmul.f32 0.7978846, %v2836_v18  ;;  %v2838_v1 = vadd.f32 %v2830_v17, %v5351_v4  ;;  %v2840_v13 = vadd.f32 %v2832_v8, %v5353_v30 }
 0xa3e   : >> { %3840 = vtanh.f32 %v2841_v27  ;;  %v2845_v7 = vmul.f32 0.7978846, %v2837_v6  ;;  %v2847_v19 = vmul.f32 0.7978846, %v2839_v15 }
 0xa3f   : >> { %3842 = vtanh.f32 %v2843_v9  ;;  %v2846_v20 = vmul.f32 0.7978846, %v2838_v1  ;;  %v2848_v22 = vmul.f32 0.7978846, %v2840_v13 }
 0xa40   : >> { %3844 = vtanh.f32 %v2842_v5 }
 0xa41   : >> { %3846 = vtanh.f32 %v2844_v3 }
 0xa42   : >> { %3848 = vtanh.f32 %v2845_v7 }
 0xa43   : >> { %3850 = vtanh.f32 %v2847_v19 }
 0xa44   : >> { %3852 = vtanh.f32 %v2846_v20 }
 0xa45   : >> { %3854 = vtanh.f32 %v2848_v22 }
 0xa48   : >> { %v3841_v24 = vpop.eup %3840 }
 0xa49   : >> { %v3843_v25 = vpop.eup %3842  ;;  %v2857_v26 = vadd.f32 1.0, %v3841_v24 }
 0xa4a   : >> { %v3845_v23 = vpop.eup %3844  ;;  %v2859_v11 = vadd.f32 1.0, %v3843_v25 }
 0xa4b   : >> { %v3847_v14 = vpop.eup %3846  ;;  %v2858_v10 = vadd.f32 1.0, %v3845_v23  ;;  %v2865_v8 = vmul.f32 0.5, %v2857_v26 }
 0xa4c   : >> { %v3849_v18 = vpop.eup %3848  ;;  %v2860_v27 = vadd.f32 1.0, %v3847_v14  ;;  %v2867_v15 = vmul.f32 0.5, %v2859_v11 }
 0xa4d   : >> { %v3851_v17 = vpop.eup %3850  ;;  %v2861_v9 = vadd.f32 1.0, %v3849_v18  ;;  %v2866_v7 = vmul.f32 0.5, %v2858_v10  ;;  %v2873_v24 = vmul.f32 %v2865_v8, %v5331_v16 }
 0xa4e   : >> { %v3853_v6 = vpop.eup %3852  ;;  %v2863_v5 = vadd.f32 1.0, %v3851_v17  ;;  %v2868_v22 = vmul.f32 0.5, %v2860_v27  ;;  %v2875_v14 = vmul.f32 %v2867_v15, %v5333_v33 }
 0xa4f   : >> { %v3855_v3 = vpop.eup %3854  ;;  %v2869_v1 = vmul.f32 0.5, %v2861_v9  ;;  %v2862_v13 = vadd.f32 1.0, %v3853_v6  ;;  %v2874_v11 = vmul.f32 %v2866_v7, %v5335_v35 }
 0xa50   : >> { %v2871_v19 = vmul.f32 0.5, %v2863_v5  ;;  %v2864_v20 = vadd.f32 1.0, %v3855_v3  ;;  %v2876_v10 = vmul.f32 %v2868_v22, %v5337_v12 }
 0xa51   : >> { %v2877_v25 = vmul.f32 %v2869_v1, %v5343_v0  ;;  %v2870_v23 = vmul.f32 0.5, %v2862_v13  ;;  %v5869_v1 = vld [vmem:[#allocation146_spill] sm:$0xff] }
 0xa52   : >> { %v2879_v26 = vmul.f32 %v2871_v19, %v5345_v2  ;;  %v2872_v18 = vmul.f32 0.5, %v2864_v20 }
 0xa53   : >> { %v2878_v17 = vmul.f32 %v2870_v23, %v5351_v4  ;;  %v2881_v9 = vpack.c.bf16 %v2877_v25, %v2873_v24 }
 0xa54   : >> { %v2880_v6 = vmul.f32 %v2872_v18, %v5353_v30  ;;  %v2883_v27 = vpack.c.bf16 %v2879_v26, %v2875_v14 }
 0xa55   : >> { %v2882_v5 = vpack.c.bf16 %v2878_v17, %v2874_v11 }
 0xa56   : >> { %v2884_v16 = vpack.c.bf16 %v2880_v6, %v2876_v10 }
 0xa57   : >> { %3115 = vmatprep.mubr.bf16.mxu1 %v2882_v5  ;;  %v3174_v5 = vld [vmem:[#allocation7] sm:$0x1] (!%p3564_p7) }
 0xa58   : >> { %3156 = vmatprep.mubr.bf16.mxu0 %v2884_v16  ;;  %3116 = vmatmul.mubr.bf16.vlgmr.msra.gmra.mrb[24].mxu1 %v2881_v9 }
 0xa59   : >> { %3157 = vmatmul.mubr.bf16.vlgmr.msra.gmra.mrb[12].mxu0 %v2883_v27 }
 0xb2b   : >> { %v3614_v33 = vpop.f32.mrb[24].mxu1 }
 0xb2c   : >> { %v3636_v0 = vpop.f32.mrb[12].mxu0  ;;  %v3615_v2 = vpop.f32.mrb[25].mxu1 }
 0xb2d   : >> { %v3616_v8 = vadd.f32 %v3615_v2, %v3614_v33  ;;  %v3637_v35 = vpop.f32.mrb[13].mxu0  ;;  %v3617_v4 = vpop.f32.mrb[26].mxu1  ;;  %v3175_v33 = vld [vmem:[#allocation9] sm:$0x1] (!%p3564_p7) }
 0xb2e   : >> { %v3638_v15 = vadd.f32 %v3637_v35, %v3636_v0  ;;  %v3639_v3 = vpop.f32.mrb[14].mxu0  ;;  %v3618_v12 = vpop.f32.mrb[27].mxu1 }
 0xb2f   : >> { %v3118_v30 = vadd.f32 %v3616_v8, %v5869_v1  ;;  %v3619_v13 = vadd.f32 %v3618_v12, %v3617_v4  ;;  %v3640_v7 = vpop.f32.mrb[15].mxu0 }
 0xb30   : >> { %v3641_v19 = vadd.f32 %v3640_v7, %v3639_v3 }
 0xb31   : >> { %v3159_v20 = vadd.f32 %v3638_v15, %v3118_v30  ;;  %v3121_v22 = vadd.f32 %v3619_v13, %v5869_v1  ;;  %3172 = sbr.rel (%p3564_p7) target bundleno = 3191 (0xc77), region = 107 }
 0xb33   : >> { %v3165_v24 = vadd.f32 %v3159_v20, %v5168_v61  ;;  %v3162_v25 = vadd.f32 %v3641_v19, %v3121_v22 }
 0xb35   : >> { %3167 = vst [vmem:[%s4839_s27] sm:$0xff] %v3165_v24  ;;  %v3166_v23 = vadd.f32 %v3162_v25, %v5173_v21 }
 0xb37   : >> { %3168 = vst [vmem:[%s4839_s27 + $0x8] sm:$0xff] %v3166_v23 }
 0xb3c   : >> { %v3173_v14 = vld [vmem:[%s4839_s27] sm:$0x1] }
 0xb3d   : >> { %v3177_v26 = vsel %vm3176_vm4, %v3173_v14, 0.0 }
 0xb3e   : >> { %3178 = vadd.xlane.f32.xlu0 %v3177_v26 }
 0xbcb   : >> { %v3179_v18 = vpop.xlane.xlu0 %3178 }
 0xbcc   : >> { %v3180_v11 = vmul.f32 0.0078125, %v3179_v18 }
 0xbce   : >> { %v3181_v17 = vsub.f32 %v3173_v14, %v3180_v11 }
 0xbd0   : >> { %v3182_v9 = vmul.f32 %v3181_v17, %v3181_v17 }
 0xbd2   : >> { %v3183_v10 = vsel %vm3176_vm4, %v3182_v9, 0.0 }
 0xbd3   : >> { %3184 = vadd.xlane.f32.xlu0 %v3183_v10 }
 0xc60   : >> { %v3185_v61 = vpop.xlane.xlu0 %3184 }
 0xc61   : >> { %v3186_v6 = vmul.f32 0.0078125, %v3185_v61 }
 0xc63   : >> { %v3187_v27 = vadd.f32 1e-06, %v3186_v6 }
 0xc65   : >> { %3856 = vrsqrt.f32 %v3187_v27 }
 0xc6f   : >> { %v3857_v21 = vpop.eup %3856 }
 0xc70   : >> { %v3189_v16 = vmul.f32 %v3857_v21, %v3181_v17 }
 0xc72   : >> { %v3190_v0 = vmul.f32 %v3189_v16, %v3174_v5 }
 0xc74   : >> { %v3191_v2 = vadd.f32 %v3190_v0, %v3175_v33 }
 0xc76   : >> { %3193 = vst [vmem:[%s3192_s28] sm:$0x1] %v3191_v2 }
 0xc77 PF: >> { %s920_s10 = sadd.s32 1, %s4036_s10  }
 0xc78   : >> { %p917_p9 = scmp.ge.s32.totalorder %s920_s10, 2  }
 0xc79   : > { %s5870_s23 = sld [smem:[#allocation15_spill]] (%p917_p9)  ;;  %s4049_s18 = smov (%p917_p9), [#allocation10]  }
 0xc7a   : > { %919 = sbr.rel (!%p917_p9) target bundleno = 233 (0xe9), region = 179  ;;  %s3203_s1 = sshll.u32 (%p917_p9), %s4049_s18, 4  ;;  %s3204_s1 = int_to_ptr.vmem [resolvable:$true] %s3203_s1 }
 0xc7b   : > { %s3944_s14 = scalar_lea.vmem (%p917_p9), %s3204_s1, 32  ;;  %p3951_p12 = scmp.lt.s32.totalorder (%p917_p9), %s3204_s1, %s3204_s1 }
 0xc7c   : > { %p3945_p0 = scmp.ne.s32.totalorder (%p917_p9), %s3204_s1, %s3944_s14  ;;  %p3952_p1 = scmp.lt.s32.totalorder (%p917_p9), %s3944_s14, %s3944_s14 }
 0xc7e   : > { %p3953_p2 = por (%p917_p9), %p3952_p1, %p3951_p12 }
 0xc7f   : > { %s5871_s17 = sadd.s32 (%p917_p9), 4294967295, %s5870_s23  }
 0xc80   : > { %p5401_p10 = scmp.eq.s32.totalorder (%p917_p9), %s5871_s17, 1 }
 0xc82   : > { %p3946_p3 = pnand %p3945_p0, %p5401_p10 }
 0xc84   : > { %p3947_p11 = pneg %p3946_p3 }
 0xc86   : > { %p3954_p8 = pnand %p3953_p2, %p3947_p11 }
 0xc88   : > { %3957 = shalt.err (!%p3954_p8)
}
 0xc89   : > { %s5873_s12 = sld [smem:[#allocation161_spill]] }
 0xc8f   : > { %s3958_s5 = scalar_lea.hbm %s5873_s12, 32 }
 0xc90   : > { %p3959_p13 = scmp.ne.s32.totalorder %s5873_s12, %s3958_s5  ;;  %p3964_p5 = scmp.lt.u32.totalorder %s3958_s5, %s5873_s12 }
 0xc92   : > { %p3960_p4 = pnand %p3959_p13, %p5401_p10 }
 0xc94   : > { %p3961_p6 = pneg %p3960_p4 }
 0xc96   : > { %p3966_p7 = pnand %p3964_p5, %p3961_p6 }
 0xc98   : > { %3969 = shalt.err (!%p3966_p7)
}
 0xc99   : > { %s4050_s4 = smov 16   ;;  %s4051_s7 = smov 1  }
 0xc9a   : > { %3721 = dma.vmem_to_hbm [thread:$0]  (%p5401_p10), %s3204_s1, 32, %s5873_s12, [#allocation6], %s4050_s4, %s4050_s4, %s4051_s7  }
 0xc9b   : > { %4007 = dma.done.wait (%p5401_p10), [#allocation6], 32  }
 0xc9c   : > { %4009 = vsyncadd (%p5401_p10), [#allocation6], 4294967264 }
 0xc9d PF: > { %s5874_s9 = sld [smem:[#allocation15_spill]]  ;;  %s5875_s22 = sld [smem:[#allocation17_spill]] }
 0xc9e   : > { %s5876_s21 = sld [smem:[#allocation14_spill]]  ;;  %s5877_s11 = sld [smem:[#allocation16_spill]] }
 0xc9f   : > { %s5878_s18 = smov %s4016_s19  ;;  %s5879_s19 = smov %s4020_s20 }
 0xca3   : > { %s30_s23 = sadd.s32 1, %s5874_s9   ;;  %s5880_s20 = smov %s5875_s22 }
 0xca4   : > { %p27_p9 = scmp.ge.s32.totalorder %s30_s23, 4   ;;  %s5881_s22 = smov %s5877_s11 }
 0xca6   :  { %29 = sbr.rel (!%p27_p9) target bundleno = 22 (0x16), region = 190 }
 0xcad   :  { %3219 = vsyncpa [#allocation5], 1 }
 0xcae   :  { %3221 = vsyncpa [#allocation5 + $0x1], 1 }
 0xcaf   :  { %3222 = vsyncpa [#allocation8], 1 }
 0xcb0   :  { %3223 = vsyncpa [#allocation6], 1 }
 0xcb1   :  { %3225 = vsyncpa [#allocation6 + $0x1], 1 }

</bundles_post_ra>
